<compile_context>
chip_gen: v5e
topology: v5e:2x2
jax: 0.10.0
libtpu: 0.0.40
codegen_flags: <defaults>
</compile_context>

<pallas_src>
import numpy as np
import jax
import jax.numpy as jnp
from jax import lax
from jax.experimental import pallas as pl
from jax.experimental.pallas import tpu as pltpu


def round_up(a, b):
    return -(-a // b) * b


def pick_vmem_limit():
    """Generation-aware scoped-VMEM limit: ~75% of physical per-core VMEM, capped at
    100 MiB.  v7x (64 MiB physical) -> 48 MiB; v5e/v6e (128 MiB physical) -> 96 MiB."""
    try:
        cap = int(pltpu.get_tpu_info().vmem_capacity_bytes)
    except Exception:
        cap = 64 * 1024 * 1024            # conservative fallback (= v7x physical VMEM)
    return int(min((cap * 3) // 4, 100 * 1024 * 1024))


# --------------------------------------------------------------------------------------
# Fused Conv2d(3x3, pad=1, stride 1|2) + bias + LeakyReLU(0.2) kernel
# --------------------------------------------------------------------------------------
def _make_conv_kernel(stride, cin, cout, ho, wo, wo_pad):
    def kernel(x_ref, w_ref, b_ref, o_ref):
        # x_ref : stride 1 -> (1, H+2, Wp, cin)                  bf16 padded NHWC image
        #         stride 2 -> (1, (H+2)//2, 2, Wp//2, 2*cin)     bf16 row/col pair split
        # w_ref : (9, cin, cout) bf16, tap-major (t = dy*3 + dx)
        # b_ref : (1, cout) f32
        # o_ref : (1, ho, wo, cout) bf16
        acc = jnp.zeros((ho * wo_pad, cout), jnp.float32)
        for dy in range(3):
            for dx in range(3):
                t = dy * 3 + dx
                if stride == 1:
                    win = x_ref[0, dy:dy + ho, dx:dx + wo_pad, :]
                else:
                    qy, ry = divmod(dy, 2)   # padded row 2*oy+dy == 2*(oy+qy) + ry
                    qx, rx = divmod(dx, 2)   # padded col 2*ox+dx == 2*(ox+qx) + rx
                    win = x_ref[0, qy:qy + ho, ry, qx:qx + wo_pad,
                                rx * cin:(rx + 1) * cin]
                # (ho, wo_pad, cin) -> (ho*wo_pad, cin): wo_pad % 8 == 0 keeps this a
                # sublane-aligned (layout-preserving) collapse of leading dims.
                acc = acc + jnp.dot(win.reshape(ho * wo_pad, cin), w_ref[t],
                                    preferred_element_type=jnp.float32)
        acc = acc + b_ref[...]                          # (1, cout) broadcast
        y = jnp.where(acc >= 0, acc, 0.2 * acc)         # LeakyReLU(0.2)
        y = y.reshape(ho, wo_pad, cout)[:, :wo, :]      # drop padded output columns
        o_ref[0] = y.astype(o_ref.dtype)
    return kernel


def conv3x3_lrelu(x, p, vmem_limit):
    """x: (N, H, W, cin) bf16 NHWC. Returns (N, ho, wo, cout) bf16 NHWC."""
    N, H, W, C = x.shape
    stride, cin, cout = p["stride"], p["cin"], p["cout"]
    assert C == cin
    if stride == 1:
        ho, wo = H, W
    else:
        assert H % 2 == 0 and W % 2 == 0
        ho, wo = H // 2, W // 2
    wo_pad = round_up(wo, 8)   # keep in-kernel reshapes sublane-aligned; junk cols sliced

    if stride == 1:
        wp = wo_pad + 2
        x_in = jnp.pad(x, ((0, 0), (1, 1), (1, wp - W - 1), (0, 0)))
        in_block = (1, H + 2, wp, cin)
    else:
        wp = 2 * wo_pad + 2
        xp = jnp.pad(x, ((0, 0), (1, 1), (1, wp - W - 1), (0, 0)))
        # FREE row-major reshape (no data movement): rows/cols split into (pair, parity)
        # so every stride-2 tap becomes a contiguous slice inside the kernel.
        x_in = xp.reshape(N, (H + 2) // 2, 2, wp // 2, 2 * cin)
        in_block = (1, (H + 2) // 2, 2, wp // 2, 2 * cin)

    nd_in = len(in_block)
    kernel = _make_conv_kernel(stride, cin, cout, ho, wo, wo_pad)
    cost = pl.CostEstimate(
        flops=2 * N * ho * wo * 9 * cin * cout,
        transcendentals=0,
        bytes_accessed=int(x_in.size * 2 + 9 * cin * cout * 2 + cout * 4
                           + N * ho * wo * cout * 2),
    )
    # TODO(synk): for large images / small batch, also grid over output-row tiles (halo
    # via manual DMA) so each TC keeps >=2 steps and per-step blocks stay ~1-2 MiB.
    # TODO(synk): add pipeline_mode=pl.Buffered(1) on the resident weight/bias specs once
    # validated on the target jax build (avoids double-buffering constant blocks).
    return pl.pallas_call(
        kernel,
        out_shape=jax.ShapeDtypeStruct((N, ho, wo, cout), jnp.bfloat16),
        grid_spec=pltpu.PrefetchScalarGridSpec(
            num_scalar_prefetch=0,
            grid=(N,),
            in_specs=[
                pl.BlockSpec(in_block, lambda n: (n,) + (0,) * (nd_in - 1)),   # image
                pl.BlockSpec((9, cin, cout), lambda n: (0, 0, 0)),             # weights
                pl.BlockSpec((1, cout), lambda n: (0, 0)),                     # bias
            ],
            out_specs=pl.BlockSpec((1, ho, wo, cout), lambda n: (n, 0, 0, 0)),
        ),
        compiler_params=pltpu.CompilerParams(
            dimension_semantics=("parallel",),      # batch steps shard across TCs on v7x
            vmem_limit_bytes=vmem_limit,
        ),
        cost_estimate=cost,
    )(x_in, p["w9"], p["b_row"])


# --------------------------------------------------------------------------------------
# MinibatchStdDev + Flatten + Linear (fused, VPU row-reduce instead of padded MXU matvec)
# --------------------------------------------------------------------------------------
def stddev_fc_kernel(x_ref, w1_ref, s_ref, o_ref):
    # x_ref : (B, D) bf16 activations flattened in NHWC order
    # w1_ref: (1, D) f32 FC weights (pre-permuted NCHW->NHWC flatten order)
    # s_ref : (2,) f32 SMEM: [sum of FC weights on the std feature map, fc bias]
    # o_ref : (B, 1) f32
    x = x_ref[...].astype(jnp.float32)
    B = x.shape[0]
    mean = jnp.mean(x, axis=0, keepdims=True)
    # NOTE: unbiased std (ddof=1), like torch.std; B=1 yields inf/NaN exactly like torch.
    var = jnp.sum((x - mean) ** 2, axis=0, keepdims=True) / (B - 1)
    std = jnp.sqrt(var) + 1e-8          # epsilon placement matches the module (std + eps)
    mean_std = jnp.mean(std)
    y = jnp.sum(x * w1_ref[...], axis=1, keepdims=True)      # (B, 1), VPU/XLU reduce
    o_ref[...] = y + (mean_std * s_ref[0] + s_ref[1])


def stddev_fc(x_flat, w1_row, scal, vmem_limit):
    B = x_flat.shape[0]
    return pl.pallas_call(
        stddev_fc_kernel,
        out_shape=jax.ShapeDtypeStruct((B, 1), jnp.float32),
        in_specs=[
            pl.BlockSpec(memory_space=pltpu.MemorySpace.VMEM),
            pl.BlockSpec(memory_space=pltpu.MemorySpace.VMEM),
            pl.BlockSpec(memory_space=pltpu.MemorySpace.SMEM),
        ],
        out_specs=pl.BlockSpec(memory_space=pltpu.MemorySpace.VMEM),
        compiler_params=pltpu.CompilerParams(vmem_limit_bytes=vmem_limit),
    )(x_flat, w1_row, scal)


# --------------------------------------------------------------------------------------
# Parameter construction (deterministic, spectral-normalized) and forward pass
# --------------------------------------------------------------------------------------
def spectral_normalize(w_oihw):
    # TODO(synk): PyTorch's spectral_norm does one power-iteration step per forward from a
    # persistent random u; here we use the converged top singular value instead.
    w2d = np.asarray(w_oihw).reshape(w_oihw.shape[0], -1)
    sigma = np.linalg.svd(w2d, compute_uv=False)[0]
    return np.asarray(w_oihw) / sigma


def init_params(num_channels, key, final_hw=4):
    convs = []
    in_c = 3
    for out_c in num_channels:
        for stride in (2, 1):   # block = conv(s=2) + lrelu + conv(s=1) + lrelu
            key, k1, k2 = jax.random.split(key, 3)
            w = jax.random.normal(k1, (out_c, in_c, 3, 3), jnp.float32) / np.sqrt(in_c * 9)
            w = jnp.asarray(spectral_normalize(w), jnp.float32)
            b = jax.random.normal(k2, (out_c,), jnp.float32) * 0.05
            # (O, I, ky, kx) -> (9, I, O), tap-major t = ky*3 + kx
            w9 = jnp.transpose(w, (2, 3, 1, 0)).reshape(9, in_c, out_c).astype(jnp.bfloat16)
            b_row = b.reshape(1, out_c).astype(jnp.float32)
            convs.append({
                "w_oihw": w, "b": b,             # reference copies (f32)
                "w9": w9, "b_row": b_row,        # kernel copies
                "stride": stride, "cin": in_c, "cout": out_c,
            })
            in_c = out_c

    key, k1, k2 = jax.random.split(key, 3)
    C = num_channels[-1]
    d_full = (C + 1) * final_hw * final_hw
    fc_w = jax.random.normal(k1, (1, d_full), jnp.float32) / np.sqrt(d_full)
    fc_b = jax.random.normal(k2, (1,), jnp.float32) * 0.05

    # Pre-permute FC weights (NCHW-flatten order -> NHWC-flatten order).  Weights hitting
    # the appended (constant) minibatch-std feature map collapse to a single scalar sum.
    d_real = C * final_hw * final_hw
    w1_chw = fc_w[0, :d_real].reshape(C, final_hw, final_hw)
    w1_row = jnp.transpose(w1_chw, (1, 2, 0)).reshape(1, d_real).astype(jnp.float32)
    w2_sum = jnp.sum(fc_w[0, d_real:])
    scal = jnp.stack([w2_sum, fc_b[0]]).astype(jnp.float32)   # [w2_sum, bias]

    fc = {"w1_row": w1_row, "scal": scal, "fc_w": fc_w, "fc_b": fc_b}
    return convs, fc


def discriminator_forward(x_nchw, convs, fc, vmem_limit):
    x = jnp.transpose(x_nchw, (0, 2, 3, 1)).astype(jnp.bfloat16)   # NCHW -> NHWC once
    for p in convs:
        x = conv3x3_lrelu(x, p, vmem_limit)      # bf16 NHWC activations throughout
    B = x.shape[0]
    x_flat = x.reshape(B, -1)                    # NHWC flatten (FC weights pre-permuted)
    assert x_flat.shape[1] == fc["w1_row"].shape[1]
    return stddev_fc(x_flat, fc["w1_row"], fc["scal"], vmem_limit)


# Pure-JAX reference (same math, bf16 conv inputs with f32 accumulation, via lax.conv).
def ref_forward(x_nchw, convs, fc_w, fc_b):
    x = x_nchw.astype(jnp.float32)
    for p in convs:
        s = p["stride"]
        x = lax.conv_general_dilated(
            x.astype(jnp.bfloat16), p["w_oihw"].astype(jnp.bfloat16),
            (s, s), ((1, 1), (1, 1)),
            dimension_numbers=("NCHW", "OIHW", "NCHW"),
            preferred_element_type=jnp.float32)
        x = x + p["b"].reshape(1, -1, 1, 1)
        x = jnp.where(x >= 0, x, 0.2 * x)
    std = jnp.std(x, axis=0, ddof=1, keepdims=True) + 1e-8
    mean_std = jnp.mean(std)
    B, C, H, W = x.shape
    std_feat = jnp.full((B, 1, H, W), mean_std, x.dtype)
    flat = jnp.concatenate([x, std_feat], axis=1).reshape(B, -1)
    return flat @ fc_w.T + fc_b


if __name__ == "__main__":
    # Small config consistent with the module: num_channels=[8,16] (default is
    # [16,32,64,128,256,256]); input spatial = 4 * 2**len(num_channels) so the final
    # feature map is 4x4, as the final_fc of the module requires.
    num_channels = [8, 16]
    key = jax.random.PRNGKey(0)
    key, kx = jax.random.split(key)
    Hin = Win = 4 * (2 ** len(num_channels))  # 16
    x = jax.random.normal(kx, (2, 3, Hin, Win), jnp.float32)

    convs, fc = init_params(num_channels, key)
    vmem_limit = pick_vmem_limit()

    fwd = jax.jit(lambda xx: discriminator_forward(xx, convs, fc, vmem_limit))
    out = jax.block_until_ready(fwd(x))
    assert out.shape == (2, 1)

    ref = ref_forward(x, convs, fc["fc_w"], fc["fc_b"])
    np.testing.assert_allclose(np.asarray(out), np.asarray(ref), rtol=1e-2, atol=1e-2)

    print("KERNEL_OK")
</pallas_src>

<mosaic_0001>
module attributes {stable_mosaic.version = 11 : i64} {
  func.func @kernel(%arg0: i32, %arg1: memref<1x9x2x9x6xbf16, #tpu.memory_space<vmem>>, %arg2: memref<9x3x8xbf16, #tpu.memory_space<vmem>>, %arg3: memref<1x8xf32, #tpu.memory_space<vmem>>, %arg4: memref<1x8x8x8xbf16, #tpu.memory_space<vmem>>) attributes {dimension_semantics = [#tpu.dimension_semantics<parallel>], iteration_bounds = array<i64: 2>, scalar_prefetch = 0 : i64, scratch_operands = 0 : i64, tpu.core_type = #tpu.core_type<tc>, window_params = [{transform_indices = @transform_0, window_bounds = array<i64: 1, 9, 2, 9, 6>}, {pipeline_mode = #tpu.pipeline_mode<synchronous>, transform_indices = @transform_1, window_bounds = array<i64: 9, 3, 8>}, {pipeline_mode = #tpu.pipeline_mode<synchronous>, transform_indices = @transform_2, window_bounds = array<i64: 1, 8>}, {transform_indices = @transform_3, window_bounds = array<i64: 1, 8, 8, 8>}]} {
    %cst = arith.constant 0.000000e+00 : f32
    %0 = vector.broadcast %cst : f32 to vector<64x8xf32>
    %c0 = arith.constant 0 : index
    %c0_0 = arith.constant 0 : index
    %c0_1 = arith.constant 0 : index
    %c0_2 = arith.constant 0 : index
    %c0_3 = arith.constant 0 : index
    %1 = vector.load %arg1[%c0, %c0_0, %c0_1, %c0_2, %c0_3] : memref<1x9x2x9x6xbf16, #tpu.memory_space<vmem>>, vector<1x8x1x8x3xbf16>
    %2 = vector.shape_cast %1 : vector<1x8x1x8x3xbf16> to vector<8x8x3xbf16>
    %3 = vector.shape_cast %2 : vector<8x8x3xbf16> to vector<64x3xbf16>
    %c0_4 = arith.constant 0 : index
    %c0_5 = arith.constant 0 : index
    %c0_6 = arith.constant 0 : index
    %4 = vector.load %arg2[%c0_4, %c0_5, %c0_6] : memref<9x3x8xbf16, #tpu.memory_space<vmem>>, vector<1x3x8xbf16>
    %5 = vector.shape_cast %4 : vector<1x3x8xbf16> to vector<3x8xbf16>
    %cst_7 = arith.constant dense<0.000000e+00> : vector<64x8xf32>
    %6 = tpu.matmul %3, %5, %cst_7 {dimension_numbers = #tpu.dot_dimension_numbers<[1], [0], [0], [1], [0, 0, 1, 1], [], []>} : vector<64x3xbf16>, vector<3x8xbf16>, vector<64x8xf32> -> vector<64x8xf32>
    %7 = arith.addf %0, %6 : vector<64x8xf32>
    %c0_8 = arith.constant 0 : index
    %c0_9 = arith.constant 0 : index
    %c0_10 = arith.constant 0 : index
    %c0_11 = arith.constant 0 : index
    %c3 = arith.constant 3 : index
    %8 = vector.load %arg1[%c0_8, %c0_9, %c0_10, %c0_11, %c3] : memref<1x9x2x9x6xbf16, #tpu.memory_space<vmem>>, vector<1x8x1x8x3xbf16>
    %9 = vector.shape_cast %8 : vector<1x8x1x8x3xbf16> to vector<8x8x3xbf16>
    %10 = vector.shape_cast %9 : vector<8x8x3xbf16> to vector<64x3xbf16>
    %c1 = arith.constant 1 : index
    %c0_12 = arith.constant 0 : index
    %c0_13 = arith.constant 0 : index
    %11 = vector.load %arg2[%c1, %c0_12, %c0_13] : memref<9x3x8xbf16, #tpu.memory_space<vmem>>, vector<1x3x8xbf16>
    %12 = vector.shape_cast %11 : vector<1x3x8xbf16> to vector<3x8xbf16>
    %cst_14 = arith.constant dense<0.000000e+00> : vector<64x8xf32>
    %13 = tpu.matmul %10, %12, %cst_14 {dimension_numbers = #tpu.dot_dimension_numbers<[1], [0], [0], [1], [0, 0, 1, 1], [], []>} : vector<64x3xbf16>, vector<3x8xbf16>, vector<64x8xf32> -> vector<64x8xf32>
    %14 = arith.addf %7, %13 : vector<64x8xf32>
    %c0_15 = arith.constant 0 : index
    %c0_16 = arith.constant 0 : index
    %c0_17 = arith.constant 0 : index
    %c1_18 = arith.constant 1 : index
    %c0_19 = arith.constant 0 : index
    %15 = vector.load %arg1[%c0_15, %c0_16, %c0_17, %c1_18, %c0_19] : memref<1x9x2x9x6xbf16, #tpu.memory_space<vmem>>, vector<1x8x1x8x3xbf16>
    %16 = vector.shape_cast %15 : vector<1x8x1x8x3xbf16> to vector<8x8x3xbf16>
    %17 = vector.shape_cast %16 : vector<8x8x3xbf16> to vector<64x3xbf16>
    %c2 = arith.constant 2 : index
    %c0_20 = arith.constant 0 : index
    %c0_21 = arith.constant 0 : index
    %18 = vector.load %arg2[%c2, %c0_20, %c0_21] : memref<9x3x8xbf16, #tpu.memory_space<vmem>>, vector<1x3x8xbf16>
    %19 = vector.shape_cast %18 : vector<1x3x8xbf16> to vector<3x8xbf16>
    %cst_22 = arith.constant dense<0.000000e+00> : vector<64x8xf32>
    %20 = tpu.matmul %17, %19, %cst_22 {dimension_numbers = #tpu.dot_dimension_numbers<[1], [0], [0], [1], [0, 0, 1, 1], [], []>} : vector<64x3xbf16>, vector<3x8xbf16>, vector<64x8xf32> -> vector<64x8xf32>
    %21 = arith.addf %14, %20 : vector<64x8xf32>
    %c0_23 = arith.constant 0 : index
    %c0_24 = arith.constant 0 : index
    %c1_25 = arith.constant 1 : index
    %c0_26 = arith.constant 0 : index
    %c0_27 = arith.constant 0 : index
    %22 = vector.load %arg1[%c0_23, %c0_24, %c1_25, %c0_26, %c0_27] : memref<1x9x2x9x6xbf16, #tpu.memory_space<vmem>>, vector<1x8x1x8x3xbf16>
    %23 = vector.shape_cast %22 : vector<1x8x1x8x3xbf16> to vector<8x8x3xbf16>
    %24 = vector.shape_cast %23 : vector<8x8x3xbf16> to vector<64x3xbf16>
    %c3_28 = arith.constant 3 : index
    %c0_29 = arith.constant 0 : index
    %c0_30 = arith.constant 0 : index
    %25 = vector.load %arg2[%c3_28, %c0_29, %c0_30] : memref<9x3x8xbf16, #tpu.memory_space<vmem>>, vector<1x3x8xbf16>
    %26 = vector.shape_cast %25 : vector<1x3x8xbf16> to vector<3x8xbf16>
    %cst_31 = arith.constant dense<0.000000e+00> : vector<64x8xf32>
    %27 = tpu.matmul %24, %26, %cst_31 {dimension_numbers = #tpu.dot_dimension_numbers<[1], [0], [0], [1], [0, 0, 1, 1], [], []>} : vector<64x3xbf16>, vector<3x8xbf16>, vector<64x8xf32> -> vector<64x8xf32>
    %28 = arith.addf %21, %27 : vector<64x8xf32>
    %c0_32 = arith.constant 0 : index
    %c0_33 = arith.constant 0 : index
    %c1_34 = arith.constant 1 : index
    %c0_35 = arith.constant 0 : index
    %c3_36 = arith.constant 3 : index
    %29 = vector.load %arg1[%c0_32, %c0_33, %c1_34, %c0_35, %c3_36] : memref<1x9x2x9x6xbf16, #tpu.memory_space<vmem>>, vector<1x8x1x8x3xbf16>
    %30 = vector.shape_cast %29 : vector<1x8x1x8x3xbf16> to vector<8x8x3xbf16>
    %31 = vector.shape_cast %30 : vector<8x8x3xbf16> to vector<64x3xbf16>
    %c4 = arith.constant 4 : index
    %c0_37 = arith.constant 0 : index
    %c0_38 = arith.constant 0 : index
    %32 = vector.load %arg2[%c4, %c0_37, %c0_38] : memref<9x3x8xbf16, #tpu.memory_space<vmem>>, vector<1x3x8xbf16>
    %33 = vector.shape_cast %32 : vector<1x3x8xbf16> to vector<3x8xbf16>
    %cst_39 = arith.constant dense<0.000000e+00> : vector<64x8xf32>
    %34 = tpu.matmul %31, %33, %cst_39 {dimension_numbers = #tpu.dot_dimension_numbers<[1], [0], [0], [1], [0, 0, 1, 1], [], []>} : vector<64x3xbf16>, vector<3x8xbf16>, vector<64x8xf32> -> vector<64x8xf32>
    %35 = arith.addf %28, %34 : vector<64x8xf32>
    %c0_40 = arith.constant 0 : index
    %c0_41 = arith.constant 0 : index
    %c1_42 = arith.constant 1 : index
    %c1_43 = arith.constant 1 : index
    %c0_44 = arith.constant 0 : index
    %36 = vector.load %arg1[%c0_40, %c0_41, %c1_42, %c1_43, %c0_44] : memref<1x9x2x9x6xbf16, #tpu.memory_space<vmem>>, vector<1x8x1x8x3xbf16>
    %37 = vector.shape_cast %36 : vector<1x8x1x8x3xbf16> to vector<8x8x3xbf16>
    %38 = vector.shape_cast %37 : vector<8x8x3xbf16> to vector<64x3xbf16>
    %c5 = arith.constant 5 : index
    %c0_45 = arith.constant 0 : index
    %c0_46 = arith.constant 0 : index
    %39 = vector.load %arg2[%c5, %c0_45, %c0_46] : memref<9x3x8xbf16, #tpu.memory_space<vmem>>, vector<1x3x8xbf16>
    %40 = vector.shape_cast %39 : vector<1x3x8xbf16> to vector<3x8xbf16>
    %cst_47 = arith.constant dense<0.000000e+00> : vector<64x8xf32>
    %41 = tpu.matmul %38, %40, %cst_47 {dimension_numbers = #tpu.dot_dimension_numbers<[1], [0], [0], [1], [0, 0, 1, 1], [], []>} : vector<64x3xbf16>, vector<3x8xbf16>, vector<64x8xf32> -> vector<64x8xf32>
    %42 = arith.addf %35, %41 : vector<64x8xf32>
    %c0_48 = arith.constant 0 : index
    %c1_49 = arith.constant 1 : index
    %c0_50 = arith.constant 0 : index
    %c0_51 = arith.constant 0 : index
    %c0_52 = arith.constant 0 : index
    %43 = vector.load %arg1[%c0_48, %c1_49, %c0_50, %c0_51, %c0_52] : memref<1x9x2x9x6xbf16, #tpu.memory_space<vmem>>, vector<1x8x1x8x3xbf16>
    %44 = vector.shape_cast %43 : vector<1x8x1x8x3xbf16> to vector<8x8x3xbf16>
    %45 = vector.shape_cast %44 : vector<8x8x3xbf16> to vector<64x3xbf16>
    %c6 = arith.constant 6 : index
    %c0_53 = arith.constant 0 : index
    %c0_54 = arith.constant 0 : index
    %46 = vector.load %arg2[%c6, %c0_53, %c0_54] : memref<9x3x8xbf16, #tpu.memory_space<vmem>>, vector<1x3x8xbf16>
    %47 = vector.shape_cast %46 : vector<1x3x8xbf16> to vector<3x8xbf16>
    %cst_55 = arith.constant dense<0.000000e+00> : vector<64x8xf32>
    %48 = tpu.matmul %45, %47, %cst_55 {dimension_numbers = #tpu.dot_dimension_numbers<[1], [0], [0], [1], [0, 0, 1, 1], [], []>} : vector<64x3xbf16>, vector<3x8xbf16>, vector<64x8xf32> -> vector<64x8xf32>
    %49 = arith.addf %42, %48 : vector<64x8xf32>
    %c0_56 = arith.constant 0 : index
    %c1_57 = arith.constant 1 : index
    %c0_58 = arith.constant 0 : index
    %c0_59 = arith.constant 0 : index
    %c3_60 = arith.constant 3 : index
    %50 = vector.load %arg1[%c0_56, %c1_57, %c0_58, %c0_59, %c3_60] : memref<1x9x2x9x6xbf16, #tpu.memory_space<vmem>>, vector<1x8x1x8x3xbf16>
    %51 = vector.shape_cast %50 : vector<1x8x1x8x3xbf16> to vector<8x8x3xbf16>
    %52 = vector.shape_cast %51 : vector<8x8x3xbf16> to vector<64x3xbf16>
    %c7 = arith.constant 7 : index
    %c0_61 = arith.constant 0 : index
    %c0_62 = arith.constant 0 : index
    %53 = vector.load %arg2[%c7, %c0_61, %c0_62] : memref<9x3x8xbf16, #tpu.memory_space<vmem>>, vector<1x3x8xbf16>
    %54 = vector.shape_cast %53 : vector<1x3x8xbf16> to vector<3x8xbf16>
    %cst_63 = arith.constant dense<0.000000e+00> : vector<64x8xf32>
    %55 = tpu.matmul %52, %54, %cst_63 {dimension_numbers = #tpu.dot_dimension_numbers<[1], [0], [0], [1], [0, 0, 1, 1], [], []>} : vector<64x3xbf16>, vector<3x8xbf16>, vector<64x8xf32> -> vector<64x8xf32>
    %56 = arith.addf %49, %55 : vector<64x8xf32>
    %c0_64 = arith.constant 0 : index
    %c1_65 = arith.constant 1 : index
    %c0_66 = arith.constant 0 : index
    %c1_67 = arith.constant 1 : index
    %c0_68 = arith.constant 0 : index
    %57 = vector.load %arg1[%c0_64, %c1_65, %c0_66, %c1_67, %c0_68] : memref<1x9x2x9x6xbf16, #tpu.memory_space<vmem>>, vector<1x8x1x8x3xbf16>
    %58 = vector.shape_cast %57 : vector<1x8x1x8x3xbf16> to vector<8x8x3xbf16>
    %59 = vector.shape_cast %58 : vector<8x8x3xbf16> to vector<64x3xbf16>
    %c8 = arith.constant 8 : index
    %c0_69 = arith.constant 0 : index
    %c0_70 = arith.constant 0 : index
    %60 = vector.load %arg2[%c8, %c0_69, %c0_70] : memref<9x3x8xbf16, #tpu.memory_space<vmem>>, vector<1x3x8xbf16>
    %61 = vector.shape_cast %60 : vector<1x3x8xbf16> to vector<3x8xbf16>
    %cst_71 = arith.constant dense<0.000000e+00> : vector<64x8xf32>
    %62 = tpu.matmul %59, %61, %cst_71 {dimension_numbers = #tpu.dot_dimension_numbers<[1], [0], [0], [1], [0, 0, 1, 1], [], []>} : vector<64x3xbf16>, vector<3x8xbf16>, vector<64x8xf32> -> vector<64x8xf32>
    %63 = arith.addf %56, %62 : vector<64x8xf32>
    %c0_72 = arith.constant 0 : index
    %c0_73 = arith.constant 0 : index
    %64 = vector.load %arg3[%c0_72, %c0_73] : memref<1x8xf32, #tpu.memory_space<vmem>>, vector<1x8xf32>
    %65 = vector.broadcast %64 : vector<1x8xf32> to vector<64x8xf32>
    %66 = arith.addf %63, %65 : vector<64x8xf32>
    %cst_74 = arith.constant 0.000000e+00 : f32
    %67 = vector.broadcast %cst_74 : f32 to vector<64x8xf32>
    %68 = arith.cmpf oge, %66, %67 : vector<64x8xf32>
    %cst_75 = arith.constant 2.000000e-01 : f32
    %69 = vector.broadcast %cst_75 : f32 to vector<64x8xf32>
    %70 = arith.mulf %69, %66 : vector<64x8xf32>
    %71 = arith.select %68, %66, %70 : vector<64x8xi1>, vector<64x8xf32>
    %72 = vector.shape_cast %71 : vector<64x8xf32> to vector<8x8x8xf32>
    %73 = arith.truncf %72 : vector<8x8x8xf32> to vector<8x8x8xbf16>
    %c0_76 = arith.constant 0 : index
    %c0_77 = arith.constant 0 : index
    %c0_78 = arith.constant 0 : index
    %c0_79 = arith.constant 0 : index
    %74 = vector.load %arg4[%c0_76, %c0_77, %c0_78, %c0_79] : memref<1x8x8x8xbf16, #tpu.memory_space<vmem>>, vector<1x8x8x8xbf16>
    %75 = vector.shape_cast %74 : vector<1x8x8x8xbf16> to vector<8x8x8xbf16>
    %76 = vector.shape_cast %73 : vector<8x8x8xbf16> to vector<1x8x8x8xbf16>
    tpu.vector_store %arg4[%c0_76, %c0_77, %c0_78, %c0_79], %76 {strides = array<i32>} : memref<1x8x8x8xbf16, #tpu.memory_space<vmem>>, vector<1x8x8x8xbf16>,
    return
  }
  func.func @transform_0(%arg0: i32) -> (i32, i32, i32, i32, i32) {
    %c0_i32 = arith.constant 0 : i32
    %c0_i32_0 = arith.constant 0 : i32
    %c0_i32_1 = arith.constant 0 : i32
    %c0_i32_2 = arith.constant 0 : i32
    %c0_i32_3 = arith.constant 0 : i32
    return %arg0, %c0_i32, %c0_i32_0, %c0_i32_1, %c0_i32_2 : i32, i32, i32, i32, i32
  }
  func.func @transform_1(%arg0: i32) -> (i32, i32, i32) {
    %c0_i32 = arith.constant 0 : i32
    %c0_i32_0 = arith.constant 0 : i32
    %c0_i32_1 = arith.constant 0 : i32
    %c0_i32_2 = arith.constant 0 : i32
    return %c0_i32, %c0_i32_0, %c0_i32_1 : i32, i32, i32
  }
  func.func @transform_2(%arg0: i32) -> (i32, i32) {
    %c0_i32 = arith.constant 0 : i32
    %c0_i32_0 = arith.constant 0 : i32
    %c0_i32_1 = arith.constant 0 : i32
    return %c0_i32, %c0_i32_0 : i32, i32
  }
  func.func @transform_3(%arg0: i32) -> (i32, i32, i32, i32) {
    %c0_i32 = arith.constant 0 : i32
    %c0_i32_0 = arith.constant 0 : i32
    %c0_i32_1 = arith.constant 0 : i32
    %c0_i32_2 = arith.constant 0 : i32
    return %arg0, %c0_i32, %c0_i32_0, %c0_i32_1 : i32, i32, i32, i32
  }
}

module attributes {stable_mosaic.version = 11 : i64} {
  func.func @kernel(%arg0: i32, %arg1: memref<1x10x10x8xbf16, #tpu.memory_space<vmem>>, %arg2: memref<9x8x8xbf16, #tpu.memory_space<vmem>>, %arg3: memref<1x8xf32, #tpu.memory_space<vmem>>, %arg4: memref<1x8x8x8xbf16, #tpu.memory_space<vmem>>) attributes {dimension_semantics = [#tpu.dimension_semantics<parallel>], iteration_bounds = array<i64: 2>, scalar_prefetch = 0 : i64, scratch_operands = 0 : i64, tpu.core_type = #tpu.core_type<tc>, window_params = [{transform_indices = @transform_0, window_bounds = array<i64: 1, 10, 10, 8>}, {pipeline_mode = #tpu.pipeline_mode<synchronous>, transform_indices = @transform_1, window_bounds = array<i64: 9, 8, 8>}, {pipeline_mode = #tpu.pipeline_mode<synchronous>, transform_indices = @transform_2, window_bounds = array<i64: 1, 8>}, {transform_indices = @transform_3, window_bounds = array<i64: 1, 8, 8, 8>}]} {
    %cst = arith.constant 0.000000e+00 : f32
    %0 = vector.broadcast %cst : f32 to vector<64x8xf32>
    %c0 = arith.constant 0 : index
    %c0_0 = arith.constant 0 : index
    %c0_1 = arith.constant 0 : index
    %c0_2 = arith.constant 0 : index
    %1 = vector.load %arg1[%c0, %c0_0, %c0_1, %c0_2] : memref<1x10x10x8xbf16, #tpu.memory_space<vmem>>, vector<1x8x8x8xbf16>
    %2 = vector.shape_cast %1 : vector<1x8x8x8xbf16> to vector<8x8x8xbf16>
    %3 = vector.shape_cast %2 : vector<8x8x8xbf16> to vector<64x8xbf16>
    %c0_3 = arith.constant 0 : index
    %c0_4 = arith.constant 0 : index
    %c0_5 = arith.constant 0 : index
    %4 = vector.load %arg2[%c0_3, %c0_4, %c0_5] : memref<9x8x8xbf16, #tpu.memory_space<vmem>>, vector<1x8x8xbf16>
    %5 = vector.shape_cast %4 : vector<1x8x8xbf16> to vector<8x8xbf16>
    %cst_6 = arith.constant dense<0.000000e+00> : vector<64x8xf32>
    %6 = tpu.matmul %3, %5, %cst_6 {dimension_numbers = #tpu.dot_dimension_numbers<[1], [0], [0], [1], [0, 0, 1, 1], [], []>} : vector<64x8xbf16>, vector<8x8xbf16>, vector<64x8xf32> -> vector<64x8xf32>
    %7 = arith.addf %0, %6 : vector<64x8xf32>
    %c0_7 = arith.constant 0 : index
    %c0_8 = arith.constant 0 : index
    %c1 = arith.constant 1 : index
    %c0_9 = arith.constant 0 : index
    %8 = vector.load %arg1[%c0_7, %c0_8, %c1, %c0_9] : memref<1x10x10x8xbf16, #tpu.memory_space<vmem>>, vector<1x8x8x8xbf16>
    %9 = vector.shape_cast %8 : vector<1x8x8x8xbf16> to vector<8x8x8xbf16>
    %10 = vector.shape_cast %9 : vector<8x8x8xbf16> to vector<64x8xbf16>
    %c1_10 = arith.constant 1 : index
    %c0_11 = arith.constant 0 : index
    %c0_12 = arith.constant 0 : index
    %11 = vector.load %arg2[%c1_10, %c0_11, %c0_12] : memref<9x8x8xbf16, #tpu.memory_space<vmem>>, vector<1x8x8xbf16>
    %12 = vector.shape_cast %11 : vector<1x8x8xbf16> to vector<8x8xbf16>
    %cst_13 = arith.constant dense<0.000000e+00> : vector<64x8xf32>
    %13 = tpu.matmul %10, %12, %cst_13 {dimension_numbers = #tpu.dot_dimension_numbers<[1], [0], [0], [1], [0, 0, 1, 1], [], []>} : vector<64x8xbf16>, vector<8x8xbf16>, vector<64x8xf32> -> vector<64x8xf32>
    %14 = arith.addf %7, %13 : vector<64x8xf32>
    %c0_14 = arith.constant 0 : index
    %c0_15 = arith.constant 0 : index
    %c2 = arith.constant 2 : index
    %c0_16 = arith.constant 0 : index
    %15 = vector.load %arg1[%c0_14, %c0_15, %c2, %c0_16] : memref<1x10x10x8xbf16, #tpu.memory_space<vmem>>, vector<1x8x8x8xbf16>
    %16 = vector.shape_cast %15 : vector<1x8x8x8xbf16> to vector<8x8x8xbf16>
    %17 = vector.shape_cast %16 : vector<8x8x8xbf16> to vector<64x8xbf16>
    %c2_17 = arith.constant 2 : index
    %c0_18 = arith.constant 0 : index
    %c0_19 = arith.constant 0 : index
    %18 = vector.load %arg2[%c2_17, %c0_18, %c0_19] : memref<9x8x8xbf16, #tpu.memory_space<vmem>>, vector<1x8x8xbf16>
    %19 = vector.shape_cast %18 : vector<1x8x8xbf16> to vector<8x8xbf16>
    %cst_20 = arith.constant dense<0.000000e+00> : vector<64x8xf32>
    %20 = tpu.matmul %17, %19, %cst_20 {dimension_numbers = #tpu.dot_dimension_numbers<[1], [0], [0], [1], [0, 0, 1, 1], [], []>} : vector<64x8xbf16>, vector<8x8xbf16>, vector<64x8xf32> -> vector<64x8xf32>
    %21 = arith.addf %14, %20 : vector<64x8xf32>
    %c0_21 = arith.constant 0 : index
    %c1_22 = arith.constant 1 : index
    %c0_23 = arith.constant 0 : index
    %c0_24 = arith.constant 0 : index
    %22 = vector.load %arg1[%c0_21, %c1_22, %c0_23, %c0_24] : memref<1x10x10x8xbf16, #tpu.memory_space<vmem>>, vector<1x8x8x8xbf16>
    %23 = vector.shape_cast %22 : vector<1x8x8x8xbf16> to vector<8x8x8xbf16>
    %24 = vector.shape_cast %23 : vector<8x8x8xbf16> to vector<64x8xbf16>
    %c3 = arith.constant 3 : index
    %c0_25 = arith.constant 0 : index
    %c0_26 = arith.constant 0 : index
    %25 = vector.load %arg2[%c3, %c0_25, %c0_26] : memref<9x8x8xbf16, #tpu.memory_space<vmem>>, vector<1x8x8xbf16>
    %26 = vector.shape_cast %25 : vector<1x8x8xbf16> to vector<8x8xbf16>
    %cst_27 = arith.constant dense<0.000000e+00> : vector<64x8xf32>
    %27 = tpu.matmul %24, %26, %cst_27 {dimension_numbers = #tpu.dot_dimension_numbers<[1], [0], [0], [1], [0, 0, 1, 1], [], []>} : vector<64x8xbf16>, vector<8x8xbf16>, vector<64x8xf32> -> vector<64x8xf32>
    %28 = arith.addf %21, %27 : vector<64x8xf32>
    %c0_28 = arith.constant 0 : index
    %c1_29 = arith.constant 1 : index
    %c1_30 = arith.constant 1 : index
    %c0_31 = arith.constant 0 : index
    %29 = vector.load %arg1[%c0_28, %c1_29, %c1_30, %c0_31] : memref<1x10x10x8xbf16, #tpu.memory_space<vmem>>, vector<1x8x8x8xbf16>
    %30 = vector.shape_cast %29 : vector<1x8x8x8xbf16> to vector<8x8x8xbf16>
    %31 = vector.shape_cast %30 : vector<8x8x8xbf16> to vector<64x8xbf16>
    %c4 = arith.constant 4 : index
    %c0_32 = arith.constant 0 : index
    %c0_33 = arith.constant 0 : index
    %32 = vector.load %arg2[%c4, %c0_32, %c0_33] : memref<9x8x8xbf16, #tpu.memory_space<vmem>>, vector<1x8x8xbf16>
    %33 = vector.shape_cast %32 : vector<1x8x8xbf16> to vector<8x8xbf16>
    %cst_34 = arith.constant dense<0.000000e+00> : vector<64x8xf32>
    %34 = tpu.matmul %31, %33, %cst_34 {dimension_numbers = #tpu.dot_dimension_numbers<[1], [0], [0], [1], [0, 0, 1, 1], [], []>} : vector<64x8xbf16>, vector<8x8xbf16>, vector<64x8xf32> -> vector<64x8xf32>
    %35 = arith.addf %28, %34 : vector<64x8xf32>
    %c0_35 = arith.constant 0 : index
    %c1_36 = arith.constant 1 : index
    %c2_37 = arith.constant 2 : index
    %c0_38 = arith.constant 0 : index
    %36 = vector.load %arg1[%c0_35, %c1_36, %c2_37, %c0_38] : memref<1x10x10x8xbf16, #tpu.memory_space<vmem>>, vector<1x8x8x8xbf16>
    %37 = vector.shape_cast %36 : vector<1x8x8x8xbf16> to vector<8x8x8xbf16>
    %38 = vector.shape_cast %37 : vector<8x8x8xbf16> to vector<64x8xbf16>
    %c5 = arith.constant 5 : index
    %c0_39 = arith.constant 0 : index
    %c0_40 = arith.constant 0 : index
    %39 = vector.load %arg2[%c5, %c0_39, %c0_40] : memref<9x8x8xbf16, #tpu.memory_space<vmem>>, vector<1x8x8xbf16>
    %40 = vector.shape_cast %39 : vector<1x8x8xbf16> to vector<8x8xbf16>
    %cst_41 = arith.constant dense<0.000000e+00> : vector<64x8xf32>
    %41 = tpu.matmul %38, %40, %cst_41 {dimension_numbers = #tpu.dot_dimension_numbers<[1], [0], [0], [1], [0, 0, 1, 1], [], []>} : vector<64x8xbf16>, vector<8x8xbf16>, vector<64x8xf32> -> vector<64x8xf32>
    %42 = arith.addf %35, %41 : vector<64x8xf32>
    %c0_42 = arith.constant 0 : index
    %c2_43 = arith.constant 2 : index
    %c0_44 = arith.constant 0 : index
    %c0_45 = arith.constant 0 : index
    %43 = vector.load %arg1[%c0_42, %c2_43, %c0_44, %c0_45] : memref<1x10x10x8xbf16, #tpu.memory_space<vmem>>, vector<1x8x8x8xbf16>
    %44 = vector.shape_cast %43 : vector<1x8x8x8xbf16> to vector<8x8x8xbf16>
    %45 = vector.shape_cast %44 : vector<8x8x8xbf16> to vector<64x8xbf16>
    %c6 = arith.constant 6 : index
    %c0_46 = arith.constant 0 : index
    %c0_47 = arith.constant 0 : index
    %46 = vector.load %arg2[%c6, %c0_46, %c0_47] : memref<9x8x8xbf16, #tpu.memory_space<vmem>>, vector<1x8x8xbf16>
    %47 = vector.shape_cast %46 : vector<1x8x8xbf16> to vector<8x8xbf16>
    %cst_48 = arith.constant dense<0.000000e+00> : vector<64x8xf32>
    %48 = tpu.matmul %45, %47, %cst_48 {dimension_numbers = #tpu.dot_dimension_numbers<[1], [0], [0], [1], [0, 0, 1, 1], [], []>} : vector<64x8xbf16>, vector<8x8xbf16>, vector<64x8xf32> -> vector<64x8xf32>
    %49 = arith.addf %42, %48 : vector<64x8xf32>
    %c0_49 = arith.constant 0 : index
    %c2_50 = arith.constant 2 : index
    %c1_51 = arith.constant 1 : index
    %c0_52 = arith.constant 0 : index
    %50 = vector.load %arg1[%c0_49, %c2_50, %c1_51, %c0_52] : memref<1x10x10x8xbf16, #tpu.memory_space<vmem>>, vector<1x8x8x8xbf16>
    %51 = vector.shape_cast %50 : vector<1x8x8x8xbf16> to vector<8x8x8xbf16>
    %52 = vector.shape_cast %51 : vector<8x8x8xbf16> to vector<64x8xbf16>
    %c7 = arith.constant 7 : index
    %c0_53 = arith.constant 0 : index
    %c0_54 = arith.constant 0 : index
    %53 = vector.load %arg2[%c7, %c0_53, %c0_54] : memref<9x8x8xbf16, #tpu.memory_space<vmem>>, vector<1x8x8xbf16>
    %54 = vector.shape_cast %53 : vector<1x8x8xbf16> to vector<8x8xbf16>
    %cst_55 = arith.constant dense<0.000000e+00> : vector<64x8xf32>
    %55 = tpu.matmul %52, %54, %cst_55 {dimension_numbers = #tpu.dot_dimension_numbers<[1], [0], [0], [1], [0, 0, 1, 1], [], []>} : vector<64x8xbf16>, vector<8x8xbf16>, vector<64x8xf32> -> vector<64x8xf32>
    %56 = arith.addf %49, %55 : vector<64x8xf32>
    %c0_56 = arith.constant 0 : index
    %c2_57 = arith.constant 2 : index
    %c2_58 = arith.constant 2 : index
    %c0_59 = arith.constant 0 : index
    %57 = vector.load %arg1[%c0_56, %c2_57, %c2_58, %c0_59] : memref<1x10x10x8xbf16, #tpu.memory_space<vmem>>, vector<1x8x8x8xbf16>
    %58 = vector.shape_cast %57 : vector<1x8x8x8xbf16> to vector<8x8x8xbf16>
    %59 = vector.shape_cast %58 : vector<8x8x8xbf16> to vector<64x8xbf16>
    %c8 = arith.constant 8 : index
    %c0_60 = arith.constant 0 : index
    %c0_61 = arith.constant 0 : index
    %60 = vector.load %arg2[%c8, %c0_60, %c0_61] : memref<9x8x8xbf16, #tpu.memory_space<vmem>>, vector<1x8x8xbf16>
    %61 = vector.shape_cast %60 : vector<1x8x8xbf16> to vector<8x8xbf16>
    %cst_62 = arith.constant dense<0.000000e+00> : vector<64x8xf32>
    %62 = tpu.matmul %59, %61, %cst_62 {dimension_numbers = #tpu.dot_dimension_numbers<[1], [0], [0], [1], [0, 0, 1, 1], [], []>} : vector<64x8xbf16>, vector<8x8xbf16>, vector<64x8xf32> -> vector<64x8xf32>
    %63 = arith.addf %56, %62 : vector<64x8xf32>
    %c0_63 = arith.constant 0 : index
    %c0_64 = arith.constant 0 : index
    %64 = vector.load %arg3[%c0_63, %c0_64] : memref<1x8xf32, #tpu.memory_space<vmem>>, vector<1x8xf32>
    %65 = vector.broadcast %64 : vector<1x8xf32> to vector<64x8xf32>
    %66 = arith.addf %63, %65 : vector<64x8xf32>
    %cst_65 = arith.constant 0.000000e+00 : f32
    %67 = vector.broadcast %cst_65 : f32 to vector<64x8xf32>
    %68 = arith.cmpf oge, %66, %67 : vector<64x8xf32>
    %cst_66 = arith.constant 2.000000e-01 : f32
    %69 = vector.broadcast %cst_66 : f32 to vector<64x8xf32>
    %70 = arith.mulf %69, %66 : vector<64x8xf32>
    %71 = arith.select %68, %66, %70 : vector<64x8xi1>, vector<64x8xf32>
    %72 = vector.shape_cast %71 : vector<64x8xf32> to vector<8x8x8xf32>
    %73 = arith.truncf %72 : vector<8x8x8xf32> to vector<8x8x8xbf16>
    %c0_67 = arith.constant 0 : index
    %c0_68 = arith.constant 0 : index
    %c0_69 = arith.constant 0 : index
    %c0_70 = arith.constant 0 : index
    %74 = vector.load %arg4[%c0_67, %c0_68, %c0_69, %c0_70] : memref<1x8x8x8xbf16, #tpu.memory_space<vmem>>, vector<1x8x8x8xbf16>
    %75 = vector.shape_cast %74 : vector<1x8x8x8xbf16> to vector<8x8x8xbf16>
    %76 = vector.shape_cast %73 : vector<8x8x8xbf16> to vector<1x8x8x8xbf16>
    tpu.vector_store %arg4[%c0_67, %c0_68, %c0_69, %c0_70], %76 {strides = array<i32>} : memref<1x8x8x8xbf16, #tpu.memory_space<vmem>>, vector<1x8x8x8xbf16>,
    return
  }
  func.func @transform_0(%arg0: i32) -> (i32, i32, i32, i32) {
    %c0_i32 = arith.constant 0 : i32
    %c0_i32_0 = arith.constant 0 : i32
    %c0_i32_1 = arith.constant 0 : i32
    %c0_i32_2 = arith.constant 0 : i32
    return %arg0, %c0_i32, %c0_i32_0, %c0_i32_1 : i32, i32, i32, i32
  }
  func.func @transform_1(%arg0: i32) -> (i32, i32, i32) {
    %c0_i32 = arith.constant 0 : i32
    %c0_i32_0 = arith.constant 0 : i32
    %c0_i32_1 = arith.constant 0 : i32
    %c0_i32_2 = arith.constant 0 : i32
    return %c0_i32, %c0_i32_0, %c0_i32_1 : i32, i32, i32
  }
  func.func @transform_2(%arg0: i32) -> (i32, i32) {
    %c0_i32 = arith.constant 0 : i32
    %c0_i32_0 = arith.constant 0 : i32
    %c0_i32_1 = arith.constant 0 : i32
    return %c0_i32, %c0_i32_0 : i32, i32
  }
  func.func @transform_3(%arg0: i32) -> (i32, i32, i32, i32) {
    %c0_i32 = arith.constant 0 : i32
    %c0_i32_0 = arith.constant 0 : i32
    %c0_i32_1 = arith.constant 0 : i32
    %c0_i32_2 = arith.constant 0 : i32
    return %arg0, %c0_i32, %c0_i32_0, %c0_i32_1 : i32, i32, i32, i32
  }
}

module attributes {stable_mosaic.version = 11 : i64} {
  func.func @kernel(%arg0: i32, %arg1: memref<1x5x2x9x16xbf16, #tpu.memory_space<vmem>>, %arg2: memref<9x8x16xbf16, #tpu.memory_space<vmem>>, %arg3: memref<1x16xf32, #tpu.memory_space<vmem>>, %arg4: memref<1x4x4x16xbf16, #tpu.memory_space<vmem>>) attributes {dimension_semantics = [#tpu.dimension_semantics<parallel>], iteration_bounds = array<i64: 2>, scalar_prefetch = 0 : i64, scratch_operands = 0 : i64, tpu.core_type = #tpu.core_type<tc>, window_params = [{transform_indices = @transform_0, window_bounds = array<i64: 1, 5, 2, 9, 16>}, {pipeline_mode = #tpu.pipeline_mode<synchronous>, transform_indices = @transform_1, window_bounds = array<i64: 9, 8, 16>}, {pipeline_mode = #tpu.pipeline_mode<synchronous>, transform_indices = @transform_2, window_bounds = array<i64: 1, 16>}, {transform_indices = @transform_3, window_bounds = array<i64: 1, 4, 4, 16>}]} {
    %cst = arith.constant 0.000000e+00 : f32
    %0 = vector.broadcast %cst : f32 to vector<32x16xf32>
    %c0 = arith.constant 0 : index
    %c0_0 = arith.constant 0 : index
    %c0_1 = arith.constant 0 : index
    %c0_2 = arith.constant 0 : index
    %c0_3 = arith.constant 0 : index
    %1 = vector.load %arg1[%c0, %c0_0, %c0_1, %c0_2, %c0_3] : memref<1x5x2x9x16xbf16, #tpu.memory_space<vmem>>, vector<1x4x1x8x8xbf16>
    %2 = vector.shape_cast %1 : vector<1x4x1x8x8xbf16> to vector<4x8x8xbf16>
    %3 = vector.shape_cast %2 : vector<4x8x8xbf16> to vector<32x8xbf16>
    %c0_4 = arith.constant 0 : index
    %c0_5 = arith.constant 0 : index
    %c0_6 = arith.constant 0 : index
    %4 = vector.load %arg2[%c0_4, %c0_5, %c0_6] : memref<9x8x16xbf16, #tpu.memory_space<vmem>>, vector<1x8x16xbf16>
    %5 = vector.shape_cast %4 : vector<1x8x16xbf16> to vector<8x16xbf16>
    %cst_7 = arith.constant dense<0.000000e+00> : vector<32x16xf32>
    %6 = tpu.matmul %3, %5, %cst_7 {dimension_numbers = #tpu.dot_dimension_numbers<[1], [0], [0], [1], [0, 0, 1, 1], [], []>} : vector<32x8xbf16>, vector<8x16xbf16>, vector<32x16xf32> -> vector<32x16xf32>
    %7 = arith.addf %0, %6 : vector<32x16xf32>
    %c0_8 = arith.constant 0 : index
    %c0_9 = arith.constant 0 : index
    %c0_10 = arith.constant 0 : index
    %c0_11 = arith.constant 0 : index
    %c8 = arith.constant 8 : index
    %8 = vector.load %arg1[%c0_8, %c0_9, %c0_10, %c0_11, %c8] : memref<1x5x2x9x16xbf16, #tpu.memory_space<vmem>>, vector<1x4x1x8x8xbf16>
    %9 = vector.shape_cast %8 : vector<1x4x1x8x8xbf16> to vector<4x8x8xbf16>
    %10 = vector.shape_cast %9 : vector<4x8x8xbf16> to vector<32x8xbf16>
    %c1 = arith.constant 1 : index
    %c0_12 = arith.constant 0 : index
    %c0_13 = arith.constant 0 : index
    %11 = vector.load %arg2[%c1, %c0_12, %c0_13] : memref<9x8x16xbf16, #tpu.memory_space<vmem>>, vector<1x8x16xbf16>
    %12 = vector.shape_cast %11 : vector<1x8x16xbf16> to vector<8x16xbf16>
    %cst_14 = arith.constant dense<0.000000e+00> : vector<32x16xf32>
    %13 = tpu.matmul %10, %12, %cst_14 {dimension_numbers = #tpu.dot_dimension_numbers<[1], [0], [0], [1], [0, 0, 1, 1], [], []>} : vector<32x8xbf16>, vector<8x16xbf16>, vector<32x16xf32> -> vector<32x16xf32>
    %14 = arith.addf %7, %13 : vector<32x16xf32>
    %c0_15 = arith.constant 0 : index
    %c0_16 = arith.constant 0 : index
    %c0_17 = arith.constant 0 : index
    %c1_18 = arith.constant 1 : index
    %c0_19 = arith.constant 0 : index
    %15 = vector.load %arg1[%c0_15, %c0_16, %c0_17, %c1_18, %c0_19] : memref<1x5x2x9x16xbf16, #tpu.memory_space<vmem>>, vector<1x4x1x8x8xbf16>
    %16 = vector.shape_cast %15 : vector<1x4x1x8x8xbf16> to vector<4x8x8xbf16>
    %17 = vector.shape_cast %16 : vector<4x8x8xbf16> to vector<32x8xbf16>
    %c2 = arith.constant 2 : index
    %c0_20 = arith.constant 0 : index
    %c0_21 = arith.constant 0 : index
    %18 = vector.load %arg2[%c2, %c0_20, %c0_21] : memref<9x8x16xbf16, #tpu.memory_space<vmem>>, vector<1x8x16xbf16>
    %19 = vector.shape_cast %18 : vector<1x8x16xbf16> to vector<8x16xbf16>
    %cst_22 = arith.constant dense<0.000000e+00> : vector<32x16xf32>
    %20 = tpu.matmul %17, %19, %cst_22 {dimension_numbers = #tpu.dot_dimension_numbers<[1], [0], [0], [1], [0, 0, 1, 1], [], []>} : vector<32x8xbf16>, vector<8x16xbf16>, vector<32x16xf32> -> vector<32x16xf32>
    %21 = arith.addf %14, %20 : vector<32x16xf32>
    %c0_23 = arith.constant 0 : index
    %c0_24 = arith.constant 0 : index
    %c1_25 = arith.constant 1 : index
    %c0_26 = arith.constant 0 : index
    %c0_27 = arith.constant 0 : index
    %22 = vector.load %arg1[%c0_23, %c0_24, %c1_25, %c0_26, %c0_27] : memref<1x5x2x9x16xbf16, #tpu.memory_space<vmem>>, vector<1x4x1x8x8xbf16>
    %23 = vector.shape_cast %22 : vector<1x4x1x8x8xbf16> to vector<4x8x8xbf16>
    %24 = vector.shape_cast %23 : vector<4x8x8xbf16> to vector<32x8xbf16>
    %c3 = arith.constant 3 : index
    %c0_28 = arith.constant 0 : index
    %c0_29 = arith.constant 0 : index
    %25 = vector.load %arg2[%c3, %c0_28, %c0_29] : memref<9x8x16xbf16, #tpu.memory_space<vmem>>, vector<1x8x16xbf16>
    %26 = vector.shape_cast %25 : vector<1x8x16xbf16> to vector<8x16xbf16>
    %cst_30 = arith.constant dense<0.000000e+00> : vector<32x16xf32>
    %27 = tpu.matmul %24, %26, %cst_30 {dimension_numbers = #tpu.dot_dimension_numbers<[1], [0], [0], [1], [0, 0, 1, 1], [], []>} : vector<32x8xbf16>, vector<8x16xbf16>, vector<32x16xf32> -> vector<32x16xf32>
    %28 = arith.addf %21, %27 : vector<32x16xf32>
    %c0_31 = arith.constant 0 : index
    %c0_32 = arith.constant 0 : index
    %c1_33 = arith.constant 1 : index
    %c0_34 = arith.constant 0 : index
    %c8_35 = arith.constant 8 : index
    %29 = vector.load %arg1[%c0_31, %c0_32, %c1_33, %c0_34, %c8_35] : memref<1x5x2x9x16xbf16, #tpu.memory_space<vmem>>, vector<1x4x1x8x8xbf16>
    %30 = vector.shape_cast %29 : vector<1x4x1x8x8xbf16> to vector<4x8x8xbf16>
    %31 = vector.shape_cast %30 : vector<4x8x8xbf16> to vector<32x8xbf16>
    %c4 = arith.constant 4 : index
    %c0_36 = arith.constant 0 : index
    %c0_37 = arith.constant 0 : index
    %32 = vector.load %arg2[%c4, %c0_36, %c0_37] : memref<9x8x16xbf16, #tpu.memory_space<vmem>>, vector<1x8x16xbf16>
    %33 = vector.shape_cast %32 : vector<1x8x16xbf16> to vector<8x16xbf16>
    %cst_38 = arith.constant dense<0.000000e+00> : vector<32x16xf32>
    %34 = tpu.matmul %31, %33, %cst_38 {dimension_numbers = #tpu.dot_dimension_numbers<[1], [0], [0], [1], [0, 0, 1, 1], [], []>} : vector<32x8xbf16>, vector<8x16xbf16>, vector<32x16xf32> -> vector<32x16xf32>
    %35 = arith.addf %28, %34 : vector<32x16xf32>
    %c0_39 = arith.constant 0 : index
    %c0_40 = arith.constant 0 : index
    %c1_41 = arith.constant 1 : index
    %c1_42 = arith.constant 1 : index
    %c0_43 = arith.constant 0 : index
    %36 = vector.load %arg1[%c0_39, %c0_40, %c1_41, %c1_42, %c0_43] : memref<1x5x2x9x16xbf16, #tpu.memory_space<vmem>>, vector<1x4x1x8x8xbf16>
    %37 = vector.shape_cast %36 : vector<1x4x1x8x8xbf16> to vector<4x8x8xbf16>
    %38 = vector.shape_cast %37 : vector<4x8x8xbf16> to vector<32x8xbf16>
    %c5 = arith.constant 5 : index
    %c0_44 = arith.constant 0 : index
    %c0_45 = arith.constant 0 : index
    %39 = vector.load %arg2[%c5, %c0_44, %c0_45] : memref<9x8x16xbf16, #tpu.memory_space<vmem>>, vector<1x8x16xbf16>
    %40 = vector.shape_cast %39 : vector<1x8x16xbf16> to vector<8x16xbf16>
    %cst_46 = arith.constant dense<0.000000e+00> : vector<32x16xf32>
    %41 = tpu.matmul %38, %40, %cst_46 {dimension_numbers = #tpu.dot_dimension_numbers<[1], [0], [0], [1], [0, 0, 1, 1], [], []>} : vector<32x8xbf16>, vector<8x16xbf16>, vector<32x16xf32> -> vector<32x16xf32>
    %42 = arith.addf %35, %41 : vector<32x16xf32>
    %c0_47 = arith.constant 0 : index
    %c1_48 = arith.constant 1 : index
    %c0_49 = arith.constant 0 : index
    %c0_50 = arith.constant 0 : index
    %c0_51 = arith.constant 0 : index
    %43 = vector.load %arg1[%c0_47, %c1_48, %c0_49, %c0_50, %c0_51] : memref<1x5x2x9x16xbf16, #tpu.memory_space<vmem>>, vector<1x4x1x8x8xbf16>
    %44 = vector.shape_cast %43 : vector<1x4x1x8x8xbf16> to vector<4x8x8xbf16>
    %45 = vector.shape_cast %44 : vector<4x8x8xbf16> to vector<32x8xbf16>
    %c6 = arith.constant 6 : index
    %c0_52 = arith.constant 0 : index
    %c0_53 = arith.constant 0 : index
    %46 = vector.load %arg2[%c6, %c0_52, %c0_53] : memref<9x8x16xbf16, #tpu.memory_space<vmem>>, vector<1x8x16xbf16>
    %47 = vector.shape_cast %46 : vector<1x8x16xbf16> to vector<8x16xbf16>
    %cst_54 = arith.constant dense<0.000000e+00> : vector<32x16xf32>
    %48 = tpu.matmul %45, %47, %cst_54 {dimension_numbers = #tpu.dot_dimension_numbers<[1], [0], [0], [1], [0, 0, 1, 1], [], []>} : vector<32x8xbf16>, vector<8x16xbf16>, vector<32x16xf32> -> vector<32x16xf32>
    %49 = arith.addf %42, %48 : vector<32x16xf32>
    %c0_55 = arith.constant 0 : index
    %c1_56 = arith.constant 1 : index
    %c0_57 = arith.constant 0 : index
    %c0_58 = arith.constant 0 : index
    %c8_59 = arith.constant 8 : index
    %50 = vector.load %arg1[%c0_55, %c1_56, %c0_57, %c0_58, %c8_59] : memref<1x5x2x9x16xbf16, #tpu.memory_space<vmem>>, vector<1x4x1x8x8xbf16>
    %51 = vector.shape_cast %50 : vector<1x4x1x8x8xbf16> to vector<4x8x8xbf16>
    %52 = vector.shape_cast %51 : vector<4x8x8xbf16> to vector<32x8xbf16>
    %c7 = arith.constant 7 : index
    %c0_60 = arith.constant 0 : index
    %c0_61 = arith.constant 0 : index
    %53 = vector.load %arg2[%c7, %c0_60, %c0_61] : memref<9x8x16xbf16, #tpu.memory_space<vmem>>, vector<1x8x16xbf16>
    %54 = vector.shape_cast %53 : vector<1x8x16xbf16> to vector<8x16xbf16>
    %cst_62 = arith.constant dense<0.000000e+00> : vector<32x16xf32>
    %55 = tpu.matmul %52, %54, %cst_62 {dimension_numbers = #tpu.dot_dimension_numbers<[1], [0], [0], [1], [0, 0, 1, 1], [], []>} : vector<32x8xbf16>, vector<8x16xbf16>, vector<32x16xf32> -> vector<32x16xf32>
    %56 = arith.addf %49, %55 : vector<32x16xf32>
    %c0_63 = arith.constant 0 : index
    %c1_64 = arith.constant 1 : index
    %c0_65 = arith.constant 0 : index
    %c1_66 = arith.constant 1 : index
    %c0_67 = arith.constant 0 : index
    %57 = vector.load %arg1[%c0_63, %c1_64, %c0_65, %c1_66, %c0_67] : memref<1x5x2x9x16xbf16, #tpu.memory_space<vmem>>, vector<1x4x1x8x8xbf16>
    %58 = vector.shape_cast %57 : vector<1x4x1x8x8xbf16> to vector<4x8x8xbf16>
    %59 = vector.shape_cast %58 : vector<4x8x8xbf16> to vector<32x8xbf16>
    %c8_68 = arith.constant 8 : index
    %c0_69 = arith.constant 0 : index
    %c0_70 = arith.constant 0 : index
    %60 = vector.load %arg2[%c8_68, %c0_69, %c0_70] : memref<9x8x16xbf16, #tpu.memory_space<vmem>>, vector<1x8x16xbf16>
    %61 = vector.shape_cast %60 : vector<1x8x16xbf16> to vector<8x16xbf16>
    %cst_71 = arith.constant dense<0.000000e+00> : vector<32x16xf32>
    %62 = tpu.matmul %59, %61, %cst_71 {dimension_numbers = #tpu.dot_dimension_numbers<[1], [0], [0], [1], [0, 0, 1, 1], [], []>} : vector<32x8xbf16>, vector<8x16xbf16>, vector<32x16xf32> -> vector<32x16xf32>
    %63 = arith.addf %56, %62 : vector<32x16xf32>
    %c0_72 = arith.constant 0 : index
    %c0_73 = arith.constant 0 : index
    %64 = vector.load %arg3[%c0_72, %c0_73] : memref<1x16xf32, #tpu.memory_space<vmem>>, vector<1x16xf32>
    %65 = vector.broadcast %64 : vector<1x16xf32> to vector<32x16xf32>
    %66 = arith.addf %63, %65 : vector<32x16xf32>
    %cst_74 = arith.constant 0.000000e+00 : f32
    %67 = vector.broadcast %cst_74 : f32 to vector<32x16xf32>
    %68 = arith.cmpf oge, %66, %67 : vector<32x16xf32>
    %cst_75 = arith.constant 2.000000e-01 : f32
    %69 = vector.broadcast %cst_75 : f32 to vector<32x16xf32>
    %70 = arith.mulf %69, %66 : vector<32x16xf32>
    %71 = arith.select %68, %66, %70 : vector<32x16xi1>, vector<32x16xf32>
    %72 = vector.shape_cast %71 : vector<32x16xf32> to vector<4x8x16xf32>
    %73 = vector.extract_strided_slice %72 {offsets = [0, 0, 0], sizes = [4, 4, 16], strides = [1, 1, 1]} : vector<4x8x16xf32> to vector<4x4x16xf32>
    %74 = arith.truncf %73 : vector<4x4x16xf32> to vector<4x4x16xbf16>
    %c0_76 = arith.constant 0 : index
    %c0_77 = arith.constant 0 : index
    %c0_78 = arith.constant 0 : index
    %c0_79 = arith.constant 0 : index
    %75 = vector.load %arg4[%c0_76, %c0_77, %c0_78, %c0_79] : memref<1x4x4x16xbf16, #tpu.memory_space<vmem>>, vector<1x4x4x16xbf16>
    %76 = vector.shape_cast %75 : vector<1x4x4x16xbf16> to vector<4x4x16xbf16>
    %77 = vector.shape_cast %74 : vector<4x4x16xbf16> to vector<1x4x4x16xbf16>
    tpu.vector_store %arg4[%c0_76, %c0_77, %c0_78, %c0_79], %77 {strides = array<i32>} : memref<1x4x4x16xbf16, #tpu.memory_space<vmem>>, vector<1x4x4x16xbf16>,
    return
  }
  func.func @transform_0(%arg0: i32) -> (i32, i32, i32, i32, i32) {
    %c0_i32 = arith.constant 0 : i32
    %c0_i32_0 = arith.constant 0 : i32
    %c0_i32_1 = arith.constant 0 : i32
    %c0_i32_2 = arith.constant 0 : i32
    %c0_i32_3 = arith.constant 0 : i32
    return %arg0, %c0_i32, %c0_i32_0, %c0_i32_1, %c0_i32_2 : i32, i32, i32, i32, i32
  }
  func.func @transform_1(%arg0: i32) -> (i32, i32, i32) {
    %c0_i32 = arith.constant 0 : i32
    %c0_i32_0 = arith.constant 0 : i32
    %c0_i32_1 = arith.constant 0 : i32
    %c0_i32_2 = arith.constant 0 : i32
    return %c0_i32, %c0_i32_0, %c0_i32_1 : i32, i32, i32
  }
  func.func @transform_2(%arg0: i32) -> (i32, i32) {
    %c0_i32 = arith.constant 0 : i32
    %c0_i32_0 = arith.constant 0 : i32
    %c0_i32_1 = arith.constant 0 : i32
    return %c0_i32, %c0_i32_0 : i32, i32
  }
  func.func @transform_3(%arg0: i32) -> (i32, i32, i32, i32) {
    %c0_i32 = arith.constant 0 : i32
    %c0_i32_0 = arith.constant 0 : i32
    %c0_i32_1 = arith.constant 0 : i32
    %c0_i32_2 = arith.constant 0 : i32
    return %arg0, %c0_i32, %c0_i32_0, %c0_i32_1 : i32, i32, i32, i32
  }
}

module attributes {stable_mosaic.version = 11 : i64} {
  func.func @kernel(%arg0: i32, %arg1: memref<1x6x10x16xbf16, #tpu.memory_space<vmem>>, %arg2: memref<9x16x16xbf16, #tpu.memory_space<vmem>>, %arg3: memref<1x16xf32, #tpu.memory_space<vmem>>, %arg4: memref<1x4x4x16xbf16, #tpu.memory_space<vmem>>) attributes {dimension_semantics = [#tpu.dimension_semantics<parallel>], iteration_bounds = array<i64: 2>, scalar_prefetch = 0 : i64, scratch_operands = 0 : i64, tpu.core_type = #tpu.core_type<tc>, window_params = [{transform_indices = @transform_0, window_bounds = array<i64: 1, 6, 10, 16>}, {pipeline_mode = #tpu.pipeline_mode<synchronous>, transform_indices = @transform_1, window_bounds = array<i64: 9, 16, 16>}, {pipeline_mode = #tpu.pipeline_mode<synchronous>, transform_indices = @transform_2, window_bounds = array<i64: 1, 16>}, {transform_indices = @transform_3, window_bounds = array<i64: 1, 4, 4, 16>}]} {
    %cst = arith.constant 0.000000e+00 : f32
    %0 = vector.broadcast %cst : f32 to vector<32x16xf32>
    %c0 = arith.constant 0 : index
    %c0_0 = arith.constant 0 : index
    %c0_1 = arith.constant 0 : index
    %c0_2 = arith.constant 0 : index
    %1 = vector.load %arg1[%c0, %c0_0, %c0_1, %c0_2] : memref<1x6x10x16xbf16, #tpu.memory_space<vmem>>, vector<1x4x8x16xbf16>
    %2 = vector.shape_cast %1 : vector<1x4x8x16xbf16> to vector<4x8x16xbf16>
    %3 = vector.shape_cast %2 : vector<4x8x16xbf16> to vector<32x16xbf16>
    %c0_3 = arith.constant 0 : index
    %c0_4 = arith.constant 0 : index
    %c0_5 = arith.constant 0 : index
    %4 = vector.load %arg2[%c0_3, %c0_4, %c0_5] : memref<9x16x16xbf16, #tpu.memory_space<vmem>>, vector<1x16x16xbf16>
    %5 = vector.shape_cast %4 : vector<1x16x16xbf16> to vector<16x16xbf16>
    %cst_6 = arith.constant dense<0.000000e+00> : vector<32x16xf32>
    %6 = tpu.matmul %3, %5, %cst_6 {dimension_numbers = #tpu.dot_dimension_numbers<[1], [0], [0], [1], [0, 0, 1, 1], [], []>} : vector<32x16xbf16>, vector<16x16xbf16>, vector<32x16xf32> -> vector<32x16xf32>
    %7 = arith.addf %0, %6 : vector<32x16xf32>
    %c0_7 = arith.constant 0 : index
    %c0_8 = arith.constant 0 : index
    %c1 = arith.constant 1 : index
    %c0_9 = arith.constant 0 : index
    %8 = vector.load %arg1[%c0_7, %c0_8, %c1, %c0_9] : memref<1x6x10x16xbf16, #tpu.memory_space<vmem>>, vector<1x4x8x16xbf16>
    %9 = vector.shape_cast %8 : vector<1x4x8x16xbf16> to vector<4x8x16xbf16>
    %10 = vector.shape_cast %9 : vector<4x8x16xbf16> to vector<32x16xbf16>
    %c1_10 = arith.constant 1 : index
    %c0_11 = arith.constant 0 : index
    %c0_12 = arith.constant 0 : index
    %11 = vector.load %arg2[%c1_10, %c0_11, %c0_12] : memref<9x16x16xbf16, #tpu.memory_space<vmem>>, vector<1x16x16xbf16>
    %12 = vector.shape_cast %11 : vector<1x16x16xbf16> to vector<16x16xbf16>
    %cst_13 = arith.constant dense<0.000000e+00> : vector<32x16xf32>
    %13 = tpu.matmul %10, %12, %cst_13 {dimension_numbers = #tpu.dot_dimension_numbers<[1], [0], [0], [1], [0, 0, 1, 1], [], []>} : vector<32x16xbf16>, vector<16x16xbf16>, vector<32x16xf32> -> vector<32x16xf32>
    %14 = arith.addf %7, %13 : vector<32x16xf32>
    %c0_14 = arith.constant 0 : index
    %c0_15 = arith.constant 0 : index
    %c2 = arith.constant 2 : index
    %c0_16 = arith.constant 0 : index
    %15 = vector.load %arg1[%c0_14, %c0_15, %c2, %c0_16] : memref<1x6x10x16xbf16, #tpu.memory_space<vmem>>, vector<1x4x8x16xbf16>
    %16 = vector.shape_cast %15 : vector<1x4x8x16xbf16> to vector<4x8x16xbf16>
    %17 = vector.shape_cast %16 : vector<4x8x16xbf16> to vector<32x16xbf16>
    %c2_17 = arith.constant 2 : index
    %c0_18 = arith.constant 0 : index
    %c0_19 = arith.constant 0 : index
    %18 = vector.load %arg2[%c2_17, %c0_18, %c0_19] : memref<9x16x16xbf16, #tpu.memory_space<vmem>>, vector<1x16x16xbf16>
    %19 = vector.shape_cast %18 : vector<1x16x16xbf16> to vector<16x16xbf16>
    %cst_20 = arith.constant dense<0.000000e+00> : vector<32x16xf32>
    %20 = tpu.matmul %17, %19, %cst_20 {dimension_numbers = #tpu.dot_dimension_numbers<[1], [0], [0], [1], [0, 0, 1, 1], [], []>} : vector<32x16xbf16>, vector<16x16xbf16>, vector<32x16xf32> -> vector<32x16xf32>
    %21 = arith.addf %14, %20 : vector<32x16xf32>
    %c0_21 = arith.constant 0 : index
    %c1_22 = arith.constant 1 : index
    %c0_23 = arith.constant 0 : index
    %c0_24 = arith.constant 0 : index
    %22 = vector.load %arg1[%c0_21, %c1_22, %c0_23, %c0_24] : memref<1x6x10x16xbf16, #tpu.memory_space<vmem>>, vector<1x4x8x16xbf16>
    %23 = vector.shape_cast %22 : vector<1x4x8x16xbf16> to vector<4x8x16xbf16>
    %24 = vector.shape_cast %23 : vector<4x8x16xbf16> to vector<32x16xbf16>
    %c3 = arith.constant 3 : index
    %c0_25 = arith.constant 0 : index
    %c0_26 = arith.constant 0 : index
    %25 = vector.load %arg2[%c3, %c0_25, %c0_26] : memref<9x16x16xbf16, #tpu.memory_space<vmem>>, vector<1x16x16xbf16>
    %26 = vector.shape_cast %25 : vector<1x16x16xbf16> to vector<16x16xbf16>
    %cst_27 = arith.constant dense<0.000000e+00> : vector<32x16xf32>
    %27 = tpu.matmul %24, %26, %cst_27 {dimension_numbers = #tpu.dot_dimension_numbers<[1], [0], [0], [1], [0, 0, 1, 1], [], []>} : vector<32x16xbf16>, vector<16x16xbf16>, vector<32x16xf32> -> vector<32x16xf32>
    %28 = arith.addf %21, %27 : vector<32x16xf32>
    %c0_28 = arith.constant 0 : index
    %c1_29 = arith.constant 1 : index
    %c1_30 = arith.constant 1 : index
    %c0_31 = arith.constant 0 : index
    %29 = vector.load %arg1[%c0_28, %c1_29, %c1_30, %c0_31] : memref<1x6x10x16xbf16, #tpu.memory_space<vmem>>, vector<1x4x8x16xbf16>
    %30 = vector.shape_cast %29 : vector<1x4x8x16xbf16> to vector<4x8x16xbf16>
    %31 = vector.shape_cast %30 : vector<4x8x16xbf16> to vector<32x16xbf16>
    %c4 = arith.constant 4 : index
    %c0_32 = arith.constant 0 : index
    %c0_33 = arith.constant 0 : index
    %32 = vector.load %arg2[%c4, %c0_32, %c0_33] : memref<9x16x16xbf16, #tpu.memory_space<vmem>>, vector<1x16x16xbf16>
    %33 = vector.shape_cast %32 : vector<1x16x16xbf16> to vector<16x16xbf16>
    %cst_34 = arith.constant dense<0.000000e+00> : vector<32x16xf32>
    %34 = tpu.matmul %31, %33, %cst_34 {dimension_numbers = #tpu.dot_dimension_numbers<[1], [0], [0], [1], [0, 0, 1, 1], [], []>} : vector<32x16xbf16>, vector<16x16xbf16>, vector<32x16xf32> -> vector<32x16xf32>
    %35 = arith.addf %28, %34 : vector<32x16xf32>
    %c0_35 = arith.constant 0 : index
    %c1_36 = arith.constant 1 : index
    %c2_37 = arith.constant 2 : index
    %c0_38 = arith.constant 0 : index
    %36 = vector.load %arg1[%c0_35, %c1_36, %c2_37, %c0_38] : memref<1x6x10x16xbf16, #tpu.memory_space<vmem>>, vector<1x4x8x16xbf16>
    %37 = vector.shape_cast %36 : vector<1x4x8x16xbf16> to vector<4x8x16xbf16>
    %38 = vector.shape_cast %37 : vector<4x8x16xbf16> to vector<32x16xbf16>
    %c5 = arith.constant 5 : index
    %c0_39 = arith.constant 0 : index
    %c0_40 = arith.constant 0 : index
    %39 = vector.load %arg2[%c5, %c0_39, %c0_40] : memref<9x16x16xbf16, #tpu.memory_space<vmem>>, vector<1x16x16xbf16>
    %40 = vector.shape_cast %39 : vector<1x16x16xbf16> to vector<16x16xbf16>
    %cst_41 = arith.constant dense<0.000000e+00> : vector<32x16xf32>
    %41 = tpu.matmul %38, %40, %cst_41 {dimension_numbers = #tpu.dot_dimension_numbers<[1], [0], [0], [1], [0, 0, 1, 1], [], []>} : vector<32x16xbf16>, vector<16x16xbf16>, vector<32x16xf32> -> vector<32x16xf32>
    %42 = arith.addf %35, %41 : vector<32x16xf32>
    %c0_42 = arith.constant 0 : index
    %c2_43 = arith.constant 2 : index
    %c0_44 = arith.constant 0 : index
    %c0_45 = arith.constant 0 : index
    %43 = vector.load %arg1[%c0_42, %c2_43, %c0_44, %c0_45] : memref<1x6x10x16xbf16, #tpu.memory_space<vmem>>, vector<1x4x8x16xbf16>
    %44 = vector.shape_cast %43 : vector<1x4x8x16xbf16> to vector<4x8x16xbf16>
    %45 = vector.shape_cast %44 : vector<4x8x16xbf16> to vector<32x16xbf16>
    %c6 = arith.constant 6 : index
    %c0_46 = arith.constant 0 : index
    %c0_47 = arith.constant 0 : index
    %46 = vector.load %arg2[%c6, %c0_46, %c0_47] : memref<9x16x16xbf16, #tpu.memory_space<vmem>>, vector<1x16x16xbf16>
    %47 = vector.shape_cast %46 : vector<1x16x16xbf16> to vector<16x16xbf16>
    %cst_48 = arith.constant dense<0.000000e+00> : vector<32x16xf32>
    %48 = tpu.matmul %45, %47, %cst_48 {dimension_numbers = #tpu.dot_dimension_numbers<[1], [0], [0], [1], [0, 0, 1, 1], [], []>} : vector<32x16xbf16>, vector<16x16xbf16>, vector<32x16xf32> -> vector<32x16xf32>
    %49 = arith.addf %42, %48 : vector<32x16xf32>
    %c0_49 = arith.constant 0 : index
    %c2_50 = arith.constant 2 : index
    %c1_51 = arith.constant 1 : index
    %c0_52 = arith.constant 0 : index
    %50 = vector.load %arg1[%c0_49, %c2_50, %c1_51, %c0_52] : memref<1x6x10x16xbf16, #tpu.memory_space<vmem>>, vector<1x4x8x16xbf16>
    %51 = vector.shape_cast %50 : vector<1x4x8x16xbf16> to vector<4x8x16xbf16>
    %52 = vector.shape_cast %51 : vector<4x8x16xbf16> to vector<32x16xbf16>
    %c7 = arith.constant 7 : index
    %c0_53 = arith.constant 0 : index
    %c0_54 = arith.constant 0 : index
    %53 = vector.load %arg2[%c7, %c0_53, %c0_54] : memref<9x16x16xbf16, #tpu.memory_space<vmem>>, vector<1x16x16xbf16>
    %54 = vector.shape_cast %53 : vector<1x16x16xbf16> to vector<16x16xbf16>
    %cst_55 = arith.constant dense<0.000000e+00> : vector<32x16xf32>
    %55 = tpu.matmul %52, %54, %cst_55 {dimension_numbers = #tpu.dot_dimension_numbers<[1], [0], [0], [1], [0, 0, 1, 1], [], []>} : vector<32x16xbf16>, vector<16x16xbf16>, vector<32x16xf32> -> vector<32x16xf32>
    %56 = arith.addf %49, %55 : vector<32x16xf32>
    %c0_56 = arith.constant 0 : index
    %c2_57 = arith.constant 2 : index
    %c2_58 = arith.constant 2 : index
    %c0_59 = arith.constant 0 : index
    %57 = vector.load %arg1[%c0_56, %c2_57, %c2_58, %c0_59] : memref<1x6x10x16xbf16, #tpu.memory_space<vmem>>, vector<1x4x8x16xbf16>
    %58 = vector.shape_cast %57 : vector<1x4x8x16xbf16> to vector<4x8x16xbf16>
    %59 = vector.shape_cast %58 : vector<4x8x16xbf16> to vector<32x16xbf16>
    %c8 = arith.constant 8 : index
    %c0_60 = arith.constant 0 : index
    %c0_61 = arith.constant 0 : index
    %60 = vector.load %arg2[%c8, %c0_60, %c0_61] : memref<9x16x16xbf16, #tpu.memory_space<vmem>>, vector<1x16x16xbf16>
    %61 = vector.shape_cast %60 : vector<1x16x16xbf16> to vector<16x16xbf16>
    %cst_62 = arith.constant dense<0.000000e+00> : vector<32x16xf32>
    %62 = tpu.matmul %59, %61, %cst_62 {dimension_numbers = #tpu.dot_dimension_numbers<[1], [0], [0], [1], [0, 0, 1, 1], [], []>} : vector<32x16xbf16>, vector<16x16xbf16>, vector<32x16xf32> -> vector<32x16xf32>
    %63 = arith.addf %56, %62 : vector<32x16xf32>
    %c0_63 = arith.constant 0 : index
    %c0_64 = arith.constant 0 : index
    %64 = vector.load %arg3[%c0_63, %c0_64] : memref<1x16xf32, #tpu.memory_space<vmem>>, vector<1x16xf32>
    %65 = vector.broadcast %64 : vector<1x16xf32> to vector<32x16xf32>
    %66 = arith.addf %63, %65 : vector<32x16xf32>
    %cst_65 = arith.constant 0.000000e+00 : f32
    %67 = vector.broadcast %cst_65 : f32 to vector<32x16xf32>
    %68 = arith.cmpf oge, %66, %67 : vector<32x16xf32>
    %cst_66 = arith.constant 2.000000e-01 : f32
    %69 = vector.broadcast %cst_66 : f32 to vector<32x16xf32>
    %70 = arith.mulf %69, %66 : vector<32x16xf32>
    %71 = arith.select %68, %66, %70 : vector<32x16xi1>, vector<32x16xf32>
    %72 = vector.shape_cast %71 : vector<32x16xf32> to vector<4x8x16xf32>
    %73 = vector.extract_strided_slice %72 {offsets = [0, 0, 0], sizes = [4, 4, 16], strides = [1, 1, 1]} : vector<4x8x16xf32> to vector<4x4x16xf32>
    %74 = arith.truncf %73 : vector<4x4x16xf32> to vector<4x4x16xbf16>
    %c0_67 = arith.constant 0 : index
    %c0_68 = arith.constant 0 : index
    %c0_69 = arith.constant 0 : index
    %c0_70 = arith.constant 0 : index
    %75 = vector.load %arg4[%c0_67, %c0_68, %c0_69, %c0_70] : memref<1x4x4x16xbf16, #tpu.memory_space<vmem>>, vector<1x4x4x16xbf16>
    %76 = vector.shape_cast %75 : vector<1x4x4x16xbf16> to vector<4x4x16xbf16>
    %77 = vector.shape_cast %74 : vector<4x4x16xbf16> to vector<1x4x4x16xbf16>
    tpu.vector_store %arg4[%c0_67, %c0_68, %c0_69, %c0_70], %77 {strides = array<i32>} : memref<1x4x4x16xbf16, #tpu.memory_space<vmem>>, vector<1x4x4x16xbf16>,
    return
  }
  func.func @transform_0(%arg0: i32) -> (i32, i32, i32, i32) {
    %c0_i32 = arith.constant 0 : i32
    %c0_i32_0 = arith.constant 0 : i32
    %c0_i32_1 = arith.constant 0 : i32
    %c0_i32_2 = arith.constant 0 : i32
    return %arg0, %c0_i32, %c0_i32_0, %c0_i32_1 : i32, i32, i32, i32
  }
  func.func @transform_1(%arg0: i32) -> (i32, i32, i32) {
    %c0_i32 = arith.constant 0 : i32
    %c0_i32_0 = arith.constant 0 : i32
    %c0_i32_1 = arith.constant 0 : i32
    %c0_i32_2 = arith.constant 0 : i32
    return %c0_i32, %c0_i32_0, %c0_i32_1 : i32, i32, i32
  }
  func.func @transform_2(%arg0: i32) -> (i32, i32) {
    %c0_i32 = arith.constant 0 : i32
    %c0_i32_0 = arith.constant 0 : i32
    %c0_i32_1 = arith.constant 0 : i32
    return %c0_i32, %c0_i32_0 : i32, i32
  }
  func.func @transform_3(%arg0: i32) -> (i32, i32, i32, i32) {
    %c0_i32 = arith.constant 0 : i32
    %c0_i32_0 = arith.constant 0 : i32
    %c0_i32_1 = arith.constant 0 : i32
    %c0_i32_2 = arith.constant 0 : i32
    return %arg0, %c0_i32, %c0_i32_0, %c0_i32_1 : i32, i32, i32, i32
  }
}

module attributes {stable_mosaic.version = 11 : i64} {
  func.func @stddev_fc_kernel(%arg0: memref<2x256xbf16, #tpu.memory_space<vmem>>, %arg1: memref<1x256xf32, #tpu.memory_space<vmem>>, %arg2: memref<2xf32, #tpu.memory_space<smem>>, %arg3: memref<2x1xf32, #tpu.memory_space<vmem>>) attributes {dimension_semantics = [], scalar_prefetch = 0 : i64, scratch_operands = 0 : i64, tpu.core_type = #tpu.core_type<tc>} {
    %c0 = arith.constant 0 : index
    %c0_0 = arith.constant 0 : index
    %0 = vector.load %arg0[%c0, %c0_0] : memref<2x256xbf16, #tpu.memory_space<vmem>>, vector<2x256xbf16>
    %1 = arith.extf %0 : vector<2x256xbf16> to vector<2x256xf32>
    %cst = arith.constant dense<0.000000e+00> : vector<256xf32>
    %2 = vector.multi_reduction <add>, %1, %cst [0] : vector<2x256xf32> to vector<256xf32>
    %3 = vector.shape_cast %2 : vector<256xf32> to vector<1x256xf32>
    %cst_1 = arith.constant 2.000000e+00 : f32
    %4 = vector.broadcast %cst_1 : f32 to vector<1x256xf32>
    %5 = arith.divf %3, %4 : vector<1x256xf32>
    %6 = vector.broadcast %5 : vector<1x256xf32> to vector<2x256xf32>
    %7 = arith.subf %1, %6 : vector<2x256xf32>
    %8 = arith.mulf %7, %7 : vector<2x256xf32>
    %cst_2 = arith.constant dense<0.000000e+00> : vector<256xf32>
    %9 = vector.multi_reduction <add>, %8, %cst_2 [0] : vector<2x256xf32> to vector<256xf32>
    %10 = vector.shape_cast %9 : vector<256xf32> to vector<1x256xf32>
    %cst_3 = arith.constant 1.000000e+00 : f32
    %11 = vector.broadcast %cst_3 : f32 to vector<1x256xf32>
    %12 = arith.divf %10, %11 : vector<1x256xf32>
    %13 = math.sqrt %12 : vector<1x256xf32>
    %cst_4 = arith.constant 9.99999993E-9 : f32
    %14 = vector.broadcast %cst_4 : f32 to vector<1x256xf32>
    %15 = arith.addf %13, %14 : vector<1x256xf32>
    %16 = vector.shape_cast %15 : vector<1x256xf32> to vector<1x1x256xf32>
    %cst_5 = arith.constant dense<0.000000e+00> : vector<1xf32>
    %17 = vector.multi_reduction <add>, %16, %cst_5 [1, 2] : vector<1x1x256xf32> to vector<1xf32>
    %18 = vector.shape_cast %17 : vector<1xf32> to vector<1x1x1xf32>
    %19 = vector.extract %18[0, 0, 0] : f32 from vector<1x1x1xf32>
    %cst_6 = arith.constant 2.560000e+02 : f32
    %20 = arith.divf %19, %cst_6 : f32
    %c0_7 = arith.constant 0 : index
    %c0_8 = arith.constant 0 : index
    %21 = vector.load %arg1[%c0_7, %c0_8] : memref<1x256xf32, #tpu.memory_space<vmem>>, vector<1x256xf32>
    %22 = vector.broadcast %21 : vector<1x256xf32> to vector<2x256xf32>
    %23 = arith.mulf %1, %22 : vector<2x256xf32>
    %cst_9 = arith.constant dense<0.000000e+00> : vector<2xf32>
    %24 = vector.multi_reduction <add>, %23, %cst_9 [1] : vector<2x256xf32> to vector<2xf32>
    %25 = vector.shape_cast %24 : vector<2xf32> to vector<2x1xf32>
    %c0_10 = arith.constant 0 : index
    %26 = memref.load %arg2[%c0_10] : memref<2xf32, #tpu.memory_space<smem>>
    %27 = arith.mulf %20, %26 : f32
    %c1 = arith.constant 1 : index
    %28 = memref.load %arg2[%c1] : memref<2xf32, #tpu.memory_space<smem>>
    %29 = arith.addf %27, %28 : f32
    %30 = vector.broadcast %29 : f32 to vector<2x1xf32>
    %31 = arith.addf %25, %30 : vector<2x1xf32>
    %c0_11 = arith.constant 0 : index
    %c0_12 = arith.constant 0 : index
    %32 = vector.load %arg3[%c0_11, %c0_12] : memref<2x1xf32, #tpu.memory_space<vmem>>, vector<2x1xf32>
    tpu.vector_store %arg3[%c0_11, %c0_12], %31 {strides = array<i32>} : memref<2x1xf32, #tpu.memory_space<vmem>>, vector<2x1xf32>,
    return
  }
}

</mosaic_0001>

<bundles_post_ra>
// kernel: _lambda_.7
= control target key start
LH: loop header
LB: loop body
LE: loop exit
PB: predicated region body
PF: predicated region fallthrough
CT: control target
= control target key end

     0   :  { %s956_s12 = smov 0   ;;  %s1130_s0 = inlined_call_operand.vmem [shape: bf16[2,5,2,9,16], index: 0, kind: input, shape index: {}]   ;;  %s1131_s1 = inlined_call_operand.vmem [shape: bf16[9,8,16], index: 1, kind: input, shape index: {}]   ;;  %s1132_s2 = inlined_call_operand.vmem [shape: f32[1,16], index: 2, kind: input, shape index: {}]   ;;  %s1133_s3 = inlined_call_operand.vmem [shape: bf16[2,4,4,16], index: 3, kind: output, shape index: {}]  }
   0x1 LB: > { %s824_s13 = sadd.s32 4294967295, %s933_s12   ;;  %p828_p0 = scmp.ge.s32.totalorder %s933_s12, 1  ;;  %s933_s12 = sphi %s956_s12, %s13_s12  }
   0x2   : > { %p137_p1 = scmp.lt.s32.totalorder %s933_s12, 3 }
   0x4   : > { %p138_p2 = pnand %p828_p0, %p137_p1 }
   0x5   : > { %p161_p3 = scmp.lt.s32.totalorder (!%p138_p2), %s824_s13, 1  ;;  %s935_s20 = smov (!%p138_p2), 120  }
   0x6   : > { %141 = sbr.rel (%p138_p2) target bundleno = 349 (0x15d), region = 32 }
   0xb   : > { %v832_v0 = vld [vmem:[%s1131_s1 + $0x4] sm:$0xf]  ;;  %vm200_vm0 = vcmask 1043456   ;;  %s1137_s13 = smov (!%p161_p3, %s824_s13), 1  ;;  %vm259_vm1 = vsmask.f32 3328 }
   0xc   : > { %v202_v1 = vsel %vm200_vm0, %v832_v0, 0  ;;  %s916_s16 = smul.u32 80, %s1137_s13  ;;  %vm260_vm2 = vsmask.f32 7440  ;;  %v176_v37 = vld [vmem:[%s1131_s1] sm:$0xf] }
   0xd   : > { %915 = vmatpush.bf16.msra.mxu1 %v202_v1  ;;  %211 = vmatpush.bf16.msra.mxu0 %v202_v1  ;;  %v845_v38 = vld [vmem:[%s1131_s1 + $0x8] sm:$0xf]  ;;  %v852_v39 = vld [vmem:[%s1131_s1 + $0xc] sm:$0xf]  ;;  %v230_v40 = vsel %vm200_vm0, %v176_v37, 0  ;;  %vm1019_vm3 = vmor %vm259_vm1, %vm260_vm2  ;;  %vm193_vm4 = vcmask 64512  }
   0xe   : > { %s974_s19 = scalar_lea.vmem %s1130_s0, %s916_s16  ;;  %v333_v41 = vsel %vm200_vm0, %v845_v38, 0  ;;  %v382_v42 = vsel %vm200_vm0, %v852_v39, 0  ;;  %v863_v52 = vld [vmem:[%s1131_s1 + $0x10] sm:$0xf]  ;;  %v881_v53 = vld [vmem:[%s1131_s1 + $0x18] sm:$0xf] }
   0xf   : > { %v839_v2 = vld [vmem:[%s974_s19 + $0x20] sm:$0xf]  ;;  %v910_v3 = vld [vmem:[%s974_s19 + $0x2c] sm:$0xf0]  ;;  %v855_v5 = vld [vmem:[%s974_s19 + $0x8] sm:$0xf]  ;;  %342 = vmatpush.bf16.msra.mxu2 %v333_v41  ;;  %391 = vmatpush.bf16.msra.mxu3 %v382_v42 }
  0x10   : > { %v978_v4 = vor.u32 %v910_v3, %v839_v2  ;;  %v911_v6 = vld [vmem:[%s974_s19 + $0x14] sm:$0xf0]  ;;  %v884_v8 = vld [vmem:[%s974_s19 + $0x10] sm:$0xf]  ;;  %v913_v9 = vld [vmem:[%s974_s19 + $0x1c] sm:$0xf0] }
  0x11   : > { %v856_v7 = vor.u32 %v911_v6, %v855_v5  ;;  %v835_v10 = vld [vmem:[%s974_s19] sm:$0xf]  ;;  %v909_v11 = vld [vmem:[%s974_s19 + $0xc] sm:$0xf0]  ;;  %v987_v12 = vor.u32 %v913_v9, %v884_v8  ;;  %v859_v13 = vld [vmem:[%s974_s19 + $0x28] sm:$0xf]  ;;  %239 = vmatpush.bf16.msrb.mxu1 %v230_v40 }
  0x12   : > { %191 = vrot.lane.b32.xlu0 %v978_v4, %s935_s20  ;;  %v912_v14 = vld [vmem:[%s974_s19 + $0x34] sm:$0xf0]  ;;  %v992_v15 = vor.u32 %v909_v11, %v835_v10  ;;  %v888_v16 = vld [vmem:[%s974_s19 + $0x30] sm:$0xf]  ;;  %v914_v17 = vld [vmem:[%s974_s19 + $0x3c] sm:$0xf0] }
  0x13   : > { %409 = vrot.lane.b32.xlu1 %v856_v7, %s935_s20  ;;  %600 = vrot.lane.b32.xlu2 %v987_v12, %s935_s20  ;;  %v996_v18 = vor.u32 %v912_v14, %v859_v13  ;;  %v998_v19 = vor.u32 %v914_v17, %v888_v16  ;;  %v251_v20 = vld [vmem:[%s974_s19] sm:$0xf]  ;;  %v253_v21 = vld [vmem:[%s974_s19 + $0x10] sm:$0xf]  ;;  %v420_v55 = vsel %vm200_vm0, %v863_v52, 0  ;;  %v573_v56 = vsel %vm200_vm0, %v881_v53, 0 }
  0x14   : > { %v263_v22 = vshrl.u32 %v251_v20, 16  ;;  %v266_v23 = vshll.u32 %v251_v20, 16  ;;  %v277_v24 = vshrl.u32 %v253_v21, 16  ;;  %v280_v25 = vshll.u32 %v253_v21, 16  ;;  %v252_v30 = vld [vmem:[%s974_s19 + $0x4] sm:$0x1]  ;;  %861 = vmatmul.msk.bf16.vlgmr.msra.gmra.mxu3 %vm193_vm4, %v856_v7  ;;  %429 = vmatpush.bf16.msrb.mxu0 %v420_v55 }
  0x15   : > { %v254_v31 = vld [vmem:[%s974_s19 + $0x14] sm:$0x1]  ;;  %v272_v33 = vshll.u32 %v252_v30, 16  ;;  %v255_v54 = vld [vmem:[%s974_s19 + $0x20] sm:$0xf]  ;;  %582 = vmatpush.bf16.msrb.mxu2 %v573_v56  ;;  %s908_s14 = sshll.u32 %s1137_s13, 3 }
  0x16   : > { %v265_v26 = vrot.slane %v263_v22, 4  ;;  %v268_v27 = vrot.slane %v266_v23, 5  ;;  %v279_v28 = vrot.slane %v277_v24, 4  ;;  %v282_v29 = vrot.slane %v280_v25, 5  ;;  %v257_v57 = vld [vmem:[%s974_s19 + $0x30] sm:$0xf]  ;;  %s1117_s17 = scalar_lea.vmem %s1133_s3, %s908_s14 }
  0x17   : > { %v286_v35 = vshll.u32 %v254_v31, 16  ;;  %v274_v44 = vrot.slane %v272_v33, 5  ;;  %v291_v58 = vshrl.u32 %v255_v54, 16  ;;  %v294_v59 = vshll.u32 %v255_v54, 16  ;;  %v256_v0 = vld [vmem:[%s974_s19 + $0x24] sm:$0x1] }
  0x18   : > { %v269_v32 = vor.u32 %v268_v27, %v265_v26  ;;  %v283_v34 = vor.u32 %v282_v29, %v279_v28  ;;  %v305_v60 = vshrl.u32 %v257_v57, 16  ;;  %v308_v61 = vshll.u32 %v257_v57, 16  ;;  %v258_v1 = vld [vmem:[%s974_s19 + $0x34] sm:$0x1]  ;;  %v892_v13 = vld [vmem:[%s1131_s1 + $0x1c] sm:$0xf] }
  0x19   : > { %v288_v46 = vrot.slane %v286_v35, 5  ;;  %v293_v62 = vrot.slane %v291_v58, 4  ;;  %v296_v63 = vrot.slane %v294_v59, 5  ;;  %v300_v6 = vshll.u32 %v256_v0, 16  ;;  %v874_v24 = vld [vmem:[%s1131_s1 + $0x14] sm:$0xf] }
  0x1a   : > { %189 = vrot.lane.b32.xlu0 %v992_v15, %s935_s20  ;;  %v270_v36 = vrot.slane %v269_v32, 4  ;;  %v284_v45 = vrot.slane %v283_v34, 4  ;;  %v307_v2 = vrot.slane %v305_v60, 4  ;;  %v310_v3 = vrot.slane %v308_v61, 5  ;;  %v903_v27 = vld [vmem:[%s1131_s1 + $0x20] sm:$0xf] }
  0x1b   : > { %411 = vrot.lane.b32.xlu1 %v996_v18, %s935_s20  ;;  %602 = vrot.lane.b32.xlu2 %v998_v19, %s935_s20  ;;  %v297_v5 = vor.u32 %v296_v63, %v293_v62  ;;  %v314_v7 = vshll.u32 %v258_v1, 16  ;;  %v302_v10 = vrot.slane %v300_v6, 5  ;;  %v611_v16 = vsel %vm200_vm0, %v892_v13, 0  ;;  %v866_v30 = vld [vmem:[%s974_s19 + $0x8] sm:$0xf] }
  0x1c   : > { %v275_v47 = vsel %vm1019_vm3, %v270_v36, %v274_v44  ;;  %v289_v48 = vsel %vm1019_vm3, %v284_v45, %v288_v46  ;;  %v311_v8 = vor.u32 %v310_v3, %v307_v2  ;;  %620 = vmatpush.bf16.msrb.mxu3 %v611_v16  ;;  %v524_v25 = vsel %vm200_vm0, %v874_v24, 0  ;;  %v868_v31 = vld [vmem:[%s974_s19 + $0x18] sm:$0xf]  ;;  %v869_v42 = vld [vmem:[%s974_s19 + $0x1c] sm:$0x1] }
  0x1d   : > { %v320_v49 = vunpack.c.l.b16 %v275_v47  ;;  %v321_v50 = vunpack.c.l.b16 %v289_v48  ;;  %v298_v9 = vrot.slane %v297_v5, 4  ;;  %v316_v11 = vrot.slane %v314_v7, 5  ;;  %v895_v44 = vld [vmem:[%s974_s19 + $0x10] sm:$0xf]  ;;  %v897_v45 = vld [vmem:[%s974_s19 + $0x20] sm:$0xf] }
  0x1e   : > { %v312_v14 = vrot.slane %v311_v8, 4  ;;  %v454_v32 = vshrl.u32 %v866_v30, 16  ;;  %v457_v33 = vshll.u32 %v866_v30, 16  ;;  %v468_v34 = vshrl.u32 %v868_v31, 16  ;;  %v896_v60 = vld [vmem:[%s974_s19 + $0x14] sm:$0x1] }
  0x1f   : > { %v324_v51 = vpack.c.b16 %v321_v50, %v320_v49  ;;  %v303_v17 = vsel %vm1019_vm3, %v298_v9, %v302_v10  ;;  %v471_v35 = vshll.u32 %v868_v31, 16  ;;  %v477_v48 = vshll.u32 %v869_v42, 16  ;;  %v898_v61 = vld [vmem:[%s974_s19 + $0x24] sm:$0x1]  ;;  %v870_v62 = vld [vmem:[%s974_s19 + $0x28] sm:$0xf] }
  0x20   : > { %v317_v20 = vsel %vm1019_vm3, %v312_v14, %v316_v11  ;;  %v322_v21 = vunpack.c.l.b16 %v303_v17  ;;  %v456_v38 = vrot.slane %v454_v32, 4  ;;  %v459_v39 = vrot.slane %v457_v33, 5  ;;  %v872_v63 = vld [vmem:[%s974_s19 + $0x38] sm:$0xf] }
  0x21   : > { %846 = vmatmul.msk.bf16.vlgmr.msra.gmra.mxu2 %vm193_vm4, %v324_v51  ;;  %v323_v22 = vunpack.c.l.b16 %v317_v20  ;;  %v470_v40 = vrot.slane %v468_v34, 4  ;;  %v473_v41 = vrot.slane %v471_v35, 5  ;;  %v645_v49 = vshrl.u32 %v895_v44, 16 }
  0x22   : > { %v648_v50 = vshll.u32 %v895_v44, 16  ;;  %v659_v51 = vshrl.u32 %v897_v45, 16  ;;  %v662_v52 = vshll.u32 %v897_v45, 16  ;;  %v479_v56 = vrot.slane %v477_v48, 5  ;;  %v900_v48 = vld [vmem:[%s974_s19 + $0x34] sm:$0x1] }
  0x23   : > { %v325_v23 = vpack.c.b16 %v323_v22, %v322_v21  ;;  %v474_v47 = vor.u32 %v473_v41, %v470_v40  ;;  %v647_v57 = vrot.slane %v645_v49, 4  ;;  %v654_v3 = vshll.u32 %v896_v60, 16  ;;  %v902_v49 = vld [vmem:[%s974_s19 + $0x44] sm:$0x1] }
  0x24   : > { %862 = vmatmul.msk.bf16.gmra.mxu3 %vm193_vm4, %v996_v18  ;;  %v715_v18 = vsel %vm200_vm0, %v903_v27, 0  ;;  %v650_v58 = vrot.slane %v648_v50, 5  ;;  %v661_v59 = vrot.slane %v659_v51, 4  ;;  %v668_v6 = vshll.u32 %v898_v61, 16  ;;  %v899_v27 = vld [vmem:[%s974_s19 + $0x30] sm:$0xf] }
  0x25   : > { %v475_v55 = vrot.slane %v474_v47, 4  ;;  %v482_v7 = vshrl.u32 %v870_v62, 16  ;;  %v485_v8 = vshll.u32 %v870_v62, 16  ;;  %v496_v9 = vshrl.u32 %v872_v63, 16 }
  0x26   : > { %v651_v2 = vor.u32 %v650_v58, %v647_v57  ;;  %v656_v16 = vrot.slane %v654_v3, 5  ;;  %v670_v20 = vrot.slane %v668_v6, 5  ;;  %v673_v35 = vshrl.u32 %v899_v27, 16 }
  0x27   : > { %v480_v1 = vsel %vm1019_vm3, %v475_v55, %v479_v56  ;;  %v484_v21 = vrot.slane %v482_v7, 4  ;;  %v487_v22 = vrot.slane %v485_v8, 5  ;;  %v696_v56 = vshll.u32 %v902_v49, 16 }
  0x28   : > { %v512_v13 = vunpack.c.l.b16 %v480_v1  ;;  %v652_v14 = vrot.slane %v651_v2, 4  ;;  %v675_v45 = vrot.slane %v673_v35, 4  ;;  %vm764_vm6 = vcmask 123904  }
  0x29   : > { %v488_v31 = vor.u32 %v487_v22, %v484_v21  ;;  %v698_v61 = vrot.slane %v696_v56, 5 }
  0x2b   : > { %v489_v41 = vrot.slane %v488_v31, 4 }
  0x31   : > { %847 = vmatmul.msk.bf16.gmra.mxu2 %vm193_vm4, %v325_v23  ;;  %v498_v23 = vrot.slane %v496_v9, 4 }
  0x41   : > { %890 = vmatmul.msk.bf16.vlgmr.msrb.gmra.mxu2 %vm193_vm4, %v987_v12  ;;  %v867_v12 = vld [vmem:[%s974_s19 + $0xc] sm:$0x1] }
  0x42   : > { %v463_v46 = vshll.u32 %v867_v12, 16 }
  0x44   : > { %v465_v54 = vrot.slane %v463_v46, 5 }
  0x51   : > { %891 = vmatmul.msk.bf16.gmra.mxu2 %vm193_vm4, %v998_v19  ;;  %v664_v19 = vrot.slane %v662_v52, 5 }
  0x53   : > { %v665_v5 = vor.u32 %v664_v19, %v661_v59 }
  0x55   : > { %v666_v17 = vrot.slane %v665_v5, 4 }
  0x57   : > { %v671_v30 = vsel %vm1019_vm3, %v666_v17, %v670_v20 }
  0x58   : > { %v703_v40 = vunpack.c.l.b16 %v671_v30 }
  0x6d   : > { %v601_v28 = vpop.permute.xlu2 %600 }
  0x6e   : > { %893 = vmatmul.msk.bf16.vlgmr.msrb.gmra.mxu3 %vm193_vm4, %v601_v28  ;;  %v901_v28 = vld [vmem:[%s974_s19 + $0x40] sm:$0xf] }
  0x75   : > { %v603_v36 = vpop.permute.xlu2 %602 }
  0x7e   : > { %894 = vmatmul.msk.bf16.gmra.mxu3 %vm193_vm4, %v603_v36  ;;  %v676_v36 = vshll.u32 %v899_v27, 16 }
  0x84   : > { %v192_v26 = vpop.permute.xlu0 %191 }
  0x85   : > { %842 = vmatmul.msk.bf16.vlgmr.msra.gmra.mxu1 %vm193_vm4, %v192_v26  ;;  %v410_v37 = vpop.permute.xlu1 %409  ;;  %v873_v26 = vld [vmem:[%s974_s19 + $0x3c] sm:$0x1] }
  0x86   : > { %533 = vmatpush.bf16.msra.mxu1 %v524_v25  ;;  %v871_v25 = vld [vmem:[%s974_s19 + $0x2c] sm:$0x1]  ;;  %v505_v34 = vshll.u32 %v873_v26, 16 }
  0x87   : > { %v491_v32 = vshll.u32 %v871_v25, 16 }
  0x88   : > { %v507_v44 = vrot.slane %v505_v34, 5 }
  0x89   : > { %v493_v12 = vrot.slane %v491_v32, 5 }
  0x8b   : > { %v494_v51 = vsel %vm1019_vm3, %v489_v41, %v493_v12  ;;  %v926_v12 = vld [vmem:[%s1132_s2] ss:$0 sm:$0xff] }
  0x8c   : > { %v190_v29 = vpop.permute.xlu0 %189  ;;  %v513_v57 = vunpack.c.l.b16 %v494_v51 }
  0x8d   : > { %841 = vmatmul.msk.bf16.vlgmr.msra.gmra.mxu0 %vm193_vm4, %v190_v29  ;;  %v412_v10 = vpop.permute.xlu1 %411  ;;  %v657_v29 = vsel %vm1019_vm3, %v652_v14, %v656_v16 }
  0x8e   : > { %724 = vmatpush.bf16.msra.mxu0 %v715_v18 }
  0x95   : > { %843 = vmatmul.msk.bf16.vlgmr.msrb.gmra.mxu1 %vm193_vm4, %v992_v15  ;;  %v460_v15 = vor.u32 %v459_v39, %v456_v38  ;;  %v690_v38 = vshll.u32 %v901_v28, 16  ;;  %v702_v39 = vunpack.c.l.b16 %v657_v29 }
  0x97   : > { %v461_v53 = vrot.slane %v460_v15, 4  ;;  %v678_v15 = vrot.slane %v676_v36, 5  ;;  %v692_v47 = vrot.slane %v690_v38, 5  ;;  %v706_v50 = vpack.c.b16 %v703_v40, %v702_v39  ;;  %v393_v7 = vpop.f32.mrf.mxu3 }
  0x99   : > { %v466_v0 = vsel %vm1019_vm3, %v461_v53, %v465_v54  ;;  %v679_v53 = vor.u32 %v678_v15, %v675_v45  ;;  %v682_v54 = vshll.u32 %v900_v48, 16 }
  0x9a   : > { %v511_v11 = vunpack.c.l.b16 %v466_v0 }
  0x9b   : > { %v680_v59 = vrot.slane %v679_v53, 4  ;;  %v684_v19 = vrot.slane %v682_v54, 5 }
  0x9c   : > { %v515_v18 = vpack.c.b16 %v512_v13, %v511_v11 }
  0x9d   : > { %864 = vmatmul.msk.bf16.vlgmr.msrb.gmra.mxu0 %vm193_vm4, %v410_v37  ;;  %v687_v37 = vshrl.u32 %v901_v28, 16 }
  0x9f   : > { %v689_v46 = vrot.slane %v687_v37, 4  ;;  %v395_v13 = vpop.f32.mrf.mxu3 }
  0xa1   : > { %v693_v55 = vor.u32 %v692_v47, %v689_v46 }
  0xa3   : > { %v694_v60 = vrot.slane %v693_v55, 4 }
  0xa4   : > { %v344_v6 = vpop.f32.mrf.mxu2 }
  0xa5   : > { %844 = vmatmul.msk.bf16.gmra.mxu1 %vm193_vm4, %v978_v4  ;;  %v499_v4 = vshll.u32 %v872_v63, 16  ;;  %v685_v63 = vsel %vm1019_vm3, %v680_v59, %v684_v19  ;;  %v699_v0 = vsel %vm1019_vm3, %v694_v60, %v698_v61 }
  0xa6   : > { %v704_v1 = vunpack.c.l.b16 %v685_v63  ;;  %v705_v2 = vunpack.c.l.b16 %v699_v0 }
  0xa7   : > { %v501_v24 = vrot.slane %v499_v4, 5  ;;  %v398_v17 = vpop.f32.mrf.mxu3 }
  0xa8   : > { %v707_v3 = vpack.c.b16 %v705_v2, %v704_v1 }
  0xa9   : > { %v502_v33 = vor.u32 %v501_v24, %v498_v23 }
  0xab   : > { %v503_v42 = vrot.slane %v502_v33, 4 }
  0xac   : > { %v346_v4 = vpop.f32.mrf.mxu2 }
  0xad   : > { %865 = vmatmul.msk.bf16.gmra.mxu0 %vm193_vm4, %v412_v10  ;;  %v508_v52 = vsel %vm1019_vm3, %v503_v42, %v507_v44 }
  0xae   : > { %v514_v58 = vunpack.c.l.b16 %v508_v52 }
  0xaf   : > { %v400_v24 = vpop.f32.mrf.mxu3 }
  0xb0   : > { %v516_v62 = vpack.c.b16 %v514_v58, %v513_v57 }
  0xb4   : > { %v349_v14 = vpop.f32.mrf.mxu2 }
  0xb5   : > { %875 = vmatmul.msk.bf16.vlgmr.msra.gmra.mxu1 %vm193_vm4, %v515_v18 }
  0xbc   : > { %v351_v22 = vpop.f32.mrf.mxu2 }
  0xbd   : > { %904 = vmatmul.msk.bf16.vlgmr.msra.gmra.mxu0 %vm193_vm4, %v706_v50 }
  0xc4   : > { %v584_v28 = vpop.f32.mrf.mxu2 }
  0xc5   : > { %876 = vmatmul.msk.bf16.gmra.mxu1 %vm193_vm4, %v516_v62 }
  0xcc   : > { %v586_v39 = vpop.f32.mrf.mxu2 }
  0xcd   : > { %905 = vmatmul.msk.bf16.gmra.mxu0 %vm193_vm4, %v707_v3 }
  0xd4   : > { %v589_v55 = vpop.f32.mrf.mxu2 }
  0xf1   : > { %v622_v31 = vpop.f32.mrf.mxu3 }
  0xf9   : > { %v624_v47 = vpop.f32.mrf.mxu3 }
 0x101   : > { %v627_v0 = vpop.f32.mrf.mxu3 }
 0x102   : > { %v218_v5 = vpop.f32.mrf.mxu1 }
 0x10a   : > { %v213_v8 = vpop.f32.mrf.mxu0  ;;  %v220_v9 = vpop.f32.mrf.mxu1 }
 0x112   : > { %v215_v10 = vpop.f32.mrf.mxu0  ;;  %v241_v11 = vpop.f32.mrf.mxu1 }
 0x113   : > { %v242_v23 = vadd.f32 %v241_v11, %v213_v8  ;;  %v591_v11 = vpop.f32.mrf.mxu2 }
 0x115   : > { %v354_v27 = vadd.f32 %v344_v6, %v242_v23 }
 0x117   : > { %v403_v29 = vadd.f32 %v393_v7, %v354_v27 }
 0x11a   : > { %v243_v16 = vpop.f32.mrf.mxu1  ;;  %v431_v43 = vpop.f32.mrf.mxu0 }
 0x11b   : > { %v244_v18 = vadd.f32 %v243_v16, %v215_v10  ;;  %v441_v30 = vadd.f32 %v431_v43, %v403_v29  ;;  %v629_v43 = vpop.f32.mrf.mxu3 }
 0x11d   : > { %v355_v34 = vadd.f32 %v346_v4, %v244_v18 }
 0x11f   : > { %v404_v38 = vadd.f32 %v395_v13, %v355_v34 }
 0x122   : > { %v246_v20 = vpop.f32.mrf.mxu1  ;;  %v433_v21 = vpop.f32.mrf.mxu0 }
 0x123   : > { %v247_v37 = vadd.f32 %v246_v20, %v218_v5  ;;  %v442_v40 = vadd.f32 %v433_v21, %v404_v38 }
 0x125   : > { %v356_v45 = vadd.f32 %v349_v14, %v247_v37 }
 0x127   : > { %v405_v51 = vadd.f32 %v398_v17, %v356_v45 }
 0x12a   : > { %v248_v25 = vpop.f32.mrf.mxu1  ;;  %v436_v26 = vpop.f32.mrf.mxu0 }
 0x12b   : > { %v249_v50 = vadd.f32 %v248_v25, %v220_v9  ;;  %v443_v53 = vadd.f32 %v436_v26, %v405_v51 }
 0x12d   : > { %v357_v19 = vadd.f32 %v351_v22, %v249_v50 }
 0x12f   : > { %v406_v1 = vadd.f32 %v400_v24, %v357_v19 }
 0x132   : > { %v438_v32 = vpop.f32.mrf.mxu0  ;;  %v535_v33 = vpop.f32.mrf.mxu1 }
 0x133   : > { %v545_v35 = vadd.f32 %v535_v33, %v441_v30  ;;  %v444_v3 = vadd.f32 %v438_v32, %v406_v1 }
 0x135   : > { %v594_v36 = vadd.f32 %v584_v28, %v545_v35 }
 0x137   : > { %v632_v41 = vadd.f32 %v622_v31, %v594_v36 }
 0x13a   : > { %v537_v42 = vpop.f32.mrf.mxu1  ;;  %v726_v44 = vpop.f32.mrf.mxu0 }
 0x13b   : > { %v546_v15 = vadd.f32 %v537_v42, %v442_v40  ;;  %v736_v46 = vadd.f32 %v726_v44, %v632_v41 }
 0x13d   : > { %v595_v48 = vadd.f32 %v586_v39, %v546_v15  ;;  %v744_v49 = vadd.f32 %v926_v12, %v736_v46 }
 0x13f   : > { %vm748_vm5 = vcmp.ge.f32.partialorder %v744_v49, 0.0  ;;  %v752_v52 = vmul.f32 0.2, %v744_v49  ;;  %v633_v56 = vadd.f32 %v624_v47, %v595_v48 }
 0x141   : > { %v756_v54 = vsel %vm748_vm5, %v744_v49, %v752_v52 }
 0x142   : > { %v760_v57 = vpack.c.bf16 %v756_v54, %v756_v54  ;;  %v540_v58 = vpop.f32.mrf.mxu1  ;;  %v728_v59 = vpop.f32.mrf.mxu0 }
 0x143   : > { %v547_v60 = vadd.f32 %v540_v58, %v443_v53  ;;  %v737_v61 = vadd.f32 %v728_v59, %v633_v56 }
 0x144   : > { %765 = vst.msk [vmem:[%s1117_s17] sm:$0x3] %vm764_vm6, %v760_v57 }
 0x145   : > { %v596_v62 = vadd.f32 %v589_v55, %v547_v60  ;;  %v745_v63 = vadd.f32 %v926_v12, %v737_v61 }
 0x147   : > { %vm749_vm7 = vcmp.ge.f32.partialorder %v745_v63, 0.0  ;;  %v753_v2 = vmul.f32 0.2, %v745_v63  ;;  %v634_v6 = vadd.f32 %v627_v0, %v596_v62 }
 0x149   : > { %v757_v5 = vsel %vm749_vm7, %v745_v63, %v753_v2 }
 0x14a   : > { %v761_v7 = vpack.c.bf16 %v757_v5, %v757_v5  ;;  %v542_v8 = vpop.f32.mrf.mxu1  ;;  %v731_v9 = vpop.f32.mrf.mxu0 }
 0x14b   : > { %v548_v4 = vadd.f32 %v542_v8, %v444_v3  ;;  %v738_v10 = vadd.f32 %v731_v9, %v634_v6 }
 0x14c   : > { %766 = vst.msk [vmem:[%s1117_s17 + $0x2] sm:$0x3] %vm764_vm6, %v761_v7 }
 0x14d   : > { %v597_v13 = vadd.f32 %v591_v11, %v548_v4  ;;  %v746_v14 = vadd.f32 %v926_v12, %v738_v10 }
 0x14f   : > { %vm750_vm8 = vcmp.ge.f32.partialorder %v746_v14, 0.0  ;;  %v754_v16 = vmul.f32 0.2, %v746_v14  ;;  %v635_v20 = vadd.f32 %v629_v43, %v597_v13 }
 0x151   : > { %v758_v17 = vsel %vm750_vm8, %v746_v14, %v754_v16 }
 0x152   : > { %v762_v21 = vpack.c.bf16 %v758_v17, %v758_v17  ;;  %v733_v22 = vpop.f32.mrf.mxu0 }
 0x153   : > { %v739_v23 = vadd.f32 %v733_v22, %v635_v20 }
 0x154   : > { %767 = vst.msk [vmem:[%s1117_s17 + $0x4] sm:$0x3] %vm764_vm6, %v762_v21 }
 0x155   : > { %v747_v24 = vadd.f32 %v926_v12, %v739_v23 }
 0x157   : > { %vm751_vm9 = vcmp.ge.f32.partialorder %v747_v24, 0.0  ;;  %v755_v25 = vmul.f32 0.2, %v747_v24 }
 0x159   : > { %v759_v26 = vsel %vm751_vm9, %v747_v24, %v755_v25 }
 0x15a   : > { %v763_v27 = vpack.c.bf16 %v759_v26, %v759_v26 }
 0x15c   : > { %768 = vst.msk [vmem:[%s1117_s17 + $0x6] sm:$0x3] %vm764_vm6, %v763_v27 }
 0x15d PF: > { %s13_s12 = sadd.s32 1, %s933_s12  }
 0x15e   : > { %p10_p4 = scmp.ge.s32.totalorder %s13_s12, 4  }
 0x160   :  { %12 = sbr.rel (!%p10_p4) target bundleno = 1 (0x1), region = 72 }

// kernel: _lambda_.5
= control target key start
LH: loop header
LB: loop body
LE: loop exit
PB: predicated region body
PF: predicated region fallthrough
CT: control target
= control target key end

     0   :  { %s1495_s12 = smov 0   ;;  %s1879_s0 = inlined_call_operand.vmem [shape: bf16[2,9,2,9,6], index: 0, kind: input, shape index: {}]   ;;  %s1880_s1 = inlined_call_operand.vmem [shape: bf16[9,3,8], index: 1, kind: input, shape index: {}]   ;;  %s1881_s2 = inlined_call_operand.vmem [shape: f32[1,8], index: 2, kind: input, shape index: {}]   ;;  %s1882_s3 = inlined_call_operand.vmem [shape: bf16[2,8,8,8], index: 3, kind: output, shape index: {}]  }
   0x1 LB: > { %s1287_s13 = sadd.s32 4294967295, %s1471_s12   ;;  %p1291_p0 = scmp.ge.s32.totalorder %s1471_s12, 1  ;;  %s1471_s12 = sphi %s1495_s12, %s13_s12  }
   0x2   : > { %p137_p1 = scmp.lt.s32.totalorder %s1471_s12, 3 }
   0x4   : > { %p138_p2 = pnand %p1291_p0, %p137_p1 }
   0x5   : > { %p161_p3 = scmp.lt.s32.totalorder (!%p138_p2), %s1287_s13, 1  ;;  %s1474_s20 = smov (!%p138_p2), 125  }
   0x6   : > { %141 = sbr.rel (%p138_p2) target bundleno = 421 (0x1a5), region = 32 }
   0xb   : > { %s1886_s13 = smov (!%p161_p3, %s1287_s13), 1  ;;  %v1295_v0 = vld [vmem:[%s1880_s1 + $0x2] sm:$0x3]  ;;  %vm224_vm0 = vcmask 1040384   ;;  %vm225_vm1 = vcmask 1041408   ;;  %v1473_v1 = vmov 65535  }
   0xc   : > { %v226_v2 = vsel %vm224_vm0, 4294967295, %v1473_v1  ;;  %s1453_s16 = smul.u32 144, %s1886_s13  ;;  %v1320_v37 = vld [vmem:[%s1880_s1 + $0x4] sm:$0x3]  ;;  %v1333_v40 = vld [vmem:[%s1880_s1 + $0x6] sm:$0x3] }
   0xd   : > { %v1509_v3 = vsel %vm225_vm1, %v226_v2, 0  ;;  %v180_v41 = vld [vmem:[%s1880_s1] sm:$0x3]  ;;  %v1354_v46 = vld [vmem:[%s1880_s1 + $0x8] sm:$0x3]  ;;  %vm211_vm2 = vcmask 23552  }
   0xe   : > { %v229_v4 = vand.u32 %v1295_v0, %v1509_v3  ;;  %s1515_s19 = scalar_lea.vmem %s1879_s0, %s1453_s16  ;;  %v462_v39 = vand.u32 %v1320_v37, %v1509_v3  ;;  %v545_v42 = vand.u32 %v1333_v40, %v1509_v3  ;;  %v273_v43 = vand.u32 %v1509_v3, %v180_v41  ;;  %v1388_v58 = vld [vmem:[%s1880_s1 + $0xc] sm:$0x3]  ;;  %v1375_v63 = vld [vmem:[%s1880_s1 + $0xa] sm:$0x3]  ;;  %s1437_s14 = sshll.u32 %s1886_s13, 5 }
   0xf   : > { %v1306_v5 = vld [vmem:[%s1515_s19 + $0x40] sm:$0xf]  ;;  %v1440_v6 = vld [vmem:[%s1515_s19 + $0x4c] sm:$0xf0]  ;;  %v1336_v11 = vld [vmem:[%s1515_s19 + $0x8] sm:$0xf]  ;;  %v607_v47 = vand.u32 %v1354_v46, %v1509_v3  ;;  %v884_v0 = vand.u32 %v1388_v58, %v1509_v3  ;;  %v801_v1 = vand.u32 %v1375_v63, %v1509_v3  ;;  %s1828_s17 = scalar_lea.vmem %s1882_s3, %s1437_s14 }
  0x10   : > { %v1302_v7 = vld [vmem:[%s1515_s19 + $0x20] sm:$0xf]  ;;  %1450 = vmatpush.bf16.msra.mxu1 %v229_v4  ;;  %1451 = vmatpush.bf16.msra.mxu2 %v229_v4  ;;  %v1520_v8 = vor.u32 %v1440_v6, %v1306_v5  ;;  %v1439_v9 = vld [vmem:[%s1515_s19 + $0x2c] sm:$0xf0]  ;;  %v1442_v12 = vld [vmem:[%s1515_s19 + $0x14] sm:$0xf0] }
  0x11   : > { %238 = vmatpush.bf16.msra.mxu0 %v229_v4  ;;  %1452 = vmatpush.bf16.msra.mxu3 %v229_v4  ;;  %v1523_v10 = vor.u32 %v1439_v9, %v1302_v7  ;;  %v1310_v13 = vld [vmem:[%s1515_s19 + $0x60] sm:$0xf]  ;;  %v1441_v14 = vld [vmem:[%s1515_s19 + $0x6c] sm:$0xf0]  ;;  %v1533_v15 = vor.u32 %v1442_v12, %v1336_v11  ;;  %v1340_v19 = vld [vmem:[%s1515_s19 + $0x28] sm:$0xf] }
  0x12   : > { %207 = vrot.lane.b32.xlu0 %v1520_v8, %s1474_s20  ;;  %v1298_v16 = vld [vmem:[%s1515_s19] sm:$0xf]  ;;  %v1438_v17 = vld [vmem:[%s1515_s19 + $0xc] sm:$0xf0]  ;;  %v1539_v18 = vor.u32 %v1441_v14, %v1310_v13  ;;  %v1443_v20 = vld [vmem:[%s1515_s19 + $0x34] sm:$0xf0] }
  0x13   : > { %205 = vrot.lane.b32.xlu1 %v1523_v10, %s1474_s20  ;;  %586 = vrot.lane.b32.xlu2 %v1533_v15, %s1474_s20  ;;  %v1543_v21 = vor.u32 %v1438_v17, %v1298_v16  ;;  %v1545_v22 = vor.u32 %v1443_v20, %v1340_v19  ;;  %v1344_v23 = vld [vmem:[%s1515_s19 + $0x48] sm:$0xf]  ;;  %v1444_v24 = vld [vmem:[%s1515_s19 + $0x54] sm:$0xf0]  ;;  %vm320_vm3 = vsmask.f32 3328 }
  0x14   : > { %v1348_v25 = vld [vmem:[%s1515_s19 + $0x68] sm:$0xf]  ;;  %v1445_v26 = vld [vmem:[%s1515_s19 + $0x74] sm:$0xf0]  ;;  %v1557_v27 = vor.u32 %v1444_v24, %v1344_v23  ;;  %v1391_v28 = vld [vmem:[%s1515_s19 + $0x10] sm:$0xf]  ;;  %471 = vmatpush.bf16.msrb.mxu2 %v462_v39  ;;  %282 = vmatpush.bf16.msrb.mxu1 %v273_v43 }
  0x15   : > { %v1446_v29 = vld [vmem:[%s1515_s19 + $0x1c] sm:$0xf0]  ;;  %v1561_v30 = vor.u32 %v1445_v26, %v1348_v25  ;;  %v1395_v32 = vld [vmem:[%s1515_s19 + $0x30] sm:$0xf]  ;;  %554 = vmatpush.bf16.msrb.mxu3 %v545_v42  ;;  %616 = vmatpush.bf16.msrb.mxu0 %v607_v47  ;;  %v305_v56 = vld [vmem:[%s1515_s19 + $0x4] sm:$0x1] }
  0x16   : > { %v1563_v31 = vor.u32 %v1446_v29, %v1391_v28  ;;  %v1447_v33 = vld [vmem:[%s1515_s19 + $0x3c] sm:$0xf0]  ;;  %v1399_v35 = vld [vmem:[%s1515_s19 + $0x50] sm:$0xf]  ;;  %v307_v57 = vld [vmem:[%s1515_s19 + $0x14] sm:$0x1] }
  0x17   : > { %v1573_v34 = vor.u32 %v1447_v33, %v1395_v32  ;;  %v1448_v36 = vld [vmem:[%s1515_s19 + $0x5c] sm:$0xf0]  ;;  %v306_v45 = vld [vmem:[%s1515_s19 + $0x10] sm:$0xf]  ;;  %v333_v60 = vshll.u32 %v305_v56, 16  ;;  %v347_v62 = vshll.u32 %v307_v57, 16 }
  0x18   : > { %v1582_v38 = vor.u32 %v1448_v36, %v1399_v35  ;;  %v304_v44 = vld [vmem:[%s1515_s19] sm:$0xf]  ;;  %v338_v50 = vshrl.u32 %v306_v45, 16  ;;  %v341_v51 = vshll.u32 %v306_v45, 16  ;;  %vm321_vm4 = vsmask.f32 7440 }
  0x19   : > { %v324_v48 = vshrl.u32 %v304_v44, 16  ;;  %v327_v49 = vshll.u32 %v304_v44, 16  ;;  %v335_v5 = vrot.slane %v333_v60, 5  ;;  %v349_v7 = vrot.slane %v347_v62, 5  ;;  %vm1612_vm5 = vmor %vm320_vm3, %vm321_vm4  ;;  %v308_v12 = vld [vmem:[%s1515_s19 + $0x20] sm:$0xf] }
  0x1a   : > { %209 = vrot.lane.b32.xlu0 %v1539_v18, %s1474_s20  ;;  %v340_v54 = vrot.slane %v338_v50, 4  ;;  %v343_v55 = vrot.slane %v341_v51, 5  ;;  %v310_v13 = vld [vmem:[%s1515_s19 + $0x30] sm:$0xf]  ;;  %v1409_v14 = vld [vmem:[%s1880_s1 + $0xe] sm:$0x3] }
  0x1b   : > { %203 = vrot.lane.b32.xlu1 %v1543_v21, %s1474_s20  ;;  %588 = vrot.lane.b32.xlu2 %v1545_v22, %s1474_s20  ;;  %v326_v52 = vrot.slane %v324_v48, 4  ;;  %v329_v53 = vrot.slane %v327_v49, 5  ;;  %v1430_v19 = vld [vmem:[%s1880_s1 + $0x10] sm:$0x3]  ;;  %v352_v20 = vshrl.u32 %v308_v12, 16  ;;  %v355_v23 = vshll.u32 %v308_v12, 16 }
  0x1c   : > { %v344_v61 = vor.u32 %v343_v55, %v340_v54  ;;  %v366_v24 = vshrl.u32 %v310_v13, 16  ;;  %v369_v25 = vshll.u32 %v310_v13, 16  ;;  %v946_v26 = vand.u32 %v1409_v14, %v1509_v3  ;;  %v309_v36 = vld [vmem:[%s1515_s19 + $0x24] sm:$0x1]  ;;  %v311_v42 = vld [vmem:[%s1515_s19 + $0x34] sm:$0x1] }
  0x1d   : > { %v330_v59 = vor.u32 %v329_v53, %v326_v52  ;;  %v1140_v28 = vand.u32 %v1430_v19, %v1509_v3  ;;  %v354_v37 = vrot.slane %v352_v20, 4  ;;  %v357_v39 = vrot.slane %v355_v23, 5  ;;  %v1403_v43 = vld [vmem:[%s1515_s19 + $0x70] sm:$0xf]  ;;  %v1449_v44 = vld [vmem:[%s1515_s19 + $0x7c] sm:$0xf0] }
  0x1e   : > { %v345_v6 = vrot.slane %v344_v61, 4  ;;  %v368_v40 = vrot.slane %v366_v24, 4  ;;  %v371_v41 = vrot.slane %v369_v25, 5  ;;  %v1637_v3 = vor.u32 %v1449_v44, %v1403_v43  ;;  %v312_v54 = vld [vmem:[%s1515_s19 + $0x40] sm:$0xf] }
  0x1f   : > { %v331_v4 = vrot.slane %v330_v59, 4  ;;  %v358_v46 = vor.u32 %v357_v39, %v354_v37  ;;  %v361_v47 = vshll.u32 %v309_v36, 16  ;;  %v375_v49 = vshll.u32 %v311_v42, 16  ;;  %v314_v55 = vld [vmem:[%s1515_s19 + $0x50] sm:$0xf] }
  0x20   : > { %v350_v17 = vsel %vm1612_vm5, %v345_v6, %v349_v7  ;;  %v372_v48 = vor.u32 %v371_v41, %v368_v40  ;;  %v380_v58 = vshrl.u32 %v312_v54, 16  ;;  %v383_v59 = vshll.u32 %v312_v54, 16  ;;  %v315_v6 = vld [vmem:[%s1515_s19 + $0x54] sm:$0x1]  ;;  %v317_v39 = vld [vmem:[%s1515_s19 + $0x64] sm:$0x1] }
  0x21   : > { %v336_v16 = vsel %vm1612_vm5, %v331_v4, %v335_v5  ;;  %v438_v33 = vunpack.c.l.b16 %v350_v17  ;;  %v359_v50 = vrot.slane %v358_v46, 4  ;;  %v363_v51 = vrot.slane %v361_v47, 5  ;;  %v313_v5 = vld [vmem:[%s1515_s19 + $0x44] sm:$0x1]  ;;  %v318_v17 = vld [vmem:[%s1515_s19 + $0x70] sm:$0xf] }
  0x22   : > { %590 = vrot.lane.b32.xlu0 %v1557_v27, %s1474_s20  ;;  %v437_v32 = vunpack.c.l.b16 %v336_v16  ;;  %v373_v52 = vrot.slane %v372_v48, 4  ;;  %v377_v53 = vrot.slane %v375_v49, 5  ;;  %v394_v60 = vshrl.u32 %v314_v55, 16  ;;  %v316_v16 = vld [vmem:[%s1515_s19 + $0x60] sm:$0xf] }
  0x23   : > { %592 = vrot.lane.b32.xlu1 %v1561_v30, %s1474_s20  ;;  %925 = vrot.lane.b32.xlu2 %v1563_v31, %s1474_s20  ;;  %v364_v56 = vsel %vm1612_vm5, %v359_v50, %v363_v51  ;;  %v397_v61 = vshll.u32 %v314_v55, 16  ;;  %v389_v12 = vshll.u32 %v313_v5, 16  ;;  %v403_v14 = vshll.u32 %v315_v6, 16  ;;  %v319_v40 = vld [vmem:[%s1515_s19 + $0x74] sm:$0x1] }
  0x24   : > { %v445_v45 = vpack.c.b16 %v438_v33, %v437_v32  ;;  %v378_v57 = vsel %vm1612_vm5, %v373_v52, %v377_v53  ;;  %v408_v24 = vshrl.u32 %v316_v16, 16  ;;  %v411_v25 = vshll.u32 %v316_v16, 16  ;;  %v1359_v52 = vld [vmem:[%s1515_s19 + $0x8] sm:$0xf]  ;;  %v1361_v53 = vld [vmem:[%s1515_s19 + $0x18] sm:$0xf] }
  0x25   : > { %v440_v63 = vunpack.c.l.b16 %v378_v57  ;;  %v399_v4 = vrot.slane %v397_v61, 5  ;;  %v391_v19 = vrot.slane %v389_v12, 5  ;;  %v405_v23 = vrot.slane %v403_v14, 5 }
  0x26   : > { %v413_v36 = vrot.slane %v411_v25, 5  ;;  %v417_v44 = vshll.u32 %v317_v39, 16  ;;  %v431_v46 = vshll.u32 %v319_v40, 16  ;;  %v663_v55 = vshrl.u32 %v1359_v52, 16 }
  0x27   : > { %v677_v57 = vshrl.u32 %v1361_v53, 16  ;;  %vm1223_vm7 = vcmask 60416  }
  0x28   : > { %v419_v49 = vrot.slane %v417_v44, 5  ;;  %v433_v51 = vrot.slane %v431_v46, 5 }
  0x2a   : > { %927 = vrot.lane.b32.xlu0 %v1573_v34, %s1474_s20 }
  0x2b   : > { %929 = vrot.lane.b32.xlu1 %v1582_v38, %s1474_s20  ;;  %931 = vrot.lane.b32.xlu2 %v1637_v3, %s1474_s20 }
  0x6d   : > { %v587_v62 = vpop.permute.xlu2 %586 }
  0x75   : > { %v589_v33 = vpop.permute.xlu2 %588 }
  0x84   : > { %v208_v2 = vpop.permute.xlu0 %207 }
  0x85   : > { %v206_v9 = vpop.permute.xlu1 %205  ;;  %1314 = vmatmul.msk.bf16.vlgmr.msra.gmra.mxu2 %vm211_vm2, %v208_v2  ;;  %v396_v2 = vrot.slane %v394_v60, 4 }
  0x86   : > { %1313 = vmatmul.msk.bf16.vlgmr.msra.gmra.mxu1 %vm211_vm2, %v206_v9  ;;  %893 = vmatpush.bf16.msra.mxu2 %v884_v0  ;;  %v382_v0 = vrot.slane %v380_v58, 4  ;;  %v680_v58 = vshll.u32 %v1361_v53, 16  ;;  %v1364_v53 = vld [vmem:[%s1515_s19 + $0x2c] sm:$0x1] }
  0x87   : > { %810 = vmatpush.bf16.msra.mxu1 %v801_v1  ;;  %v385_v1 = vrot.slane %v383_v59, 5  ;;  %v400_v13 = vor.u32 %v399_v4, %v396_v2  ;;  %v1414_v2 = vld [vmem:[%s1515_s19 + $0x10] sm:$0xf]  ;;  %v1416_v4 = vld [vmem:[%s1515_s19 + $0x20] sm:$0xf] }
  0x88   : > { %v1005_v14 = vshll.u32 %v1414_v2, 16  ;;  %v1016_v16 = vshrl.u32 %v1416_v4, 16 }
  0x89   : > { %v386_v9 = vor.u32 %v385_v1, %v382_v0  ;;  %v401_v20 = vrot.slane %v400_v13, 4  ;;  %v1360_v0 = vld [vmem:[%s1515_s19 + $0xc] sm:$0x1]  ;;  %v1362_v1 = vld [vmem:[%s1515_s19 + $0x1c] sm:$0x1]  ;;  %v1002_v13 = vshrl.u32 %v1414_v2, 16 }
  0x8a   : > { %v686_v12 = vshll.u32 %v1362_v1, 16  ;;  %v1018_v25 = vrot.slane %v1016_v16, 4  ;;  %v1369_v16 = vld [vmem:[%s1515_s19 + $0x58] sm:$0xf] }
  0x8b   : > { %v406_v32 = vsel %vm1612_vm5, %v401_v20, %v405_v23  ;;  %v1004_v23 = vrot.slane %v1002_v13, 4 }
  0x8c   : > { %v210_v29 = vpop.permute.xlu0 %209  ;;  %v442_v42 = vunpack.c.l.b16 %v406_v32  ;;  %v688_v20 = vrot.slane %v686_v12, 5  ;;  %v1363_v32 = vld [vmem:[%s1515_s19 + $0x28] sm:$0xf] }
  0x8d   : > { %v204_v35 = vpop.permute.xlu1 %203  ;;  %1315 = vmatmul.msk.bf16.vlgmr.msra.gmra.mxu3 %vm211_vm2, %v210_v29 }
  0x8e   : > { %1312 = vmatmul.msk.bf16.vlgmr.msra.gmra.mxu0 %vm211_vm2, %v204_v35  ;;  %955 = vmatpush.bf16.msra.mxu3 %v946_v26  ;;  %v422_v26 = vshrl.u32 %v318_v17, 16  ;;  %v410_v35 = vrot.slane %v408_v24, 4  ;;  %v1007_v24 = vrot.slane %v1005_v14, 5  ;;  %v1367_v14 = vld [vmem:[%s1515_s19 + $0x48] sm:$0xf] }
  0x8f   : > { %1149 = vmatpush.bf16.msra.mxu0 %v1140_v28  ;;  %v425_v28 = vshll.u32 %v318_v17, 16  ;;  %v1019_v17 = vshll.u32 %v1416_v4, 16 }
  0x90   : > { %v414_v43 = vor.u32 %v413_v36, %v410_v35 }
  0x91   : > { %v427_v37 = vrot.slane %v425_v28, 5  ;;  %v1415_v28 = vld [vmem:[%s1515_s19 + $0x14] sm:$0x1] }
  0x92   : > { %v415_v48 = vrot.slane %v414_v43, 4 }
  0x94   : > { %v591_v59 = vpop.permute.xlu0 %590 }
  0x95   : > { %1321 = vmatmul.msk.bf16.vlgmr.msrb.gmra.mxu2 %vm211_vm2, %v445_v45  ;;  %v593_v44 = vpop.permute.xlu1 %592 }
  0x96   : > { %1316 = vmatmul.msk.bf16.vlgmr.msrb.gmra.mxu1 %vm211_vm2, %v1543_v21  ;;  %v439_v21 = vunpack.c.l.b16 %v364_v56  ;;  %v666_v56 = vshll.u32 %v1359_v52, 16 }
  0x98   : > { %v446_v7 = vpack.c.b16 %v440_v63, %v439_v21  ;;  %v668_v21 = vrot.slane %v666_v56, 5  ;;  %v679_v63 = vrot.slane %v677_v57, 4  ;;  %v1366_v57 = vld [vmem:[%s1515_s19 + $0x3c] sm:$0x1] }
  0x99   : > { %v714_v1 = vshll.u32 %v1366_v57, 16 }
  0x9d   : > { %1350 = vmatmul.msk.bf16.vlgmr.msrb.gmra.mxu3 %vm211_vm2, %v1533_v15  ;;  %v387_v15 = vrot.slane %v386_v9, 4 }
  0x9e   : > { %1355 = vmatmul.msk.bf16.vlgmr.msrb.gmra.mxu0 %vm211_vm2, %v587_v62  ;;  %v665_v62 = vrot.slane %v663_v55, 4 }
  0x9f   : > { %v392_v29 = vsel %vm1612_vm5, %v387_v15, %v391_v19 }
  0xa0   : > { %v441_v41 = vunpack.c.l.b16 %v392_v29  ;;  %v669_v6 = vor.u32 %v668_v21, %v665_v62  ;;  %v1417_v29 = vld [vmem:[%s1515_s19 + $0x24] sm:$0x1] }
  0xa1   : > { %v1025_v40 = vshll.u32 %v1417_v29, 16  ;;  %v733_v29 = vshrl.u32 %v1369_v16, 16 }
  0xa2   : > { %v447_v47 = vpack.c.b16 %v442_v42, %v441_v41  ;;  %v691_v41 = vshrl.u32 %v1363_v32, 16  ;;  %v694_v42 = vshll.u32 %v1363_v32, 16  ;;  %v926_v32 = vpop.permute.xlu2 %925 }
  0xa3   : > { %v1027_v52 = vrot.slane %v1025_v40, 5 }
  0xa5   : > { %1322 = vmatmul.msk.bf16.gmra.mxu2 %vm211_vm2, %v446_v7  ;;  %v672_v7 = vshll.u32 %v1360_v0, 16 }
  0xa6   : > { %1317 = vmatmul.msk.bf16.gmra.mxu1 %vm211_vm2, %v1523_v10  ;;  %v424_v10 = vrot.slane %v422_v26, 4  ;;  %v1021_v26 = vrot.slane %v1019_v17, 5 }
  0xa7   : > { %v674_v15 = vrot.slane %v672_v7, 5  ;;  %v1419_v7 = vld [vmem:[%s1515_s19 + $0x34] sm:$0x1] }
  0xa8   : > { %v428_v45 = vor.u32 %v427_v37, %v424_v10  ;;  %v1008_v10 = vor.u32 %v1007_v24, %v1004_v23  ;;  %v1011_v37 = vshll.u32 %v1415_v28, 16  ;;  %v1022_v39 = vor.u32 %v1021_v26, %v1018_v25 }
  0xa9   : > { %v1039_v23 = vshll.u32 %v1419_v7, 16  ;;  %v719_v26 = vshrl.u32 %v1367_v14, 16  ;;  %v722_v28 = vshll.u32 %v1367_v14, 16  ;;  %v1373_v7 = vld [vmem:[%s1515_s19 + $0x78] sm:$0xf] }
  0xaa   : > { %v429_v50 = vrot.slane %v428_v45, 4 }
  0xac   : > { %v434_v54 = vsel %vm1612_vm5, %v429_v50, %v433_v51  ;;  %v1013_v50 = vrot.slane %v1011_v37, 5  ;;  %v1023_v51 = vrot.slane %v1022_v39, 4  ;;  %v1041_v37 = vrot.slane %v1039_v23, 5 }
  0xad   : > { %1351 = vmatmul.msk.bf16.gmra.mxu3 %vm211_vm2, %v1545_v22  ;;  %v420_v22 = vsel %vm1612_vm5, %v415_v48, %v419_v49  ;;  %v444_v61 = vunpack.c.l.b16 %v434_v54  ;;  %v1420_v48 = vld [vmem:[%s1515_s19 + $0x40] sm:$0xf]  ;;  %v1009_v49 = vrot.slane %v1008_v10, 4  ;;  %v696_v54 = vrot.slane %v694_v42, 5 }
  0xae   : > { %1356 = vmatmul.msk.bf16.gmra.mxu0 %vm211_vm2, %v589_v33  ;;  %v443_v60 = vunpack.c.l.b16 %v420_v22  ;;  %v1365_v33 = vld [vmem:[%s1515_s19 + $0x38] sm:$0xf]  ;;  %v693_v22 = vrot.slane %v691_v41, 4  ;;  %v1028_v21 = vsel %vm1612_vm5, %v1023_v51, %v1027_v52  ;;  %v721_v41 = vrot.slane %v719_v26, 4 }
  0xaf   : > { %v708_v43 = vshll.u32 %v1365_v33, 16  ;;  %v1116_v13 = vunpack.c.l.b16 %v1028_v21  ;;  %v724_v42 = vrot.slane %v722_v28, 5  ;;  %v764_v23 = vshll.u32 %v1373_v7, 16 }
  0xb0   : > { %v448_v5 = vpack.c.b16 %v444_v61, %v443_v60  ;;  %v1044_v60 = vshrl.u32 %v1420_v48, 16  ;;  %v1047_v61 = vshll.u32 %v1420_v48, 16  ;;  %v1422_v48 = vld [vmem:[%s1515_s19 + $0x50] sm:$0xf] }
  0xb1   : > { %v710_v56 = vrot.slane %v708_v43, 5  ;;  %v725_v52 = vor.u32 %v724_v42, %v721_v41 }
  0xb5   : > { %1323 = vmatmul.msk.bf16.gmra.mxu2 %vm211_vm2, %v447_v47  ;;  %v1418_v47 = vld [vmem:[%s1515_s19 + $0x30] sm:$0xf] }
  0xb6   : > { %1318 = vmatmul.msk.bf16.gmra.mxu1 %vm211_vm2, %v1520_v8  ;;  %v682_v8 = vrot.slane %v680_v58, 5  ;;  %v1030_v58 = vshrl.u32 %v1418_v47, 16 }
  0xb8   : > { %v683_v9 = vor.u32 %v682_v8, %v679_v63  ;;  %v697_v63 = vor.u32 %v696_v54, %v693_v22  ;;  %v700_v8 = vshll.u32 %v1364_v53, 16  ;;  %v1032_v2 = vrot.slane %v1030_v58, 4 }
  0xba   : > { %v684_v19 = vrot.slane %v683_v9, 4  ;;  %v1421_v9 = vld [vmem:[%s1515_s19 + $0x44] sm:$0x1]  ;;  %v698_v17 = vrot.slane %v697_v63, 4 }
  0xbb   : > { %v1053_v25 = vshll.u32 %v1421_v9, 16 }
  0xbc   : > { %v689_v36 = vsel %vm1612_vm5, %v684_v19, %v688_v20  ;;  %v716_v19 = vrot.slane %v714_v1, 5 }
  0xbd   : > { %1352 = vmatmul.msk.bf16.gmra.mxu3 %vm211_vm2, %v1557_v27  ;;  %v670_v27 = vrot.slane %v669_v6, 4  ;;  %v777_v46 = vunpack.c.l.b16 %v689_v36  ;;  %v1049_v6 = vrot.slane %v1047_v61, 5  ;;  %v1055_v40 = vrot.slane %v1053_v25, 5 }
  0xbe   : > { %1357 = vmatmul.msk.bf16.gmra.mxu0 %vm211_vm2, %v591_v59  ;;  %v1033_v59 = vshll.u32 %v1418_v47, 16 }
  0xbf   : > { %v675_v35 = vsel %vm1612_vm5, %v670_v27, %v674_v15  ;;  %v702_v27 = vrot.slane %v700_v8, 5 }
  0xc0   : > { %v776_v45 = vunpack.c.l.b16 %v675_v35  ;;  %v1035_v4 = vrot.slane %v1033_v59, 5 }
  0xc1   : > { %v703_v35 = vsel %vm1612_vm5, %v698_v17, %v702_v27  ;;  %v928_v27 = vpop.permute.xlu0 %927 }
  0xc2   : > { %v784_v62 = vpack.c.b16 %v777_v46, %v776_v45  ;;  %v1036_v20 = vor.u32 %v1035_v4, %v1032_v2  ;;  %v1370_v45 = vld [vmem:[%s1515_s19 + $0x5c] sm:$0x1]  ;;  %v778_v46 = vunpack.c.l.b16 %v703_v35  ;;  %v1423_v4 = vld [vmem:[%s1515_s19 + $0x54] sm:$0x1] }
  0xc3   : > { %v742_v54 = vshll.u32 %v1370_v45, 16 }
  0xc4   : > { %v1037_v10 = vrot.slane %v1036_v20, 4  ;;  %v761_v20 = vshrl.u32 %v1373_v7, 16 }
  0xc5   : > { %1324 = vmatmul.msk.bf16.gmra.mxu2 %vm211_vm2, %v448_v5  ;;  %v1046_v5 = vrot.slane %v1044_v60, 4  ;;  %v744_v63 = vrot.slane %v742_v54, 5 }
  0xc6   : > { %1319 = vmatmul.msk.bf16.gmra.mxu1 %vm211_vm2, %v1539_v18  ;;  %v705_v18 = vshrl.u32 %v1365_v33, 16  ;;  %v763_v35 = vrot.slane %v761_v20, 4 }
  0xc7   : > { %v1050_v24 = vor.u32 %v1049_v6, %v1046_v5  ;;  %v1425_v5 = vld [vmem:[%s1515_s19 + $0x64] sm:$0x1]  ;;  %v1371_v6 = vld [vmem:[%s1515_s19 + $0x68] sm:$0xf] }
  0xc8   : > { %v707_v55 = vrot.slane %v705_v18, 4  ;;  %v735_v18 = vrot.slane %v733_v29, 4  ;;  %v1081_v17 = vshll.u32 %v1425_v5, 16 }
  0xc9   : > { %v1051_v39 = vrot.slane %v1050_v24, 4 }
  0xca   : > { %v711_v0 = vor.u32 %v710_v56, %v707_v55  ;;  %v1058_v55 = vshrl.u32 %v1422_v48, 16  ;;  %v1061_v56 = vshll.u32 %v1422_v48, 16 }
  0xcb   : > { %v1056_v51 = vsel %vm1612_vm5, %v1051_v39, %v1055_v40  ;;  %v1426_v39 = vld [vmem:[%s1515_s19 + $0x70] sm:$0xf]  ;;  %v1428_v40 = vld [vmem:[%s1515_s19 + $0x80] sm:$0xf] }
  0xcc   : > { %v712_v15 = vrot.slane %v711_v0, 4  ;;  %v1118_v61 = vunpack.c.l.b16 %v1056_v51  ;;  %v1060_v8 = vrot.slane %v1058_v55, 4  ;;  %v1063_v0 = vrot.slane %v1061_v56, 5 }
  0xcd   : > { %1353 = vmatmul.msk.bf16.gmra.mxu3 %vm211_vm2, %v1561_v30  ;;  %v1014_v30 = vsel %vm1612_vm5, %v1009_v49, %v1013_v50  ;;  %v1424_v49 = vld [vmem:[%s1515_s19 + $0x60] sm:$0xf]  ;;  %v1042_v50 = vsel %vm1612_vm5, %v1037_v10, %v1041_v37  ;;  %v1372_v10 = vld [vmem:[%s1515_s19 + $0x6c] sm:$0x1]  ;;  %v1374_v37 = vld [vmem:[%s1515_s19 + $0x7c] sm:$0x1] }
  0xce   : > { %1358 = vmatmul.msk.bf16.gmra.mxu0 %vm211_vm2, %v593_v44  ;;  %v1115_v12 = vunpack.c.l.b16 %v1014_v30  ;;  %v717_v36 = vsel %vm1612_vm5, %v712_v15, %v716_v19  ;;  %v1368_v44 = vld [vmem:[%s1515_s19 + $0x4c] sm:$0x1]  ;;  %v1072_v57 = vshrl.u32 %v1424_v49, 16  ;;  %v1075_v58 = vshll.u32 %v1424_v49, 16 }
  0xcf   : > { %v779_v47 = vunpack.c.l.b16 %v717_v36  ;;  %v728_v53 = vshll.u32 %v1368_v44, 16  ;;  %v1117_v60 = vunpack.c.l.b16 %v1042_v50  ;;  %v1064_v14 = vor.u32 %v1063_v0, %v1060_v8 }
  0xd0   : > { %v1123_v33 = vpack.c.b16 %v1116_v13, %v1115_v12  ;;  %v1074_v1 = vrot.slane %v1072_v57, 4  ;;  %v1077_v2 = vrot.slane %v1075_v58, 5  ;;  %v747_v15 = vshrl.u32 %v1371_v6, 16 }
  0xd1   : > { %v785_v59 = vpack.c.b16 %v779_v47, %v778_v46  ;;  %v730_v30 = vrot.slane %v728_v53, 5  ;;  %v1124_v9 = vpack.c.b16 %v1118_v61, %v1117_v60  ;;  %v750_v19 = vshll.u32 %v1371_v6, 16  ;;  %v1427_v60 = vld [vmem:[%s1515_s19 + $0x74] sm:$0x1]  ;;  %v1429_v61 = vld [vmem:[%s1515_s19 + $0x84] sm:$0x1] }
  0xd2   : > { %v1065_v26 = vrot.slane %v1064_v14, 4  ;;  %v766_v36 = vrot.slane %v764_v23, 5  ;;  %v756_v44 = vshll.u32 %v1372_v10, 16  ;;  %v770_v46 = vshll.u32 %v1374_v37, 16 }
  0xd3   : > { %v1086_v47 = vshrl.u32 %v1426_v39, 16  ;;  %v1089_v48 = vshll.u32 %v1426_v39, 16  ;;  %v1100_v49 = vshrl.u32 %v1428_v40, 16  ;;  %v1103_v50 = vshll.u32 %v1428_v40, 16 }
  0xd4   : > { %v767_v45 = vor.u32 %v766_v36, %v763_v35  ;;  %v772_v55 = vrot.slane %v770_v46, 5  ;;  %v1095_v8 = vshll.u32 %v1427_v60, 16 }
  0xd5   : > { %1405 = vmatmul.msk.bf16.vlgmr.msra.gmra.mxu2 %vm211_vm2, %v1563_v31  ;;  %v736_v31 = vshll.u32 %v1369_v16, 16  ;;  %v1067_v16 = vshll.u32 %v1423_v4, 16  ;;  %v1088_v56 = vrot.slane %v1086_v47, 4  ;;  %v1091_v57 = vrot.slane %v1089_v48, 5 }
  0xd6   : > { %1376 = vmatmul.msk.bf16.vlgmr.msra.gmra.mxu1 %vm211_vm2, %v784_v62  ;;  %v726_v62 = vrot.slane %v725_v52, 4  ;;  %v768_v54 = vrot.slane %v767_v45, 4  ;;  %v1102_v58 = vrot.slane %v1100_v49, 4  ;;  %v1097_v6 = vrot.slane %v1095_v8, 5 }
  0xd7   : > { %v738_v43 = vrot.slane %v736_v31, 5  ;;  %v1069_v28 = vrot.slane %v1067_v16, 5  ;;  %v1083_v31 = vrot.slane %v1081_v17, 5 }
  0xd8   : > { %v731_v12 = vsel %vm1612_vm5, %v726_v62, %v730_v30  ;;  %v930_v62 = vpop.permute.xlu1 %929 }
  0xd9   : > { %v739_v22 = vor.u32 %v738_v43, %v735_v18  ;;  %v780_v24 = vunpack.c.l.b16 %v731_v12  ;;  %v1070_v42 = vsel %vm1612_vm5, %v1065_v26, %v1069_v28 }
  0xda   : > { %v1119_v51 = vunpack.c.l.b16 %v1070_v42 }
  0xdb   : > { %v740_v21 = vrot.slane %v739_v22, 4  ;;  %v758_v22 = vrot.slane %v756_v44, 5 }
  0xdd   : > { %1410 = vmatmul.msk.bf16.vlgmr.msra.gmra.mxu3 %vm211_vm2, %v926_v32  ;;  %v745_v13 = vsel %vm1612_vm5, %v740_v21, %v744_v63  ;;  %v749_v32 = vrot.slane %v747_v15, 4  ;;  %v1092_v63 = vor.u32 %v1091_v57, %v1088_v56  ;;  %v932_v15 = vpop.permute.xlu2 %931 }
  0xde   : > { %1431 = vmatmul.msk.bf16.vlgmr.msra.gmra.mxu0 %vm211_vm2, %v1123_v33  ;;  %v781_v25 = vunpack.c.l.b16 %v745_v13  ;;  %v752_v33 = vrot.slane %v750_v19, 5 }
  0xdf   : > { %v1093_v5 = vrot.slane %v1092_v63, 4 }
  0xe0   : > { %v786_v41 = vpack.c.b16 %v781_v25, %v780_v24  ;;  %v753_v43 = vor.u32 %v752_v33, %v749_v32 }
  0xe1   : > { %v1098_v14 = vsel %vm1612_vm5, %v1093_v5, %v1097_v6 }
  0xe2   : > { %v754_v53 = vrot.slane %v753_v43, 4 }
  0xe4   : > { %v759_v21 = vsel %vm1612_vm5, %v754_v53, %v758_v22 }
  0xe5   : > { %1406 = vmatmul.msk.bf16.gmra.mxu2 %vm211_vm2, %v1573_v34  ;;  %v1078_v34 = vor.u32 %v1077_v2, %v1074_v1  ;;  %v1109_v1 = vshll.u32 %v1429_v61, 16  ;;  %v782_v2 = vunpack.c.l.b16 %v759_v21 }
  0xe6   : > { %1377 = vmatmul.msk.bf16.gmra.mxu1 %vm211_vm2, %v785_v59  ;;  %v1105_v59 = vrot.slane %v1103_v50, 5 }
  0xe7   : > { %v1079_v29 = vrot.slane %v1078_v34, 4  ;;  %v1121_v34 = vunpack.c.l.b16 %v1098_v14 }
  0xe8   : > { %v1106_v0 = vor.u32 %v1105_v59, %v1102_v58 }
  0xe9   : > { %v1084_v18 = vsel %vm1612_vm5, %v1079_v29, %v1083_v31 }
  0xea   : > { %v1120_v52 = vunpack.c.l.b16 %v1084_v18  ;;  %v1107_v7 = vrot.slane %v1106_v0, 4 }
  0xec   : > { %v1125_v30 = vpack.c.b16 %v1120_v52, %v1119_v51 }
  0xed   : > { %1411 = vmatmul.msk.bf16.gmra.mxu3 %vm211_vm2, %v928_v27 }
  0xee   : > { %1432 = vmatmul.msk.bf16.gmra.mxu0 %vm211_vm2, %v1124_v9  ;;  %v1111_v9 = vrot.slane %v1109_v1, 5 }
  0xf0   : > { %v1112_v16 = vsel %vm1612_vm5, %v1107_v7, %v1111_v9  ;;  %v1820_v9 = vld [vmem:[%s1881_s2] ss:$0 sm:$0xff] }
  0xf1   : > { %v1122_v17 = vunpack.c.l.b16 %v1112_v16 }
  0xf3   : > { %v1126_v19 = vpack.c.b16 %v1122_v17, %v1121_v34 }
  0xf5   : > { %1407 = vmatmul.msk.bf16.gmra.mxu2 %vm211_vm2, %v1582_v38  ;;  %v773_v38 = vsel %vm1612_vm5, %v768_v54, %v772_v55 }
  0xf6   : > { %1378 = vmatmul.msk.bf16.gmra.mxu1 %vm211_vm2, %v786_v41  ;;  %v783_v4 = vunpack.c.l.b16 %v773_v38 }
  0xf8   : > { %v787_v12 = vpack.c.b16 %v783_v4, %v782_v2 }
  0xfd   : > { %1412 = vmatmul.msk.bf16.gmra.mxu3 %vm211_vm2, %v930_v62 }
  0xfe   : > { %1433 = vmatmul.msk.bf16.gmra.mxu0 %vm211_vm2, %v1125_v30 }
 0x103   : > { %v1760_v13 = vpop.f32.mrf.mxu1 }
 0x105   : > { %1408 = vmatmul.msk.bf16.gmra.mxu2 %vm211_vm2, %v1637_v3 }
 0x106   : > { %1379 = vmatmul.msk.bf16.gmra.mxu1 %vm211_vm2, %v787_v12 }
 0x108   : > { %v1769_v27 = vpop.f32.mrf.mxu2 }
 0x10b   : > { %v240_v20 = vpop.f32.mrf.mxu0  ;;  %v1771_v23 = vpop.f32.mrf.mxu1 }
 0x10d   : > { %1413 = vmatmul.msk.bf16.gmra.mxu3 %vm211_vm2, %v932_v15 }
 0x10e   : > { %1434 = vmatmul.msk.bf16.gmra.mxu0 %vm211_vm2, %v1126_v19 }
 0x110   : > { %v1775_v11 = vpop.f32.mrf.mxu2  ;;  %v1777_v24 = vpop.f32.mrf.mxu3 }
 0x113   : > { %v242_v3 = vpop.f32.mrf.mxu0  ;;  %v284_v25 = vpop.f32.mrf.mxu1 }
 0x114   : > { %v285_v57 = vadd.f32 %v284_v25, %v240_v20 }
 0x118   : > { %v1779_v26 = vpop.f32.mrf.mxu3  ;;  %v473_v28 = vpop.f32.mrf.mxu2 }
 0x119   : > { %v493_v60 = vadd.f32 %v473_v28, %v285_v57 }
 0x11b   : > { %v286_v29 = vpop.f32.mrf.mxu1  ;;  %v618_v31 = vpop.f32.mrf.mxu0 }
 0x11c   : > { %v287_v21 = vadd.f32 %v286_v29, %v242_v3 }
 0x120   : > { %v475_v32 = vpop.f32.mrf.mxu2  ;;  %v556_v33 = vpop.f32.mrf.mxu3 }
 0x121   : > { %v576_v61 = vadd.f32 %v556_v33, %v493_v60  ;;  %v494_v0 = vadd.f32 %v475_v32, %v287_v21 }
 0x123   : > { %v289_v35 = vpop.f32.mrf.mxu1  ;;  %v620_v36 = vpop.f32.mrf.mxu0  ;;  %v638_v38 = vadd.f32 %v618_v31, %v576_v61 }
 0x124   : > { %v290_v12 = vadd.f32 %v289_v35, %v1760_v13 }
 0x128   : > { %v478_v10 = vpop.f32.mrf.mxu2  ;;  %v558_v37 = vpop.f32.mrf.mxu3 }
 0x129   : > { %v577_v2 = vadd.f32 %v558_v37, %v494_v0  ;;  %v495_v15 = vadd.f32 %v478_v10, %v290_v12 }
 0x12b   : > { %v291_v39 = vpop.f32.mrf.mxu1  ;;  %v623_v40 = vpop.f32.mrf.mxu0  ;;  %v639_v14 = vadd.f32 %v620_v36, %v577_v2 }
 0x12c   : > { %v292_v35 = vadd.f32 %v291_v39, %v1771_v23 }
 0x130   : > { %v1781_v41 = vpop.f32.mrf.mxu2  ;;  %v561_v42 = vpop.f32.mrf.mxu3 }
 0x131   : > { %v578_v3 = vadd.f32 %v561_v42, %v495_v15  ;;  %v496_v57 = vadd.f32 %v1781_v41, %v292_v35 }
 0x133   : > { %v1783_v18 = vpop.f32.mrf.mxu1  ;;  %v1785_v43 = vpop.f32.mrf.mxu0  ;;  %v640_v36 = vadd.f32 %v623_v40, %v578_v3 }
 0x134   : > { %v295_v40 = vadd.f32 %v1783_v18, %v1769_v27 }
 0x138   : > { %v1787_v44 = vpop.f32.mrf.mxu2  ;;  %v563_v45 = vpop.f32.mrf.mxu3 }
 0x139   : > { %v579_v61 = vadd.f32 %v563_v45, %v496_v57  ;;  %v497_v45 = vadd.f32 %v1787_v44, %v295_v40 }
 0x13b   : > { %v1789_v46 = vpop.f32.mrf.mxu1  ;;  %v1791_v47 = vpop.f32.mrf.mxu0  ;;  %v641_v0 = vadd.f32 %v1785_v43, %v579_v61 }
 0x140   : > { %v1793_v48 = vpop.f32.mrf.mxu2  ;;  %v1795_v49 = vpop.f32.mrf.mxu3 }
 0x143   : > { %v1797_v50 = vpop.f32.mrf.mxu1  ;;  %v1799_v51 = vpop.f32.mrf.mxu0 }
 0x148   : > { %v1801_v52 = vpop.f32.mrf.mxu2  ;;  %v1803_v53 = vpop.f32.mrf.mxu3 }
 0x14b   : > { %v1805_v22 = vpop.f32.mrf.mxu1  ;;  %v1807_v54 = vpop.f32.mrf.mxu0 }
 0x150   : > { %v1809_v55 = vpop.f32.mrf.mxu2  ;;  %v1811_v56 = vpop.f32.mrf.mxu3 }
 0x153   : > { %v1813_v58 = vpop.f32.mrf.mxu0  ;;  %v812_v59 = vpop.f32.mrf.mxu1 }
 0x154   : > { %v832_v1 = vadd.f32 %v812_v59, %v638_v38 }
 0x158   : > { %v1815_v62 = vpop.f32.mrf.mxu3  ;;  %v895_v30 = vpop.f32.mrf.mxu2 }
 0x159   : > { %v915_v4 = vadd.f32 %v895_v30, %v832_v1 }
 0x15b   : > { %v814_v63 = vpop.f32.mrf.mxu1  ;;  %v1151_v8 = vpop.f32.mrf.mxu0 }
 0x15c   : > { %v833_v19 = vadd.f32 %v814_v63, %v639_v14 }
 0x160   : > { %v897_v5 = vpop.f32.mrf.mxu2  ;;  %v957_v6 = vpop.f32.mrf.mxu3 }
 0x161   : > { %v977_v7 = vadd.f32 %v957_v6, %v915_v4  ;;  %v916_v25 = vadd.f32 %v897_v5, %v833_v19  ;;  %v580_v6 = vadd.f32 %v1795_v49, %v497_v45 }
 0x163   : > { %v1171_v16 = vadd.f32 %v1151_v8, %v977_v7  ;;  %v817_v34 = vpop.f32.mrf.mxu1  ;;  %v1153_v17 = vpop.f32.mrf.mxu0 }
 0x164   : > { %v834_v59 = vadd.f32 %v817_v34, %v640_v36  ;;  %v297_v34 = vadd.f32 %v1789_v46, %v1775_v11 }
 0x165   : > { %v1183_v20 = vadd.f32 %v1820_v9, %v1171_v16 }
 0x166   : > { %v498_v19 = vadd.f32 %v1793_v48, %v297_v34 }
 0x167   : > { %vm1191_vm6 = vcmp.ge.f32.partialorder %v1183_v20, 0.0  ;;  %v1199_v28 = vmul.f32 0.2, %v1183_v20 }
 0x168   : > { %v900_v29 = vpop.f32.mrf.mxu2  ;;  %v959_v31 = vpop.f32.mrf.mxu3 }
 0x169   : > { %v1207_v13 = vsel %vm1191_vm6, %v1183_v20, %v1199_v28  ;;  %v978_v32 = vadd.f32 %v959_v31, %v916_v25  ;;  %v917_v30 = vadd.f32 %v900_v29, %v834_v59  ;;  %v581_v25 = vadd.f32 %v1803_v53, %v498_v19 }
 0x16a   : > { %v1215_v33 = vpack.c.bf16 %v1207_v13, %v1207_v13 }
 0x16b   : > { %v1172_v10 = vadd.f32 %v1153_v17, %v978_v32  ;;  %v819_v37 = vpop.f32.mrf.mxu1  ;;  %v1156_v42 = vpop.f32.mrf.mxu0  ;;  %v642_v17 = vadd.f32 %v1791_v47, %v580_v6  ;;  %v300_v32 = vadd.f32 %v1797_v50, %v1777_v24  ;;  %v643_v48 = vadd.f32 %v1799_v51, %v581_v25 }
 0x16c   : > { %1224 = vst.msk [vmem:[%s1828_s17] sm:$0xf] %vm1223_vm7, %v1215_v33  ;;  %v835_v4 = vadd.f32 %v819_v37, %v641_v0 }
 0x16d   : > { %v1184_v60 = vadd.f32 %v1820_v9, %v1172_v10  ;;  %v499_v35 = vadd.f32 %v1801_v52, %v300_v32 }
 0x16f   : > { %vm1192_vm8 = vcmp.ge.f32.partialorder %v1184_v60, 0.0  ;;  %v1200_v21 = vmul.f32 0.2, %v1184_v60  ;;  %v582_v37 = vadd.f32 %v1811_v56, %v499_v35 }
 0x170   : > { %v902_v38 = vpop.f32.mrf.mxu2  ;;  %v962_v63 = vpop.f32.mrf.mxu3 }
 0x171   : > { %v1208_v8 = vsel %vm1192_vm8, %v1184_v60, %v1200_v21  ;;  %v979_v23 = vadd.f32 %v962_v63, %v917_v30  ;;  %v918_v7 = vadd.f32 %v902_v38, %v835_v4  ;;  %v302_v30 = vadd.f32 %v1805_v22, %v1779_v26 }
 0x172   : > { %v1216_v39 = vpack.c.bf16 %v1208_v8, %v1208_v8  ;;  %v644_v52 = vadd.f32 %v1807_v54, %v582_v37 }
 0x173   : > { %v1173_v1 = vadd.f32 %v1156_v42, %v979_v23  ;;  %v1158_v41 = vpop.f32.mrf.mxu0  ;;  %v822_v2 = vpop.f32.mrf.mxu1  ;;  %v500_v56 = vadd.f32 %v1809_v55, %v302_v30 }
 0x174   : > { %1225 = vst.msk [vmem:[%s1828_s17 + $0x4] sm:$0xf] %vm1223_vm7, %v1216_v39  ;;  %v836_v49 = vadd.f32 %v822_v2, %v642_v17 }
 0x175   : > { %v1185_v5 = vadd.f32 %v1820_v9, %v1173_v1  ;;  %v583_v8 = vadd.f32 %v1815_v62, %v500_v56 }
 0x177   : > { %vm1193_vm9 = vcmp.ge.f32.partialorder %v1185_v5, 0.0  ;;  %v1201_v12 = vmul.f32 0.2, %v1185_v5 }
 0x178   : > { %v905_v14 = vpop.f32.mrf.mxu2  ;;  %v964_v27 = vpop.f32.mrf.mxu3 }
 0x179   : > { %v1209_v18 = vsel %vm1193_vm9, %v1185_v5, %v1201_v12  ;;  %v980_v43 = vadd.f32 %v964_v27, %v918_v7  ;;  %v919_v28 = vadd.f32 %v905_v14, %v836_v49 }
 0x17a   : > { %v1217_v16 = vpack.c.bf16 %v1209_v18, %v1209_v18 }
 0x17b   : > { %v1174_v15 = vadd.f32 %v1158_v41, %v980_v43  ;;  %v1161_v44 = vpop.f32.mrf.mxu0  ;;  %v824_v3 = vpop.f32.mrf.mxu1  ;;  %v645_v41 = vadd.f32 %v1813_v58, %v583_v8 }
 0x17c   : > { %1226 = vst.msk [vmem:[%s1828_s17 + $0x8] sm:$0xf] %vm1223_vm7, %v1217_v16  ;;  %v837_v36 = vadd.f32 %v824_v3, %v643_v48 }
 0x17d   : > { %v1186_v20 = vadd.f32 %v1820_v9, %v1174_v15 }
 0x17f   : > { %vm1194_vm10 = vcmp.ge.f32.partialorder %v1186_v20, 0.0  ;;  %v1202_v29 = vmul.f32 0.2, %v1186_v20 }
 0x180   : > { %v907_v31 = vpop.f32.mrf.mxu2  ;;  %v967_v11 = vpop.f32.mrf.mxu3 }
 0x181   : > { %v1210_v46 = vsel %vm1194_vm10, %v1186_v20, %v1202_v29  ;;  %v981_v47 = vadd.f32 %v967_v11, %v919_v28  ;;  %v920_v42 = vadd.f32 %v907_v31, %v837_v36 }
 0x182   : > { %v1218_v13 = vpack.c.bf16 %v1210_v46, %v1210_v46 }
 0x183   : > { %v1175_v33 = vadd.f32 %v1161_v44, %v981_v47  ;;  %v1163_v10 = vpop.f32.mrf.mxu0  ;;  %v827_v59 = vpop.f32.mrf.mxu1 }
 0x184   : > { %1227 = vst.msk [vmem:[%s1828_s17 + $0xc] sm:$0xf] %vm1223_vm7, %v1218_v13  ;;  %v838_v38 = vadd.f32 %v827_v59, %v644_v52 }
 0x185   : > { %v1187_v53 = vadd.f32 %v1820_v9, %v1175_v33 }
 0x187   : > { %vm1195_vm11 = vcmp.ge.f32.partialorder %v1187_v53, 0.0  ;;  %v1203_v57 = vmul.f32 0.2, %v1187_v53 }
 0x188   : > { %v969_v60 = vpop.f32.mrf.mxu3  ;;  %v910_v61 = vpop.f32.mrf.mxu2 }
 0x189   : > { %v1211_v24 = vsel %vm1195_vm11, %v1187_v53, %v1203_v57  ;;  %v982_v50 = vadd.f32 %v969_v60, %v920_v42  ;;  %v921_v23 = vadd.f32 %v910_v61, %v838_v38 }
 0x18a   : > { %v1219_v51 = vpack.c.bf16 %v1211_v24, %v1211_v24 }
 0x18b   : > { %v1176_v21 = vadd.f32 %v1163_v10, %v982_v50  ;;  %v1166_v40 = vpop.f32.mrf.mxu0  ;;  %v829_v54 = vpop.f32.mrf.mxu1 }
 0x18c   : > { %1228 = vst.msk [vmem:[%s1828_s17 + $0x10] sm:$0xf] %vm1223_vm7, %v1219_v51  ;;  %v839_v45 = vadd.f32 %v829_v54, %v645_v41 }
 0x18d   : > { %v1188_v63 = vadd.f32 %v1820_v9, %v1176_v21 }
 0x18f   : > { %vm1196_vm12 = vcmp.ge.f32.partialorder %v1188_v63, 0.0  ;;  %v1204_v39 = vmul.f32 0.2, %v1188_v63 }
 0x190   : > { %v972_v0 = vpop.f32.mrf.mxu3  ;;  %v912_v55 = vpop.f32.mrf.mxu2 }
 0x191   : > { %v1212_v1 = vsel %vm1196_vm12, %v1188_v63, %v1204_v39  ;;  %v983_v26 = vadd.f32 %v972_v0, %v921_v23  ;;  %v922_v62 = vadd.f32 %v912_v55, %v839_v45 }
 0x192   : > { %v1220_v22 = vpack.c.bf16 %v1212_v1, %v1212_v1 }
 0x193   : > { %v1177_v2 = vadd.f32 %v1166_v40, %v983_v26  ;;  %v1168_v27 = vpop.f32.mrf.mxu0 }
 0x194   : > { %1229 = vst.msk [vmem:[%s1828_s17 + $0x14] sm:$0xf] %vm1223_vm7, %v1220_v22 }
 0x195   : > { %v1189_v4 = vadd.f32 %v1820_v9, %v1177_v2 }
 0x197   : > { %vm1197_vm13 = vcmp.ge.f32.partialorder %v1189_v4, 0.0  ;;  %v1205_v5 = vmul.f32 0.2, %v1189_v4 }
 0x198   : > { %v974_v6 = vpop.f32.mrf.mxu3 }
 0x199   : > { %v1213_v7 = vsel %vm1197_vm13, %v1189_v4, %v1205_v5  ;;  %v984_v12 = vadd.f32 %v974_v6, %v922_v62 }
 0x19a   : > { %v1221_v14 = vpack.c.bf16 %v1213_v7, %v1213_v7 }
 0x19b   : > { %v1178_v18 = vadd.f32 %v1168_v27, %v984_v12 }
 0x19c   : > { %1230 = vst.msk [vmem:[%s1828_s17 + $0x18] sm:$0xf] %vm1223_vm7, %v1221_v14 }
 0x19d   : > { %v1190_v58 = vadd.f32 %v1820_v9, %v1178_v18 }
 0x19f   : > { %vm1198_vm14 = vcmp.ge.f32.partialorder %v1190_v58, 0.0  ;;  %v1206_v43 = vmul.f32 0.2, %v1190_v58 }
 0x1a1   : > { %v1214_v16 = vsel %vm1198_vm14, %v1190_v58, %v1206_v43 }
 0x1a2   : > { %v1222_v34 = vpack.c.bf16 %v1214_v16, %v1214_v16 }
 0x1a4   : > { %1231 = vst.msk [vmem:[%s1828_s17 + $0x1c] sm:$0xf] %vm1223_vm7, %v1222_v34 }
 0x1a5 PF: > { %s13_s12 = sadd.s32 1, %s1471_s12  }
 0x1a6   : > { %p10_p4 = scmp.ge.s32.totalorder %s13_s12, 4  }
 0x1a8   :  { %12 = sbr.rel (!%p10_p4) target bundleno = 1 (0x1), region = 72 }

// kernel: _lambda_.6
= control target key start
LH: loop header
LB: loop body
LE: loop exit
PB: predicated region body
PF: predicated region fallthrough
CT: control target
= control target key end

     0   :  { %s1703_s12 = smov 0   ;;  %s2158_s0 = inlined_call_operand.vmem [shape: bf16[2,10,10,8], index: 0, kind: input, shape index: {}]   ;;  %s2159_s1 = inlined_call_operand.vmem [shape: bf16[9,8,8], index: 1, kind: input, shape index: {}]   ;;  %s2160_s2 = inlined_call_operand.vmem [shape: f32[1,8], index: 2, kind: input, shape index: {}]   ;;  %s2161_s3 = inlined_call_operand.vmem [shape: bf16[2,8,8,8], index: 3, kind: output, shape index: {}]  }
   0x1 LB: > { %s1459_s13 = sadd.s32 4294967295, %s1681_s12   ;;  %p1463_p0 = scmp.ge.s32.totalorder %s1681_s12, 1  ;;  %s1681_s12 = sphi %s1703_s12, %s13_s12  }
   0x2   : > { %p137_p1 = scmp.lt.s32.totalorder %s1681_s12, 3 }
   0x4   : > { %p138_p2 = pnand %p1463_p0, %p137_p1 }
   0x5   : > { %p161_p3 = scmp.lt.s32.totalorder (!%p138_p2), %s1459_s13, 1 }
   0x6   : > { %141 = sbr.rel (%p138_p2) target bundleno = 320 (0x140), region = 32 }
   0xb   : > { %v1467_v0 = vld [vmem:[%s2159_s1 + $0x4] sm:$0xf]  ;;  %vm331_vm0 = vcmask 1043456   ;;  %v1500_v2 = vld [vmem:[%s2159_s1 + $0x8] sm:$0xf]  ;;  %s2167_s13 = smov (!%p161_p3, %s1459_s13), 1 }
   0xc   : > { %v333_v1 = vsel %vm331_vm0, %v1467_v0, 0  ;;  %v514_v3 = vsel %vm331_vm0, %v1500_v2, 0  ;;  %s1665_s18 = smul.u32 80, %s2167_s13  ;;  %v1513_v4 = vld [vmem:[%s2159_s1 + $0xc] sm:$0xf]  ;;  %vm318_vm3 = vcmask 64512  }
   0xd   : > { %1662 = vmatpush.bf16.msra.mxu1 %v333_v1  ;;  %1663 = vmatpush.bf16.msra.mxu2 %v333_v1  ;;  %v180_v5 = vld [vmem:[%s2159_s1] sm:$0xf]  ;;  %v597_v6 = vsel %vm331_vm0, %v1513_v4, 0  ;;  %v1550_v8 = vld [vmem:[%s2159_s1 + $0x10] sm:$0xf]  ;;  %vm452_vm5 = vcmask 1042432  }
   0xe   : > { %1664 = vmatpush.bf16.msra.mxu3 %v333_v1  ;;  %342 = vmatpush.bf16.msra.mxu0 %v333_v1  ;;  %v397_v7 = vsel %vm331_vm0, %v180_v5, 0  ;;  %s1736_s27 = scalar_lea.vmem %s2158_s0, %s1665_s18  ;;  %vm189_vm1 = vsmask.f32 3328  ;;  %vm190_vm2 = vsmask.f32 7440  ;;  %v791_v9 = vsel %vm331_vm0, %v1550_v8, 0 }
   0xf   : > { %v174_v10 = vld [vmem:[%s1736_s27 + $0x10] sm:$0xf]  ;;  %v175_v11 = vld [vmem:[%s1736_s27 + $0x18] sm:$0xf]  ;;  %v1742_v12 = vld [vmem:[%s1736_s27 + $0x14] sm:$0x1] }
  0x10   : > { %v1745_v13 = vld [vmem:[%s1736_s27 + $0x1c] sm:$0x1]  ;;  %v221_v14 = vshrl.u32 %v174_v10, 16  ;;  %v224_v15 = vshll.u32 %v174_v10, 16  ;;  %v230_v16 = vshll.u32 %v1742_v12, 16  ;;  %v235_v17 = vshrl.u32 %v175_v11, 16  ;;  %vm1761_vm4 = vmor %vm189_vm1, %vm190_vm2 }
  0x11   : > { %523 = vmatpush.bf16.msrb.mxu2 %v514_v3  ;;  %406 = vmatpush.bf16.msrb.mxu1 %v397_v7  ;;  %v238_v18 = vshll.u32 %v175_v11, 16  ;;  %v244_v19 = vshll.u32 %v1745_v13, 16  ;;  %v176_v20 = vld [vmem:[%s1736_s27 + $0x20] sm:$0xf]  ;;  %v177_v21 = vld [vmem:[%s1736_s27 + $0x28] sm:$0xf] }
  0x12   : > { %606 = vmatpush.bf16.msrb.mxu3 %v597_v6  ;;  %800 = vmatpush.bf16.msrb.mxu0 %v791_v9  ;;  %v223_v22 = vrot.slane %v221_v14, 4  ;;  %v226_v23 = vrot.slane %v224_v15, 5  ;;  %v232_v24 = vrot.slane %v230_v16, 5  ;;  %v237_v25 = vrot.slane %v235_v17, 4  ;;  %v1752_v26 = vld [vmem:[%s1736_s27 + $0x24] sm:$0x1] }
  0x13   : > { %v240_v27 = vrot.slane %v238_v18, 5  ;;  %v246_v28 = vrot.slane %v244_v19, 5  ;;  %v1755_v29 = vld [vmem:[%s1736_s27 + $0x2c] sm:$0x1]  ;;  %v249_v30 = vshrl.u32 %v176_v20, 16  ;;  %v252_v31 = vshll.u32 %v176_v20, 16 }
  0x14   : > { %v227_v32 = vor.u32 %v226_v23, %v223_v22  ;;  %v258_v33 = vshll.u32 %v1752_v26, 16  ;;  %v263_v34 = vshrl.u32 %v177_v21, 16  ;;  %v266_v35 = vshll.u32 %v177_v21, 16  ;;  %v178_v36 = vld [vmem:[%s1736_s27 + $0x30] sm:$0xf]  ;;  %s1649_s11 = sshll.u32 %s2167_s13, 5 }
  0x15   : > { %v241_v38 = vor.u32 %v240_v27, %v237_v25  ;;  %v251_v39 = vrot.slane %v249_v30, 4  ;;  %v254_v40 = vrot.slane %v252_v31, 5  ;;  %v272_v41 = vshll.u32 %v1755_v29, 16  ;;  %v1767_v46 = vld [vmem:[%s1736_s27 + $0x34] sm:$0x1]  ;;  %s2109_s16 = scalar_lea.vmem %s2161_s3, %s1649_s11 }
  0x16   : > { %v228_v42 = vrot.slane %v227_v32, 4  ;;  %v260_v43 = vrot.slane %v258_v33, 5  ;;  %v265_v44 = vrot.slane %v263_v34, 4  ;;  %v268_v45 = vrot.slane %v266_v35, 5  ;;  %v179_v53 = vld [vmem:[%s1736_s27 + $0x38] sm:$0xf] }
  0x17   : > { %v242_v47 = vrot.slane %v241_v38, 4  ;;  %v255_v48 = vor.u32 %v254_v40, %v251_v39  ;;  %v274_v49 = vrot.slane %v272_v41, 5  ;;  %v277_v50 = vshrl.u32 %v178_v36, 16  ;;  %v1773_v54 = vld [vmem:[%s1736_s27 + $0x3c] sm:$0x1] }
  0x18   : > { %vm453_vm6 = vcmask 1046532   ;;  %v233_v51 = vsel %vm1761_vm4, %v228_v42, %v232_v24  ;;  %v269_v52 = vor.u32 %v268_v45, %v265_v44  ;;  %v280_v55 = vshll.u32 %v178_v36, 16  ;;  %v172_v1 = vld [vmem:[%s1736_s27] sm:$0xf]  ;;  %v181_v6 = vld [vmem:[%s1736_s27 + $0x4] sm:$0x1] }
  0x19   : > { %v286_v56 = vshll.u32 %v1767_v46, 16  ;;  %v247_v57 = vsel %vm1761_vm4, %v242_v47, %v246_v28  ;;  %v308_v58 = vunpack.c.l.b16 %v233_v51  ;;  %v256_v59 = vrot.slane %v255_v48, 4  ;;  %v173_v11 = vld [vmem:[%s1736_s27 + $0x8] sm:$0xf]  ;;  %v182_v24 = vld [vmem:[%s1736_s27 + $0xc] sm:$0x1]  ;;  %vm1795_vm7 = vmor %vm452_vm5, %vm453_vm6 }
  0x1a   : > { %v279_v60 = vrot.slane %v277_v50, 4  ;;  %v309_v61 = vunpack.c.l.b16 %v247_v57  ;;  %v270_v62 = vrot.slane %v269_v52, 4  ;;  %v282_v63 = vrot.slane %v280_v55, 5  ;;  %v428_v33 = vld [vmem:[%s1736_s27] sm:$0xe] }
  0x1b   : > { %v288_v0 = vrot.slane %v286_v56, 5  ;;  %v261_v2 = vsel %vm1761_vm4, %v256_v59, %v260_v43  ;;  %v291_v3 = vshrl.u32 %v179_v53, 16  ;;  %v294_v4 = vshll.u32 %v179_v53, 16  ;;  %v429_v39 = vld [vmem:[%s1736_s27 + $0x8] sm:$0xe] }
  0x1c   : > { %v300_v5 = vshll.u32 %v1773_v54, 16  ;;  %v315_v7 = vpack.c.b16 %v309_v61, %v308_v58  ;;  %v275_v8 = vsel %vm1761_vm4, %v270_v62, %v274_v49  ;;  %v310_v9 = vunpack.c.l.b16 %v261_v2  ;;  %v1584_v45 = vld [vmem:[%s2159_s1 + $0x18] sm:$0xf]  ;;  %v1534_v55 = vld [vmem:[%s1736_s27 + $0x8] sm:$0xf] }
  0x1d   : > { %v283_v10 = vor.u32 %v282_v63, %v279_v60  ;;  %v311_v14 = vunpack.c.l.b16 %v275_v8  ;;  %v293_v15 = vrot.slane %v291_v3, 4  ;;  %v296_v16 = vrot.slane %v294_v4, 5  ;;  %v1536_v59 = vld [vmem:[%s1736_s27 + $0x10] sm:$0xf]  ;;  %v1814_v63 = vld [vmem:[%s1736_s27 + $0xc] sm:$0x1] }
  0x1e   : > { %v302_v17 = vrot.slane %v300_v5, 5  ;;  %1469 = vmatmul.msk.bf16.vlgmr.msra.gmra.mxu1 %vm318_vm3, %v315_v7  ;;  %v193_v19 = vshrl.u32 %v172_v1, 16  ;;  %v196_v20 = vshll.u32 %v172_v1, 16  ;;  %v202_v21 = vshll.u32 %v181_v6, 16  ;;  %v1474_v3 = vld [vmem:[%s1736_s27] sm:$0xf] }
  0x1f   : > { %v284_v18 = vrot.slane %v283_v10, 4  ;;  %v316_v22 = vpack.c.b16 %v311_v14, %v310_v9  ;;  %v297_v23 = vor.u32 %v296_v16, %v293_v15  ;;  %v207_v25 = vshrl.u32 %v173_v11, 16  ;;  %v1650_v4 = vld [vmem:[%s1736_s27 + $0x4] sm:$0xf0]  ;;  %v1571_v14 = vld [vmem:[%s2159_s1 + $0x14] sm:$0xf] }
  0x20   : > { %v210_v27 = vshll.u32 %v173_v11, 16  ;;  %v195_v30 = vrot.slane %v193_v19, 4  ;;  %v198_v31 = vrot.slane %v196_v20, 5  ;;  %v204_v32 = vrot.slane %v202_v21, 5  ;;  %v1621_v11 = vld [vmem:[%s2159_s1 + $0x1c] sm:$0xf] }
  0x21   : > { %v289_v28 = vsel %vm1761_vm4, %v284_v18, %v288_v0  ;;  %1470 = vmatmul.msk.bf16.vlgmr.msra.gmra.mxu2 %vm318_vm3, %v316_v22  ;;  %v298_v34 = vrot.slane %v297_v23, 4  ;;  %v209_v36 = vrot.slane %v207_v25, 4  ;;  %v216_v41 = vshll.u32 %v182_v24, 16  ;;  %v1817_v0 = vld [vmem:[%s1736_s27 + $0x14] sm:$0x1] }
  0x22   : > { %v312_v35 = vunpack.c.l.b16 %v289_v28  ;;  %v212_v38 = vrot.slane %v210_v27, 5  ;;  %v199_v40 = vor.u32 %v198_v31, %v195_v30  ;;  %v457_v42 = vrot.slane %v181_v6, 5  ;;  %v1642_v19 = vld [vmem:[%s2159_s1 + $0x20] sm:$0xf] }
  0x23   : > { %v461_v43 = vrot.slane %v182_v24, 5  ;;  %v303_v47 = vsel %vm1761_vm4, %v298_v34, %v302_v17  ;;  %v1492_v49 = vrot.slane %v428_v33, 9  ;;  %v218_v52 = vrot.slane %v216_v41, 5  ;;  %v1540_v41 = vld [vmem:[%s1736_s27 + $0x20] sm:$0xf] }
  0x24   : > { %v213_v48 = vor.u32 %v212_v38, %v209_v36  ;;  %v313_v50 = vunpack.c.l.b16 %v303_v47  ;;  %v200_v51 = vrot.slane %v199_v40, 4  ;;  %v1493_v53 = vrot.slane %v429_v39, 9  ;;  %v1538_v38 = vld [vmem:[%s1736_s27 + $0x18] sm:$0xf]  ;;  %v1654_v47 = vld [vmem:[%s1736_s27 + $0xc] sm:$0xf0] }
  0x25   : > { %v458_v57 = vsel %vm1795_vm7, %v1492_v49, %v457_v42  ;;  %v996_v58 = vsel %vm331_vm0, %v1584_v45, 0  ;;  %v653_v6 = vshrl.u32 %v1534_v55, 16  ;;  %v656_v9 = vshll.u32 %v1534_v55, 16  ;;  %v431_v40 = vld [vmem:[%s1736_s27 + $0x18] sm:$0xe] }
  0x26   : > { %v214_v56 = vrot.slane %v213_v48, 4  ;;  %v317_v60 = vpack.c.b16 %v313_v50, %v312_v35  ;;  %v205_v61 = vsel %vm1761_vm4, %v200_v51, %v204_v32  ;;  %v462_v62 = vsel %vm1795_vm7, %v1493_v53, %v461_v43  ;;  %1005 = vmatpush.bf16.msra.mxu2 %v996_v58  ;;  %v430_v35 = vld [vmem:[%s1736_s27 + $0x10] sm:$0xe]  ;;  %v1516_v45 = vld [vmem:[%s1736_s27 + $0x8] sm:$0xf] }
  0x27   : > { %v306_v2 = vunpack.c.l.b16 %v205_v61  ;;  %v489_v5 = vunpack.c.l.b16 %v458_v57  ;;  %v490_v8 = vunpack.c.l.b16 %v462_v62  ;;  %v667_v10 = vshrl.u32 %v1536_v59, 16 }
  0x28   : > { %v219_v1 = vsel %vm1761_vm4, %v214_v56, %v218_v52  ;;  %1471 = vmatmul.msk.bf16.vlgmr.msra.gmra.mxu3 %vm318_vm3, %v317_v60  ;;  %v655_v15 = vrot.slane %v653_v6, 4  ;;  %v662_v16 = vshll.u32 %v1814_v63, 16  ;;  %v670_v17 = vshll.u32 %v1536_v59, 16  ;;  %v1856_v60 = vld [vmem:[%s1736_s27 + $0x1c] sm:$0x1] }
  0x29   : > { %v307_v7 = vunpack.c.l.b16 %v219_v1  ;;  %v676_v18 = vshll.u32 %v1817_v0, 16  ;;  %v1475_v21 = vor.u32 %v1650_v4, %v1474_v3  ;;  %v658_v22 = vrot.slane %v656_v9, 5  ;;  %v1861_v4 = vld [vmem:[%s1736_s27 + $0x24] sm:$0x1] }
  0x2a   : > { %v669_v23 = vrot.slane %v667_v10, 4  ;;  %v672_v24 = vrot.slane %v670_v17, 5  ;;  %v1190_v27 = vsel %vm331_vm0, %v1621_v11, 0  ;;  %v913_v28 = vsel %vm331_vm0, %v1571_v14, 0  ;;  %v1542_v17 = vld [vmem:[%s1736_s27 + $0x28] sm:$0xf] }
  0x2b   : > { %v314_v20 = vpack.c.b16 %v307_v7, %v306_v2  ;;  %v659_v25 = vor.u32 %v658_v22, %v655_v15  ;;  %v1312_v30 = vsel %vm331_vm0, %v1642_v19, 0  ;;  %v497_v31 = vpack.c.b16 %v490_v8, %v489_v5  ;;  %1199 = vmatpush.bf16.msra.mxu3 %v1190_v27  ;;  %922 = vmatpush.bf16.msra.mxu1 %v913_v28  ;;  %v1651_v5 = vld [vmem:[%s1736_s27 + $0x14] sm:$0xf0]  ;;  %v1544_v22 = vld [vmem:[%s1736_s27 + $0x30] sm:$0xf] }
  0x2c   : > { %v664_v32 = vrot.slane %v662_v16, 5  ;;  %v673_v33 = vor.u32 %v672_v24, %v669_v23  ;;  %v678_v34 = vrot.slane %v676_v18, 5  ;;  %v1494_v42 = vrot.slane %v430_v35, 9  ;;  %v432_v23 = vld [vmem:[%s1736_s27 + $0x20] sm:$0xe] }
  0x2d   : > { %1468 = vmatmul.msk.bf16.vlgmr.msra.gmra.mxu0 %vm318_vm3, %v314_v20  ;;  %v660_v36 = vrot.slane %v659_v25, 4  ;;  %v465_v43 = vrot.slane %v1742_v12, 5  ;;  %v681_v50 = vshrl.u32 %v1538_v38, 16  ;;  %v684_v51 = vshll.u32 %v1538_v38, 16  ;;  %v433_v24 = vld [vmem:[%s1736_s27 + $0x28] sm:$0xe] }
  0x2e   : > { %1488 = vmatmul.msk.bf16.vlgmr.msrb.gmra.mxu1 %vm318_vm3, %v1475_v21  ;;  %1321 = vmatpush.bf16.msra.mxu0 %v1312_v30  ;;  %v674_v39 = vrot.slane %v673_v33, 4  ;;  %v1495_v52 = vrot.slane %v431_v40, 9  ;;  %v469_v53 = vrot.slane %v1745_v13, 5  ;;  %v695_v12 = vshrl.u32 %v1540_v41, 16  ;;  %v1478_v13 = vld [vmem:[%s1736_s27 + $0x10] sm:$0xf] }
  0x2f   : > { %v665_v48 = vsel %vm1761_vm4, %v660_v36, %v664_v32  ;;  %v698_v55 = vshll.u32 %v1540_v41, 16  ;;  %v1517_v56 = vor.u32 %v1654_v47, %v1516_v45  ;;  %v466_v59 = vsel %vm1795_vm7, %v1494_v42, %v465_v43  ;;  %v1520_v28 = vld [vmem:[%s1736_s27 + $0x18] sm:$0xf]  ;;  %v1655_v30 = vld [vmem:[%s1736_s27 + $0x1c] sm:$0xf0] }
  0x30   : > { %v679_v49 = vsel %vm1761_vm4, %v674_v39, %v678_v34  ;;  %v766_v57 = vunpack.c.l.b16 %v665_v48  ;;  %v683_v61 = vrot.slane %v681_v50, 4  ;;  %v686_v62 = vrot.slane %v684_v51, 5  ;;  %v1884_v47 = vld [vmem:[%s1736_s27 + $0x2c] sm:$0x1] }
  0x31   : > { %1501 = vmatmul.msk.bf16.vlgmr.msrb.gmra.mxu2 %vm318_vm3, %v497_v31  ;;  %v767_v58 = vunpack.c.l.b16 %v679_v49  ;;  %v697_v1 = vrot.slane %v695_v12, 4  ;;  %v700_v2 = vrot.slane %v698_v55, 5  ;;  %v470_v3 = vsel %vm1795_vm7, %v1495_v52, %v469_v53  ;;  %v1482_v52 = vld [vmem:[%s1736_s27 + $0x20] sm:$0xf] }
  0x32   : > { %v491_v7 = vunpack.c.l.b16 %v466_v59  ;;  %v690_v8 = vshll.u32 %v1856_v60, 16  ;;  %v492_v9 = vunpack.c.l.b16 %v470_v3  ;;  %v687_v10 = vor.u32 %v686_v62, %v683_v61 }
  0x33   : > { %v774_v6 = vpack.c.b16 %v767_v58, %v766_v57  ;;  %v701_v11 = vor.u32 %v700_v2, %v697_v1  ;;  %v704_v14 = vshll.u32 %v1861_v4, 16  ;;  %v1479_v15 = vor.u32 %v1651_v5, %v1478_v13  ;;  %v434_v2 = vld [vmem:[%s1736_s27 + $0x30] sm:$0xe] }
  0x34   : > { %v692_v16 = vrot.slane %v690_v8, 5  ;;  %v498_v18 = vpack.c.b16 %v492_v9, %v491_v7  ;;  %v688_v19 = vrot.slane %v687_v10, 4  ;;  %v709_v25 = vshrl.u32 %v1542_v17, 16  ;;  %v1546_v7 = vld [vmem:[%s1736_s27 + $0x38] sm:$0xf] }
  0x35   : > { %v702_v20 = vrot.slane %v701_v11, 4  ;;  %v706_v21 = vrot.slane %v704_v14, 5  ;;  %v712_v27 = vshll.u32 %v1542_v17, 16  ;;  %v723_v33 = vshrl.u32 %v1544_v22, 16  ;;  %v1548_v8 = vld [vmem:[%s1736_s27 + $0x40] sm:$0xf] }
  0x36   : > { %v693_v31 = vsel %vm1761_vm4, %v688_v19, %v692_v16  ;;  %v726_v34 = vshll.u32 %v1544_v22, 16  ;;  %v1496_v35 = vrot.slane %v432_v23, 9  ;;  %v473_v36 = vrot.slane %v1752_v26, 5  ;;  %v1891_v26 = vld [vmem:[%s1736_s27 + $0x34] sm:$0x1] }
  0x37   : > { %v707_v32 = vsel %vm1761_vm4, %v702_v20, %v706_v21  ;;  %v1497_v38 = vrot.slane %v433_v24, 9  ;;  %v477_v39 = vrot.slane %v1755_v29, 5  ;;  %v711_v40 = vrot.slane %v709_v25, 4  ;;  %v1652_v29 = vld [vmem:[%s1736_s27 + $0x24] sm:$0xf0] }
  0x38   : > { %1530 = vmatmul.msk.bf16.vlgmr.msrb.gmra.mxu3 %vm318_vm3, %v1517_v56  ;;  %v714_v41 = vrot.slane %v712_v27, 5  ;;  %v1521_v42 = vor.u32 %v1655_v30, %v1520_v28  ;;  %v768_v43 = vunpack.c.l.b16 %v693_v31  ;;  %v769_v45 = vunpack.c.l.b16 %v707_v32  ;;  %v1524_v9 = vld [vmem:[%s1736_s27 + $0x28] sm:$0xf]  ;;  %v1656_v14 = vld [vmem:[%s1736_s27 + $0x2c] sm:$0xf0] }
  0x39   : > { %v725_v48 = vrot.slane %v723_v33, 4  ;;  %v728_v49 = vrot.slane %v726_v34, 5  ;;  %v474_v50 = vsel %vm1795_vm7, %v1496_v35, %v473_v36  ;;  %v478_v51 = vsel %vm1795_vm7, %v1497_v38, %v477_v39  ;;  %v1918_v27 = vld [vmem:[%s1736_s27 + $0x3c] sm:$0x1]  ;;  %v1921_v28 = vld [vmem:[%s1736_s27 + $0x44] sm:$0x1] }
  0x3a   : > { %v715_v53 = vor.u32 %v714_v41, %v711_v40  ;;  %v718_v12 = vshll.u32 %v1884_v47, 16  ;;  %v775_v55 = vpack.c.b16 %v769_v45, %v768_v43  ;;  %v493_v56 = vunpack.c.l.b16 %v474_v50  ;;  %v1486_v34 = vld [vmem:[%s1736_s27 + $0x30] sm:$0xf]  ;;  %v1653_v35 = vld [vmem:[%s1736_s27 + $0x34] sm:$0xf0] }
  0x3b   : > { %v494_v57 = vunpack.c.l.b16 %v478_v51  ;;  %v729_v58 = vor.u32 %v728_v49, %v725_v48  ;;  %v732_v59 = vshll.u32 %v1891_v26, 16  ;;  %v1483_v61 = vor.u32 %v1652_v29, %v1482_v52  ;;  %v1607_v49 = vld [vmem:[%s1736_s27 + $0x18] sm:$0xf] }
  0x3c   : > { %v716_v62 = vrot.slane %v715_v53, 4  ;;  %v720_v1 = vrot.slane %v718_v12, 5  ;;  %v481_v11 = vrot.slane %v1767_v46, 5  ;;  %v485_v17 = vrot.slane %v1773_v54, 5  ;;  %v1555_v12 = vld [vmem:[%s1736_s27 + $0x8] sm:$0xe] }
  0x3d   : > { %1551 = vmatmul.msk.bf16.vlgmr.msrb.gmra.mxu0 %vm318_vm3, %v774_v6  ;;  %v499_v3 = vpack.c.b16 %v494_v57, %v493_v56  ;;  %v730_v13 = vrot.slane %v729_v58, 4  ;;  %v734_v5 = vrot.slane %v732_v59, 5  ;;  %v435_v6 = vld [vmem:[%s1736_s27 + $0x38] sm:$0xe]  ;;  %v740_v20 = vshll.u32 %v1546_v7, 16 }
  0x3e   : > { %1489 = vmatmul.msk.bf16.gmra.mxu1 %vm318_vm3, %v1479_v15  ;;  %v721_v10 = vsel %vm1761_vm4, %v716_v62, %v720_v1  ;;  %v1498_v15 = vrot.slane %v434_v2, 9  ;;  %v1499_v16 = vrot.slane %v435_v6, 9  ;;  %v751_v21 = vshrl.u32 %v1548_v8, 16  ;;  %v1528_v6 = vld [vmem:[%s1736_s27 + $0x38] sm:$0xf] }
  0x3f   : > { %v735_v19 = vsel %vm1761_vm4, %v730_v13, %v734_v5  ;;  %v754_v22 = vshll.u32 %v1548_v8, 16  ;;  %v1525_v23 = vor.u32 %v1656_v14, %v1524_v9  ;;  %v770_v46 = vunpack.c.l.b16 %v721_v10  ;;  %v1606_v5 = vld [vmem:[%s1736_s27 + $0x14] sm:$0x1] }
  0x40   : > { %v771_v24 = vunpack.c.l.b16 %v735_v19  ;;  %v482_v25 = vsel %vm1795_vm7, %v1498_v15, %v481_v11  ;;  %v486_v54 = vsel %vm1795_vm7, %v1499_v16, %v485_v17  ;;  %v742_v31 = vrot.slane %v740_v20, 5 }
  0x41   : > { %1502 = vmatmul.msk.bf16.gmra.mxu2 %vm318_vm3, %v498_v18  ;;  %v737_v18 = vshrl.u32 %v1546_v7, 16  ;;  %v753_v32 = vrot.slane %v751_v21, 4  ;;  %v756_v33 = vrot.slane %v754_v22, 5  ;;  %v495_v36 = vunpack.c.l.b16 %v482_v25  ;;  %v1657_v7 = vld [vmem:[%s1736_s27 + $0x3c] sm:$0xf0] }
  0x42   : > { %v776_v38 = vpack.c.b16 %v771_v24, %v770_v46  ;;  %v496_v39 = vunpack.c.l.b16 %v486_v54  ;;  %v746_v40 = vshll.u32 %v1918_v27, 16  ;;  %v760_v41 = vshll.u32 %v1921_v28, 16  ;;  %v1587_v54 = vld [vmem:[%s1736_s27 + $0x10] sm:$0xf] }
  0x43   : > { %v739_v30 = vrot.slane %v737_v18, 4  ;;  %v757_v45 = vor.u32 %v756_v33, %v753_v32  ;;  %v1487_v48 = vor.u32 %v1653_v35, %v1486_v34  ;;  %v1066_v58 = vshrl.u32 %v1607_v49, 16  ;;  %v1658_v32 = vld [vmem:[%s1736_s27 + $0x14] sm:$0xf0]  ;;  %v1609_v35 = vld [vmem:[%s1736_s27 + $0x20] sm:$0xf] }
  0x44   : > { %v500_v52 = vpack.c.b16 %v496_v39, %v495_v36  ;;  %v748_v29 = vrot.slane %v746_v40, 5  ;;  %v762_v53 = vrot.slane %v760_v41, 5  ;;  %v1069_v59 = vshll.u32 %v1607_v49, 16 }
  0x45   : > { %v743_v43 = vor.u32 %v742_v31, %v739_v30  ;;  %v758_v57 = vrot.slane %v757_v45, 4  ;;  %v860_v62 = vrot.slane %v1817_v0, 5  ;;  %v1563_v1 = vrot.slane %v1555_v12, 9  ;;  %v1608_v0 = vld [vmem:[%s1736_s27 + $0x1c] sm:$0x1] }
  0x46   : > { %v1071_v10 = vrot.slane %v1069_v59, 5  ;;  %v1061_v16 = vshll.u32 %v1606_v5, 16  ;;  %v1529_v17 = vor.u32 %v1657_v7, %v1528_v6  ;;  %v1075_v21 = vshll.u32 %v1608_v0, 16  ;;  %v1626_v30 = vld [vmem:[%s1736_s27 + $0x10] sm:$0xe] }
  0x47   : > { %v744_v56 = vrot.slane %v743_v43, 4  ;;  %v763_v9 = vsel %vm1761_vm4, %v758_v57, %v762_v53  ;;  %v1627_v31 = vld [vmem:[%s1736_s27 + $0x18] sm:$0xe]  ;;  %v1634_v40 = vrot.slane %v1626_v30, 9  ;;  %v1255_v41 = vrot.slane %v1606_v5, 5 }
  0x48   : > { %1531 = vmatmul.msk.bf16.gmra.mxu3 %vm318_vm3, %v1521_v42  ;;  %v1605_v42 = vld [vmem:[%s1736_s27 + $0x10] sm:$0xf]  ;;  %v773_v19 = vunpack.c.l.b16 %v763_v9  ;;  %v1063_v24 = vrot.slane %v1061_v16, 5  ;;  %v1077_v34 = vrot.slane %v1075_v21, 5  ;;  %v1588_v43 = vor.u32 %v1658_v32, %v1587_v54  ;;  %v1557_v45 = vld [vmem:[%s1736_s27 + $0x18] sm:$0xe] }
  0x49   : > { %v1052_v50 = vshrl.u32 %v1605_v42, 16  ;;  %v1055_v51 = vshll.u32 %v1605_v42, 16  ;;  %v749_v8 = vsel %vm1761_vm4, %v744_v56, %v748_v29  ;;  %v1635_v42 = vrot.slane %v1627_v31, 9  ;;  %v1612_v6 = vld [vmem:[%s1736_s27 + $0x2c] sm:$0x1] }
  0x4a   : > { %v772_v18 = vunpack.c.l.b16 %v749_v8  ;;  %v1080_v49 = vshrl.u32 %v1609_v35, 16  ;;  %v864_v56 = vrot.slane %v1856_v60, 5  ;;  %v1591_v16 = vld [vmem:[%s1736_s27 + $0x20] sm:$0xf]  ;;  %v1613_v21 = vld [vmem:[%s1736_s27 + $0x30] sm:$0xf] }
  0x4b   : > { %v1057_v13 = vrot.slane %v1055_v51, 5  ;;  %v1615_v54 = vld [vmem:[%s1736_s27 + $0x38] sm:$0xf]  ;;  %v1108_v31 = vshrl.u32 %v1613_v21, 16  ;;  %v1111_v32 = vshll.u32 %v1613_v21, 16  ;;  %vm1395_vm9 = vcmask 60416  }
  0x4c   : > { %v777_v25 = vpack.c.b16 %v773_v19, %v772_v18 }
  0x4d   : > { %1552 = vmatmul.msk.bf16.gmra.mxu0 %vm318_vm3, %v775_v55  ;;  %v1556_v55 = vld [vmem:[%s1736_s27 + $0x10] sm:$0xe] }
  0x4e   : > { %1490 = vmatmul.msk.bf16.gmra.mxu1 %vm318_vm3, %v1483_v61  ;;  %v856_v61 = vrot.slane %v1814_v63, 5  ;;  %v1564_v2 = vrot.slane %v1556_v55, 9  ;;  %v1068_v63 = vrot.slane %v1066_v58, 4  ;;  %v1565_v55 = vrot.slane %v1557_v45, 9 }
  0x4f   : > { %v868_v58 = vrot.slane %v1861_v4, 5  ;;  %v872_v45 = vrot.slane %v1884_v47, 5  ;;  %v1616_v47 = vld [vmem:[%s1736_s27 + $0x3c] sm:$0x1] }
  0x50   : > { %v857_v11 = vsel %vm1795_vm7, %v1563_v1, %v856_v61  ;;  %v861_v14 = vsel %vm1795_vm7, %v1564_v2, %v860_v62  ;;  %v1072_v20 = vor.u32 %v1071_v10, %v1068_v63  ;;  %v1256_v61 = vsel %vm1795_vm7, %v1634_v40, %v1255_v41 }
  0x51   : > { %1503 = vmatmul.msk.bf16.gmra.mxu2 %vm318_vm3, %v499_v3  ;;  %v1054_v3 = vrot.slane %v1052_v50, 4  ;;  %v888_v22 = vunpack.c.l.b16 %v857_v11  ;;  %v1083_v50 = vshll.u32 %v1609_v35, 16  ;;  %v1082_v62 = vrot.slane %v1080_v49, 4 }
  0x52   : > { %v1073_v33 = vrot.slane %v1072_v20, 4  ;;  %v1287_v60 = vunpack.c.l.b16 %v1256_v61  ;;  %v865_v4 = vsel %vm1795_vm7, %v1565_v55, %v864_v56  ;;  %v1103_v11 = vshll.u32 %v1612_v6, 16  ;;  %v1628_v20 = vld [vmem:[%s1736_s27 + $0x20] sm:$0xe] }
  0x53   : > { %v1058_v15 = vor.u32 %v1057_v13, %v1054_v3  ;;  %v1085_v1 = vrot.slane %v1083_v50, 5  ;;  %v1610_v3 = vld [vmem:[%s1736_s27 + $0x24] sm:$0x1]  ;;  %v1636_v30 = vrot.slane %v1628_v20, 9  ;;  %v1267_v41 = vrot.slane %v1612_v6, 5 }
  0x54   : > { %v1078_v51 = vsel %vm1761_vm4, %v1073_v33, %v1077_v34  ;;  %v1089_v10 = vshll.u32 %v1610_v3, 16  ;;  %v1263_v35 = vrot.slane %v1610_v3, 5 }
  0x55   : > { %v1059_v46 = vrot.slane %v1058_v15, 4  ;;  %v1166_v59 = vunpack.c.l.b16 %v1078_v51  ;;  %v1086_v63 = vor.u32 %v1085_v1, %v1082_v62  ;;  %v1110_v51 = vrot.slane %v1108_v31, 4 }
  0x56   : > { %v1091_v19 = vrot.slane %v1089_v10, 5  ;;  %v1264_v55 = vsel %vm1795_vm7, %v1636_v30, %v1263_v35  ;;  %v1631_v10 = vld [vmem:[%s1736_s27 + $0x38] sm:$0xe]  ;;  %v1275_v30 = vrot.slane %v1616_v47, 5  ;;  %v880_v35 = vrot.slane %v1918_v27, 5 }
  0x57   : > { %v1064_v39 = vsel %vm1761_vm4, %v1059_v46, %v1063_v24  ;;  %v1087_v18 = vrot.slane %v1086_v63, 4  ;;  %v1105_v46 = vrot.slane %v1103_v11, 5  ;;  %v1629_v24 = vld [vmem:[%s1736_s27 + $0x28] sm:$0xe]  ;;  %v1630_v63 = vld [vmem:[%s1736_s27 + $0x30] sm:$0xe] }
  0x58   : > { %1532 = vmatmul.msk.bf16.gmra.mxu3 %vm318_vm3, %v1525_v23  ;;  %v889_v23 = vunpack.c.l.b16 %v861_v14  ;;  %v1165_v12 = vunpack.c.l.b16 %v1064_v39  ;;  %v890_v14 = vunpack.c.l.b16 %v865_v4  ;;  %v1560_v39 = vld [vmem:[%s1736_s27 + $0x30] sm:$0xe]  ;;  %v1639_v21 = vrot.slane %v1631_v10, 9 }
  0x59   : > { %v1092_v34 = vsel %vm1761_vm4, %v1087_v18, %v1091_v19  ;;  %v1568_v50 = vrot.slane %v1560_v39, 9  ;;  %v1638_v19 = vrot.slane %v1630_v63, 9 }
  0x5a   : > { %v896_v36 = vpack.c.b16 %v889_v23, %v888_v22  ;;  %v1173_v8 = vpack.c.b16 %v1166_v59, %v1165_v12  ;;  %v1659_v22 = vld [vmem:[%s1736_s27 + $0x24] sm:$0xf0]  ;;  %v1614_v12 = vld [vmem:[%s1736_s27 + $0x34] sm:$0x1] }
  0x5b   : > { %v1592_v33 = vor.u32 %v1659_v22, %v1591_v16  ;;  %v1117_v62 = vshll.u32 %v1614_v12, 16  ;;  %v1271_v20 = vrot.slane %v1614_v12, 5 }
  0x5d   : > { %1553 = vmatmul.msk.bf16.gmra.mxu0 %vm318_vm3, %v776_v38  ;;  %v1611_v38 = vld [vmem:[%s1736_s27 + $0x28] sm:$0xf] }
  0x5e   : > { %1491 = vmatmul.msk.bf16.gmra.mxu1 %vm318_vm3, %v1487_v48  ;;  %v1558_v48 = vld [vmem:[%s1736_s27 + $0x20] sm:$0xe]  ;;  %v1094_v29 = vshrl.u32 %v1611_v38, 16  ;;  %v1097_v53 = vshll.u32 %v1611_v38, 16  ;;  %v1559_v38 = vld [vmem:[%s1736_s27 + $0x28] sm:$0xe] }
  0x5f   : > { %v1566_v57 = vrot.slane %v1558_v48, 9  ;;  %v876_v48 = vrot.slane %v1891_v26, 5  ;;  %v1567_v49 = vrot.slane %v1559_v38, 9  ;;  %v884_v38 = vrot.slane %v1921_v28, 5 }
  0x60   : > { %v1096_v13 = vrot.slane %v1094_v29, 4  ;;  %v1099_v5 = vrot.slane %v1097_v53, 5  ;;  %v1167_v29 = vunpack.c.l.b16 %v1092_v34 }
  0x61   : > { %1504 = vmatmul.msk.bf16.gmra.mxu2 %vm318_vm3, %v500_v52  ;;  %v1259_v52 = vrot.slane %v1608_v0, 5  ;;  %v869_v7 = vsel %vm1795_vm7, %v1566_v57, %v868_v58  ;;  %v873_v26 = vsel %vm1795_vm7, %v1567_v49, %v872_v45  ;;  %v877_v59 = vsel %vm1795_vm7, %v1568_v50, %v876_v48  ;;  %v1618_v45 = vld [vmem:[%s1736_s27 + $0x44] sm:$0x1]  ;;  %v1620_v50 = vld [vmem:[%s1736_s27 + $0x4c] sm:$0x1] }
  0x62   : > { %v1100_v0 = vor.u32 %v1099_v5, %v1096_v13  ;;  %v891_v15 = vunpack.c.l.b16 %v869_v7  ;;  %v1131_v5 = vshll.u32 %v1616_v47, 16  ;;  %v892_v6 = vunpack.c.l.b16 %v873_v26 }
  0x63   : > { %v1260_v2 = vsel %vm1795_vm7, %v1635_v42, %v1259_v52  ;;  %v1122_v42 = vshrl.u32 %v1615_v54, 16  ;;  %v1113_v52 = vrot.slane %v1111_v32, 5  ;;  %v1119_v7 = vrot.slane %v1117_v62, 5 }
  0x64   : > { %v1288_v9 = vunpack.c.l.b16 %v1260_v2  ;;  %v1101_v23 = vrot.slane %v1100_v0, 4  ;;  %v1289_v2 = vunpack.c.l.b16 %v1264_v55  ;;  %v1660_v0 = vld [vmem:[%s1736_s27 + $0x34] sm:$0xf0]  ;;  %v1145_v12 = vshll.u32 %v1618_v45, 16 }
  0x65   : > { %v1124_v57 = vrot.slane %v1122_v42, 4  ;;  %v1114_v61 = vor.u32 %v1113_v52, %v1110_v51  ;;  %v1283_v10 = vrot.slane %v1620_v50, 5 }
  0x66   : > { %v1106_v40 = vsel %vm1761_vm4, %v1101_v23, %v1105_v46  ;;  %v1561_v23 = vld [vmem:[%s1736_s27 + $0x38] sm:$0xe]  ;;  %v1562_v46 = vld [vmem:[%s1736_s27 + $0x40] sm:$0xe] }
  0x67   : > { %v1168_v53 = vunpack.c.l.b16 %v1106_v40  ;;  %v1115_v4 = vrot.slane %v1114_v61, 4  ;;  %v1569_v34 = vrot.slane %v1561_v23, 9  ;;  %v1272_v40 = vsel %vm1795_vm7, %v1638_v19, %v1271_v20 }
  0x68   : > { %1533 = vmatmul.msk.bf16.gmra.mxu3 %vm318_vm3, %v1529_v17  ;;  %v1295_v17 = vpack.c.b16 %v1288_v9, %v1287_v60  ;;  %v893_v60 = vunpack.c.l.b16 %v877_v59  ;;  %v1595_v9 = vld [vmem:[%s1736_s27 + $0x30] sm:$0xf]  ;;  %v1291_v51 = vunpack.c.l.b16 %v1272_v40  ;;  %v1147_v59 = vrot.slane %v1145_v12, 5 }
  0x69   : > { %v1174_v1 = vpack.c.b16 %v1168_v53, %v1167_v29  ;;  %v1120_v18 = vsel %vm1761_vm4, %v1115_v4, %v1119_v7  ;;  %v1596_v22 = vor.u32 %v1660_v0, %v1595_v9  ;;  %v881_v27 = vsel %vm1795_vm7, %v1569_v34, %v880_v35 }
  0x6a   : > { %v898_v16 = vpack.c.b16 %v893_v60, %v892_v6  ;;  %v1279_v7 = vrot.slane %v1618_v45, 5 }
  0x6d   : > { %1554 = vmatmul.msk.bf16.gmra.mxu0 %vm318_vm3, %v777_v25  ;;  %v897_v25 = vpack.c.b16 %v891_v15, %v890_v14  ;;  %v1133_v14 = vrot.slane %v1131_v5, 5  ;;  %v1617_v15 = vld [vmem:[%s1736_s27 + $0x40] sm:$0xf]  ;;  %v1633_v5 = vld [vmem:[%s1736_s27 + $0x48] sm:$0xe] }
  0x6e   : > { %1572 = vmatmul.msk.bf16.vlgmr.msra.gmra.mxu1 %vm318_vm3, %v896_v36  ;;  %v1637_v36 = vrot.slane %v1629_v24, 9  ;;  %v1136_v24 = vshrl.u32 %v1617_v15, 16  ;;  %v1641_v63 = vrot.slane %v1633_v5, 9 }
  0x70   : > { %v1268_v56 = vsel %vm1795_vm7, %v1637_v36, %v1267_v41  ;;  %v1570_v36 = vrot.slane %v1562_v46, 9  ;;  %v1138_v41 = vrot.slane %v1136_v24, 4 }
  0x71   : > { %1601 = vmatmul.msk.bf16.vlgmr.msra.gmra.mxu2 %vm318_vm3, %v1588_v43  ;;  %v1125_v43 = vshll.u32 %v1615_v54, 16  ;;  %v1290_v3 = vunpack.c.l.b16 %v1268_v56  ;;  %v1159_v56 = vshll.u32 %v1620_v50, 16 }
  0x72   : > { %v885_v28 = vsel %vm1795_vm7, %v1570_v36, %v884_v38 }
  0x73   : > { %v1127_v58 = vrot.slane %v1125_v43, 5  ;;  %v1276_v43 = vsel %vm1795_vm7, %v1639_v21, %v1275_v30  ;;  %v1161_v62 = vrot.slane %v1159_v56, 5 }
  0x74   : > { %v1292_v29 = vunpack.c.l.b16 %v1276_v43 }
  0x75   : > { %v1128_v13 = vor.u32 %v1127_v58, %v1124_v57  ;;  %v894_v57 = vunpack.c.l.b16 %v881_v27  ;;  %v895_v58 = vunpack.c.l.b16 %v885_v28 }
  0x76   : > { %v1297_v47 = vpack.c.b16 %v1292_v29, %v1291_v51 }
  0x77   : > { %v1129_v11 = vrot.slane %v1128_v13, 4  ;;  %v1661_v13 = vld [vmem:[%s1736_s27 + $0x44] sm:$0xf0] }
  0x78   : > { %1622 = vmatmul.msk.bf16.vlgmr.msra.gmra.mxu3 %vm318_vm3, %v1173_v8  ;;  %v1296_v8 = vpack.c.b16 %v1290_v3, %v1289_v2  ;;  %v899_v2 = vpack.c.b16 %v895_v58, %v894_v57  ;;  %v1599_v3 = vld [vmem:[%s1736_s27 + $0x40] sm:$0xf] }
  0x79   : > { %v1134_v54 = vsel %vm1761_vm4, %v1129_v11, %v1133_v14 }
  0x7a   : > { %v1170_v39 = vunpack.c.l.b16 %v1134_v54 }
  0x7d   : > { %1643 = vmatmul.msk.bf16.vlgmr.msra.gmra.mxu0 %vm318_vm3, %v1295_v17  ;;  %v1619_v17 = vld [vmem:[%s1736_s27 + $0x48] sm:$0xf] }
  0x7e   : > { %1573 = vmatmul.msk.bf16.gmra.mxu1 %vm318_vm3, %v897_v25  ;;  %v1139_v25 = vshll.u32 %v1617_v15, 16  ;;  %v1150_v31 = vshrl.u32 %v1619_v17, 16  ;;  %v1153_v32 = vshll.u32 %v1619_v17, 16  ;;  %v1284_v15 = vsel %vm1795_vm7, %v1641_v63, %v1283_v10 }
  0x7f   : > { %v1294_v37 = vunpack.c.l.b16 %v1284_v15 }
  0x80   : > { %v1141_v42 = vrot.slane %v1139_v25, 5  ;;  %v1152_v48 = vrot.slane %v1150_v31, 4  ;;  %v1155_v49 = vrot.slane %v1153_v32, 5 }
  0x81   : > { %1602 = vmatmul.msk.bf16.gmra.mxu2 %vm318_vm3, %v1592_v33  ;;  %v1169_v33 = vunpack.c.l.b16 %v1120_v18 }
  0x82   : > { %v1142_v53 = vor.u32 %v1141_v42, %v1138_v41  ;;  %v1156_v55 = vor.u32 %v1155_v49, %v1152_v48 }
  0x83   : > { %v1175_v52 = vpack.c.b16 %v1170_v39, %v1169_v33 }
  0x84   : > { %v1143_v26 = vrot.slane %v1142_v53, 4  ;;  %v1157_v61 = vrot.slane %v1156_v55, 4 }
  0x86   : > { %v1148_v60 = vsel %vm1761_vm4, %v1143_v26, %v1147_v59  ;;  %v1162_v9 = vsel %vm1761_vm4, %v1157_v61, %v1161_v62 }
  0x87   : > { %v1171_v0 = vunpack.c.l.b16 %v1148_v60  ;;  %v1172_v11 = vunpack.c.l.b16 %v1162_v9 }
  0x88   : > { %1623 = vmatmul.msk.bf16.gmra.mxu3 %vm318_vm3, %v1174_v1  ;;  %v1632_v1 = vld [vmem:[%s1736_s27 + $0x40] sm:$0xe] }
  0x89   : > { %v1640_v4 = vrot.slane %v1632_v1, 9  ;;  %v1176_v17 = vpack.c.b16 %v1172_v11, %v1171_v0 }
  0x8b   : > { %v1280_v14 = vsel %vm1795_vm7, %v1640_v4, %v1279_v7 }
  0x8c   : > { %v1293_v18 = vunpack.c.l.b16 %v1280_v14  ;;  %v2101_v14 = vld [vmem:[%s2160_s2] ss:$0 sm:$0xff] }
  0x8d   : > { %1644 = vmatmul.msk.bf16.gmra.mxu0 %vm318_vm3, %v1296_v8  ;;  %v1600_v8 = vor.u32 %v1661_v13, %v1599_v3 }
  0x8e   : > { %1574 = vmatmul.msk.bf16.gmra.mxu1 %vm318_vm3, %v898_v16  ;;  %v1298_v20 = vpack.c.b16 %v1294_v37, %v1293_v18 }
  0x91   : > { %1603 = vmatmul.msk.bf16.gmra.mxu2 %vm318_vm3, %v1596_v22 }
  0x98   : > { %1624 = vmatmul.msk.bf16.gmra.mxu3 %vm318_vm3, %v1175_v52 }
  0x9b   : > { %v2038_v6 = vpop.f32.mrf.mxu1 }
  0x9d   : > { %1645 = vmatmul.msk.bf16.gmra.mxu0 %vm318_vm3, %v1297_v47 }
  0x9e   : > { %1575 = vmatmul.msk.bf16.gmra.mxu1 %vm318_vm3, %v899_v2 }
  0xa1   : > { %1604 = vmatmul.msk.bf16.gmra.mxu2 %vm318_vm3, %v1600_v8 }
  0xa3   : > { %v2051_v16 = vpop.f32.mrf.mxu1 }
  0xa4   : > { %v2053_v19 = vpop.f32.mrf.mxu2 }
  0xa8   : > { %1625 = vmatmul.msk.bf16.gmra.mxu3 %vm318_vm3, %v1176_v17 }
  0xaa   : > { %v344_v21 = vpop.f32.mrf.mxu0 }
  0xab   : > { %v2056_v22 = vpop.f32.mrf.mxu3  ;;  %v408_v23 = vpop.f32.mrf.mxu1 }
  0xac   : > { %v2059_v46 = vpop.f32.mrf.mxu2  ;;  %v409_v56 = vadd.f32 %v408_v23, %v344_v21 }
  0xad   : > { %1646 = vmatmul.msk.bf16.gmra.mxu0 %vm318_vm3, %v1298_v20 }
  0xb2   : > { %v346_v44 = vpop.f32.mrf.mxu0 }
  0xb3   : > { %v2061_v24 = vpop.f32.mrf.mxu3  ;;  %v410_v25 = vpop.f32.mrf.mxu1 }
  0xb4   : > { %v525_v54 = vpop.f32.mrf.mxu2  ;;  %v411_v62 = vadd.f32 %v410_v25, %v346_v44 }
  0xb5   : > { %v545_v47 = vadd.f32 %v525_v54, %v409_v56 }
  0xba   : > { %v802_v30 = vpop.f32.mrf.mxu0 }
  0xbb   : > { %v608_v31 = vpop.f32.mrf.mxu3  ;;  %v413_v32 = vpop.f32.mrf.mxu1 }
  0xbc   : > { %v527_v33 = vpop.f32.mrf.mxu2  ;;  %v628_v59 = vadd.f32 %v608_v31, %v545_v47  ;;  %v414_v9 = vadd.f32 %v413_v32, %v2038_v6 }
  0xbd   : > { %v546_v3 = vadd.f32 %v527_v33, %v411_v62 }
  0xbe   : > { %v822_v13 = vadd.f32 %v802_v30, %v628_v59 }
  0xc2   : > { %v804_v34 = vpop.f32.mrf.mxu0 }
  0xc3   : > { %v610_v35 = vpop.f32.mrf.mxu3  ;;  %v415_v36 = vpop.f32.mrf.mxu1 }
  0xc4   : > { %v530_v38 = vpop.f32.mrf.mxu2  ;;  %v629_v4 = vadd.f32 %v610_v35, %v546_v3  ;;  %v416_v44 = vadd.f32 %v415_v36, %v2051_v16 }
  0xc5   : > { %v547_v0 = vadd.f32 %v530_v38, %v414_v9 }
  0xc6   : > { %v823_v15 = vadd.f32 %v804_v34, %v629_v4 }
  0xca   : > { %v807_v39 = vpop.f32.mrf.mxu0 }
  0xcb   : > { %v613_v40 = vpop.f32.mrf.mxu3  ;;  %v2063_v41 = vpop.f32.mrf.mxu1 }
  0xcc   : > { %v532_v42 = vpop.f32.mrf.mxu2  ;;  %v630_v20 = vadd.f32 %v613_v40, %v547_v0  ;;  %v419_v47 = vadd.f32 %v2063_v41, %v2053_v19 }
  0xcd   : > { %v548_v54 = vadd.f32 %v532_v42, %v416_v44 }
  0xce   : > { %v824_v34 = vadd.f32 %v807_v39, %v630_v20 }
  0xd2   : > { %v2065_v43 = vpop.f32.mrf.mxu0 }
  0xd3   : > { %v615_v45 = vpop.f32.mrf.mxu3  ;;  %v2067_v48 = vpop.f32.mrf.mxu1 }
  0xd4   : > { %v2069_v49 = vpop.f32.mrf.mxu2  ;;  %v631_v40 = vadd.f32 %v615_v45, %v548_v54 }
  0xd5   : > { %v549_v39 = vadd.f32 %v2069_v49, %v419_v47  ;;  %v421_v49 = vadd.f32 %v2067_v48, %v2059_v46 }
  0xda   : > { %v2071_v50 = vpop.f32.mrf.mxu0 }
  0xdb   : > { %v2073_v51 = vpop.f32.mrf.mxu3  ;;  %v2075_v27 = vpop.f32.mrf.mxu1 }
  0xdc   : > { %v2077_v28 = vpop.f32.mrf.mxu2 }
  0xe2   : > { %v2079_v52 = vpop.f32.mrf.mxu0 }
  0xe3   : > { %v2081_v29 = vpop.f32.mrf.mxu3  ;;  %v2083_v53 = vpop.f32.mrf.mxu1 }
  0xe4   : > { %v2085_v12 = vpop.f32.mrf.mxu2 }
  0xea   : > { %v2087_v55 = vpop.f32.mrf.mxu0 }
  0xeb   : > { %v2089_v57 = vpop.f32.mrf.mxu3  ;;  %v924_v58 = vpop.f32.mrf.mxu1 }
  0xec   : > { %v2091_v26 = vpop.f32.mrf.mxu2  ;;  %v944_v60 = vadd.f32 %v924_v58, %v822_v13  ;;  %v825_v13 = vadd.f32 %v2065_v43, %v631_v40 }
  0xf2   : > { %v2093_v61 = vpop.f32.mrf.mxu0 }
  0xf3   : > { %v2095_v1 = vpop.f32.mrf.mxu3  ;;  %v926_v2 = vpop.f32.mrf.mxu1 }
  0xf4   : > { %v1007_v5 = vpop.f32.mrf.mxu2  ;;  %v945_v37 = vadd.f32 %v926_v2, %v823_v15 }
  0xf5   : > { %v1027_v7 = vadd.f32 %v1007_v5, %v944_v60 }
  0xfa   : > { %v1323_v8 = vpop.f32.mrf.mxu0 }
  0xfb   : > { %v1201_v63 = vpop.f32.mrf.mxu3  ;;  %v929_v10 = vpop.f32.mrf.mxu1 }
  0xfc   : > { %v1221_v11 = vadd.f32 %v1201_v63, %v1027_v7  ;;  %v1009_v17 = vpop.f32.mrf.mxu2  ;;  %v946_v36 = vadd.f32 %v929_v10, %v824_v34  ;;  %v550_v10 = vadd.f32 %v2077_v28, %v421_v49  ;;  %v424_v28 = vadd.f32 %v2075_v27, %v2056_v22 }
  0xfd   : > { %v1028_v23 = vadd.f32 %v1009_v17, %v945_v37 }
  0xfe   : > { %v1343_v18 = vadd.f32 %v1323_v8, %v1221_v11  ;;  %v632_v8 = vadd.f32 %v2073_v51, %v549_v39 }
 0x100   : > { %v1355_v21 = vadd.f32 %v2101_v14, %v1343_v18  ;;  %v826_v15 = vadd.f32 %v2071_v50, %v632_v8 }
 0x102   : > { %v1325_v6 = vpop.f32.mrf.mxu0  ;;  %vm1363_vm8 = vcmp.ge.f32.partialorder %v1355_v21, 0.0  ;;  %v1371_v25 = vmul.f32 0.2, %v1355_v21 }
 0x103   : > { %v1203_v30 = vpop.f32.mrf.mxu3  ;;  %v931_v31 = vpop.f32.mrf.mxu1 }
 0x104   : > { %v1379_v32 = vsel %vm1363_vm8, %v1355_v21, %v1371_v25  ;;  %v1222_v33 = vadd.f32 %v1203_v30, %v1028_v23  ;;  %v1012_v35 = vpop.f32.mrf.mxu2  ;;  %v947_v7 = vadd.f32 %v931_v31, %v825_v13  ;;  %v633_v21 = vadd.f32 %v2081_v29, %v550_v10 }
 0x105   : > { %v1387_v38 = vpack.c.bf16 %v1379_v32, %v1379_v32  ;;  %v1029_v56 = vadd.f32 %v1012_v35, %v946_v36 }
 0x106   : > { %v1344_v16 = vadd.f32 %v1325_v6, %v1222_v33  ;;  %v551_v6 = vadd.f32 %v2085_v12, %v424_v28  ;;  %v827_v30 = vadd.f32 %v2079_v52, %v633_v21  ;;  %v426_v12 = vadd.f32 %v2083_v53, %v2061_v24 }
 0x107   : > { %1396 = vst.msk [vmem:[%s2109_s16] sm:$0xf] %vm1395_vm9, %v1387_v38 }
 0x108   : > { %v1356_v42 = vadd.f32 %v2101_v14, %v1344_v16  ;;  %v634_v34 = vadd.f32 %v2089_v57, %v551_v6  ;;  %v552_v36 = vadd.f32 %v2091_v26, %v426_v12 }
 0x10a   : > { %v1328_v58 = vpop.f32.mrf.mxu0  ;;  %vm1364_vm10 = vcmp.ge.f32.partialorder %v1356_v42, 0.0  ;;  %v1372_v59 = vmul.f32 0.2, %v1356_v42 }
 0x10b   : > { %v1206_v62 = vpop.f32.mrf.mxu3  ;;  %v934_v60 = vpop.f32.mrf.mxu1 }
 0x10c   : > { %v1380_v2 = vsel %vm1364_vm10, %v1356_v42, %v1372_v59  ;;  %v1223_v3 = vadd.f32 %v1206_v62, %v1029_v56  ;;  %v1014_v5 = vpop.f32.mrf.mxu2  ;;  %v948_v37 = vadd.f32 %v934_v60, %v826_v15  ;;  %v828_v56 = vadd.f32 %v2087_v55, %v634_v34 }
 0x10d   : > { %v1388_v45 = vpack.c.bf16 %v1380_v2, %v1380_v2  ;;  %v1030_v41 = vadd.f32 %v1014_v5, %v947_v7  ;;  %v635_v62 = vadd.f32 %v2095_v1, %v552_v36 }
 0x10e   : > { %v1345_v4 = vadd.f32 %v1328_v58, %v1223_v3 }
 0x10f   : > { %1397 = vst.msk [vmem:[%s2109_s16 + $0x4] sm:$0xf] %vm1395_vm9, %v1388_v45  ;;  %v829_v55 = vadd.f32 %v2093_v61, %v635_v62 }
 0x110   : > { %v1357_v19 = vadd.f32 %v2101_v14, %v1345_v4 }
 0x112   : > { %v1330_v9 = vpop.f32.mrf.mxu0  ;;  %vm1365_vm11 = vcmp.ge.f32.partialorder %v1357_v19, 0.0  ;;  %v1373_v63 = vmul.f32 0.2, %v1357_v19 }
 0x113   : > { %v1208_v43 = vpop.f32.mrf.mxu3  ;;  %v936_v20 = vpop.f32.mrf.mxu1 }
 0x114   : > { %v1381_v0 = vsel %vm1365_vm11, %v1357_v19, %v1373_v63  ;;  %v1224_v11 = vadd.f32 %v1208_v43, %v1030_v41  ;;  %v1017_v17 = vpop.f32.mrf.mxu2  ;;  %v949_v33 = vadd.f32 %v936_v20, %v827_v30 }
 0x115   : > { %v1389_v18 = vpack.c.bf16 %v1381_v0, %v1381_v0  ;;  %v1031_v48 = vadd.f32 %v1017_v17, %v948_v37 }
 0x116   : > { %v1346_v51 = vadd.f32 %v1330_v9, %v1224_v11 }
 0x117   : > { %1398 = vst.msk [vmem:[%s2109_s16 + $0x8] sm:$0xf] %vm1395_vm9, %v1389_v18 }
 0x118   : > { %v1358_v46 = vadd.f32 %v2101_v14, %v1346_v51 }
 0x11a   : > { %v1333_v23 = vpop.f32.mrf.mxu0  ;;  %vm1366_vm12 = vcmp.ge.f32.partialorder %v1358_v46, 0.0  ;;  %v1374_v44 = vmul.f32 0.2, %v1358_v46 }
 0x11b   : > { %v1211_v50 = vpop.f32.mrf.mxu3  ;;  %v939_v27 = vpop.f32.mrf.mxu1 }
 0x11c   : > { %v1382_v25 = vsel %vm1366_vm12, %v1358_v46, %v1374_v44  ;;  %v1225_v54 = vadd.f32 %v1211_v50, %v1031_v48  ;;  %v1019_v31 = vpop.f32.mrf.mxu2  ;;  %v950_v59 = vadd.f32 %v939_v27, %v828_v56 }
 0x11d   : > { %v1390_v32 = vpack.c.bf16 %v1382_v25, %v1382_v25  ;;  %v1032_v22 = vadd.f32 %v1019_v31, %v949_v33 }
 0x11e   : > { %v1347_v29 = vadd.f32 %v1333_v23, %v1225_v54 }
 0x11f   : > { %1399 = vst.msk [vmem:[%s2109_s16 + $0xc] sm:$0xf] %vm1395_vm9, %v1390_v32 }
 0x120   : > { %v1359_v35 = vadd.f32 %v2101_v14, %v1347_v29 }
 0x122   : > { %v1335_v38 = vpop.f32.mrf.mxu0  ;;  %vm1367_vm13 = vcmp.ge.f32.partialorder %v1359_v35, 0.0  ;;  %v1375_v16 = vmul.f32 0.2, %v1359_v35 }
 0x123   : > { %v1213_v52 = vpop.f32.mrf.mxu3  ;;  %v941_v2 = vpop.f32.mrf.mxu1 }
 0x124   : > { %v1383_v40 = vsel %vm1367_vm13, %v1359_v35, %v1375_v16  ;;  %v1226_v42 = vadd.f32 %v1213_v52, %v1032_v22  ;;  %v1022_v58 = vpop.f32.mrf.mxu2  ;;  %v951_v7 = vadd.f32 %v941_v2, %v829_v55 }
 0x125   : > { %v1391_v57 = vpack.c.bf16 %v1383_v40, %v1383_v40  ;;  %v1033_v53 = vadd.f32 %v1022_v58, %v950_v59 }
 0x126   : > { %v1348_v47 = vadd.f32 %v1335_v38, %v1226_v42 }
 0x127   : > { %1400 = vst.msk [vmem:[%s2109_s16 + $0x10] sm:$0xf] %vm1395_vm9, %v1391_v57 }
 0x128   : > { %v1360_v24 = vadd.f32 %v2101_v14, %v1348_v47 }
 0x12a   : > { %vm1368_vm14 = vcmp.ge.f32.partialorder %v1360_v24, 0.0  ;;  %v1376_v39 = vmul.f32 0.2, %v1360_v24  ;;  %v1338_v26 = vpop.f32.mrf.mxu0 }
 0x12b   : > { %v1216_v3 = vpop.f32.mrf.mxu3 }
 0x12c   : > { %v1384_v13 = vsel %vm1368_vm14, %v1360_v24, %v1376_v39  ;;  %v1227_v5 = vadd.f32 %v1216_v3, %v1033_v53  ;;  %v1024_v45 = vpop.f32.mrf.mxu2 }
 0x12d   : > { %v1392_v60 = vpack.c.bf16 %v1384_v13, %v1384_v13  ;;  %v1034_v8 = vadd.f32 %v1024_v45, %v951_v7 }
 0x12e   : > { %v1349_v4 = vadd.f32 %v1338_v26, %v1227_v5 }
 0x12f   : > { %1401 = vst.msk [vmem:[%s2109_s16 + $0x14] sm:$0xf] %vm1395_vm9, %v1392_v60 }
 0x130   : > { %v1361_v1 = vadd.f32 %v2101_v14, %v1349_v4 }
 0x132   : > { %vm1369_vm15 = vcmp.ge.f32.partialorder %v1361_v1, 0.0  ;;  %v1377_v19 = vmul.f32 0.2, %v1361_v1  ;;  %v1340_v43 = vpop.f32.mrf.mxu0 }
 0x133   : > { %v1218_v41 = vpop.f32.mrf.mxu3 }
 0x134   : > { %v1385_v9 = vsel %vm1369_vm15, %v1361_v1, %v1377_v19  ;;  %v1228_v49 = vadd.f32 %v1218_v41, %v1034_v8 }
 0x135   : > { %v1393_v63 = vpack.c.bf16 %v1385_v9, %v1385_v9 }
 0x136   : > { %v1350_v10 = vadd.f32 %v1340_v43, %v1228_v49 }
 0x137   : > { %1402 = vst.msk [vmem:[%s2109_s16 + $0x18] sm:$0xf] %vm1395_vm9, %v1393_v63 }
 0x138   : > { %v1362_v61 = vadd.f32 %v2101_v14, %v1350_v10 }
 0x13a   : > { %vm1370_vm0 = vcmp.ge.f32.partialorder %v1362_v61, 0.0  ;;  %v1378_v0 = vmul.f32 0.2, %v1362_v61 }
 0x13c   : > { %v1386_v11 = vsel %vm1370_vm0, %v1362_v61, %v1378_v0 }
 0x13d   : > { %v1394_v15 = vpack.c.bf16 %v1386_v11, %v1386_v11 }
 0x13f   : > { %1403 = vst.msk [vmem:[%s2109_s16 + $0x1c] sm:$0xf] %vm1395_vm9, %v1394_v15 }
 0x140 PF: > { %s13_s12 = sadd.s32 1, %s1681_s12  }
 0x141   : > { %p10_p4 = scmp.ge.s32.totalorder %s13_s12, 4  }
 0x143   :  { %12 = sbr.rel (!%p10_p4) target bundleno = 1 (0x1), region = 72 }

// kernel: _lambda_.8
= control target key start
LH: loop header
LB: loop body
LE: loop exit
PB: predicated region body
PF: predicated region fallthrough
CT: control target
= control target key end

     0   :  { %s1151_s12 = smov 0   ;;  %s1380_s0 = inlined_call_operand.vmem [shape: bf16[2,6,10,16], index: 0, kind: input, shape index: {}]   ;;  %s1381_s1 = inlined_call_operand.vmem [shape: bf16[9,16,16], index: 1, kind: input, shape index: {}]   ;;  %s1382_s2 = inlined_call_operand.vmem [shape: f32[1,16], index: 2, kind: input, shape index: {}]   ;;  %s1383_s3 = inlined_call_operand.vmem [shape: bf16[2,4,4,16], index: 3, kind: output, shape index: {}]  }
   0x1 LB: > { %s948_s13 = sadd.s32 4294967295, %s1129_s12   ;;  %p952_p0 = scmp.ge.s32.totalorder %s1129_s12, 1  ;;  %s1129_s12 = sphi %s1151_s12, %s13_s12  }
   0x2   : > { %p137_p1 = scmp.lt.s32.totalorder %s1129_s12, 3 }
   0x4   : > { %p138_p2 = pnand %p952_p0, %p137_p1 }
   0x5   : > { %p161_p3 = scmp.lt.s32.totalorder (!%p138_p2), %s948_s13, 1 }
   0x6   : > { %141 = sbr.rel (%p138_p2) target bundleno = 247 (0xf7), region = 32 }
   0xb   : > { %v1100_v0 = vld [vmem:[%s1381_s1 + $0x8] sm:$0xff]  ;;  %v1099_v1 = vld [vmem:[%s1381_s1] sm:$0xff]  ;;  %v1101_v2 = vld [vmem:[%s1381_s1 + $0x10] sm:$0xff]  ;;  %s1389_s13 = smov (!%p161_p3, %s948_s13), 1  ;;  %vm182_vm0 = vsmask.f32 3328 }
   0xc   : > { %270 = vmatpush.bf16.msra.mxu0 %v1100_v0  ;;  %1112 = vmatpush.bf16.msra.mxu1 %v1100_v0  ;;  %v1104_v3 = vld [vmem:[%s1381_s1 + $0x18] sm:$0xff]  ;;  %v1105_v4 = vld [vmem:[%s1381_s1 + $0x20] sm:$0xff]  ;;  %v1109_v5 = vld [vmem:[%s1381_s1 + $0x30] sm:$0xff]  ;;  %s1113_s28 = smul.u32 48, %s1389_s13  ;;  %vm183_vm1 = vsmask.f32 7440 }
   0xd   : > { %382 = vmatpush.bf16.msra.mxu2 %v1101_v2  ;;  %v1110_v6 = vld [vmem:[%s1381_s1 + $0x38] sm:$0xff]  ;;  %435 = vmatpush.bf16.msra.mxu3 %v1104_v3  ;;  %vm335_vm2 = vcmask 1042432   ;;  %vm336_vm3 = vcmask 1046532   ;;  %vm1204_vm4 = vmor %vm182_vm0, %vm183_vm1  ;;  %vm256_vm6 = vcmask 130048   ;;  %s1096_s11 = sshll.u32 %s1389_s13, 3  ;;  %vm888_vm8 = vcmask 123904  }
   0xe   : > { %s1186_s4 = scalar_lea.vmem %s1380_s0, %s1113_s28  ;;  %vm1213_vm5 = vmor %vm335_vm2, %vm336_vm3  ;;  %s1367_s16 = scalar_lea.vmem %s1383_s3, %s1096_s11 }
   0xf   : > { %v172_v7 = vld [vmem:[%s1186_s4] sm:$0xf]  ;;  %v173_v8 = vld [vmem:[%s1186_s4 + $0x8] sm:$0xf]  ;;  %v178_v9 = vld [vmem:[%s1186_s4 + $0x4] sm:$0x1] }
  0x10   : > { %311 = vmatpush.bf16.msrb.mxu1 %v1099_v1  ;;  %543 = vmatpush.bf16.msrb.mxu0 %v1105_v4  ;;  %v179_v10 = vld [vmem:[%s1186_s4 + $0xc] sm:$0x1]  ;;  %v186_v11 = vshrl.u32 %v172_v7, 16  ;;  %v189_v12 = vshll.u32 %v172_v7, 16  ;;  %v195_v13 = vshll.u32 %v178_v9, 16  ;;  %v200_v14 = vshrl.u32 %v173_v8, 16 }
  0x11   : > { %668 = vmatpush.bf16.msrb.mxu2 %v1109_v5  ;;  %776 = vmatpush.bf16.msrb.mxu3 %v1110_v6  ;;  %v203_v15 = vshll.u32 %v173_v8, 16  ;;  %v209_v16 = vshll.u32 %v179_v10, 16  ;;  %v174_v17 = vld [vmem:[%s1186_s4 + $0x10] sm:$0xf]  ;;  %v175_v18 = vld [vmem:[%s1186_s4 + $0x18] sm:$0xf] }
  0x12   : > { %v188_v19 = vrot.slane %v186_v11, 4  ;;  %v191_v20 = vrot.slane %v189_v12, 5  ;;  %v197_v21 = vrot.slane %v195_v13, 5  ;;  %v202_v22 = vrot.slane %v200_v14, 4  ;;  %v1195_v23 = vld [vmem:[%s1186_s4 + $0x14] sm:$0x1] }
  0x13   : > { %v205_v24 = vrot.slane %v203_v15, 5  ;;  %v211_v25 = vrot.slane %v209_v16, 5  ;;  %v1198_v26 = vld [vmem:[%s1186_s4 + $0x1c] sm:$0x1]  ;;  %v214_v27 = vshrl.u32 %v174_v17, 16  ;;  %v217_v28 = vshll.u32 %v174_v17, 16 }
  0x14   : > { %v192_v29 = vor.u32 %v191_v20, %v188_v19  ;;  %v223_v30 = vshll.u32 %v1195_v23, 16  ;;  %v228_v31 = vshrl.u32 %v175_v18, 16  ;;  %v231_v32 = vshll.u32 %v175_v18, 16  ;;  %v323_v33 = vld [vmem:[%s1186_s4] sm:$0xe]  ;;  %v1106_v19 = vld [vmem:[%s1381_s1 + $0x28] sm:$0xff] }
  0x15   : > { %v206_v35 = vor.u32 %v205_v24, %v202_v22  ;;  %v216_v36 = vrot.slane %v214_v27, 4  ;;  %v219_v37 = vrot.slane %v217_v28, 5  ;;  %v237_v38 = vshll.u32 %v1198_v26, 16  ;;  %v324_v39 = vld [vmem:[%s1186_s4 + $0x8] sm:$0xe]  ;;  %v1111_v6 = vld [vmem:[%s1381_s1 + $0x40] sm:$0xff] }
  0x16   : > { %v193_v40 = vrot.slane %v192_v29, 4  ;;  %v225_v41 = vrot.slane %v223_v30, 5  ;;  %v230_v42 = vrot.slane %v228_v31, 4  ;;  %v233_v43 = vrot.slane %v231_v32, 5  ;;  %v998_v44 = vld [vmem:[%s1186_s4 + $0x8] sm:$0xf] }
  0x17   : > { %v207_v45 = vrot.slane %v206_v35, 4  ;;  %v220_v46 = vor.u32 %v219_v37, %v216_v36  ;;  %v239_v47 = vrot.slane %v237_v38, 5  ;;  %v978_v49 = vrot.slane %v323_v33, 9  ;;  %v1102_v50 = vld [vmem:[%s1186_s4 + $0xc] sm:$0xf0] }
  0x18   : > { %v198_v51 = vsel %vm1204_vm4, %v193_v40, %v197_v21  ;;  %v234_v52 = vor.u32 %v233_v43, %v230_v42  ;;  %v340_v53 = vrot.slane %v178_v9, 5  ;;  %v979_v54 = vrot.slane %v324_v39, 9  ;;  %v1010_v63 = vld [vmem:[%s1186_s4 + $0x8] sm:$0xf]  ;;  %v1226_v0 = vld [vmem:[%s1186_s4 + $0xc] sm:$0x1] }
  0x19   : > { %v212_v55 = vsel %vm1204_vm4, %v207_v45, %v211_v25  ;;  %v244_v56 = vunpack.c.l.b16 %v198_v51  ;;  %v221_v57 = vrot.slane %v220_v46, 4  ;;  %v344_v58 = vrot.slane %v179_v10, 5  ;;  %v1012_v4 = vld [vmem:[%s1186_s4 + $0x10] sm:$0xf]  ;;  %v1234_v5 = vld [vmem:[%s1186_s4 + $0x14] sm:$0x1] }
  0x1a   : > { %v245_v59 = vunpack.c.l.b16 %v212_v55  ;;  %v235_v60 = vrot.slane %v234_v52, 4  ;;  %v341_v61 = vsel %vm1213_vm5, %v978_v49, %v340_v53  ;;  %v999_v62 = vor.u32 %v1102_v50, %v998_v44  ;;  %v325_v20 = vld [vmem:[%s1186_s4 + $0x10] sm:$0xe]  ;;  %v326_v25 = vld [vmem:[%s1186_s4 + $0x18] sm:$0xe] }
  0x1b   : > { %v226_v1 = vsel %vm1204_vm4, %v221_v57, %v225_v41  ;;  %v345_v2 = vsel %vm1213_vm5, %v979_v54, %v344_v58  ;;  %v357_v3 = vunpack.c.l.b16 %v341_v61  ;;  %v460_v12 = vshrl.u32 %v1010_v63, 16  ;;  %v1014_v29 = vld [vmem:[%s1186_s4 + $0x18] sm:$0xf]  ;;  %v1016_v40 = vld [vmem:[%s1186_s4 + $0x20] sm:$0xf] }
  0x1c   : > { %v248_v7 = vpack.c.b16 %v245_v59, %v244_v56  ;;  %v240_v8 = vsel %vm1204_vm4, %v235_v60, %v239_v47  ;;  %v246_v9 = vunpack.c.l.b16 %v226_v1  ;;  %v358_v10 = vunpack.c.l.b16 %v345_v2  ;;  %1008 = vmatmul.msk.bf16.vlgmr.msra.gmra.mxu3 %vm256_vm6, %v999_v62  ;;  %v1002_v43 = vld [vmem:[%s1186_s4 + $0x18] sm:$0xf]  ;;  %v1103_v44 = vld [vmem:[%s1186_s4 + $0x1c] sm:$0xf0]  ;;  %v1265_v47 = vld [vmem:[%s1186_s4 + $0x1c] sm:$0x1] }
  0x1d   : > { %v247_v11 = vunpack.c.l.b16 %v240_v8  ;;  %v463_v13 = vshll.u32 %v1010_v63, 16  ;;  %v469_v14 = vshll.u32 %v1226_v0, 16  ;;  %v474_v16 = vshrl.u32 %v1012_v4, 16  ;;  %v1270_v52 = vld [vmem:[%s1186_s4 + $0x24] sm:$0x1] }
  0x1e   : > { %962 = vmatmul.msk.bf16.vlgmr.msra.gmra.mxu0 %vm256_vm6, %v248_v7  ;;  %v361_v15 = vpack.c.b16 %v358_v10, %v357_v3  ;;  %v477_v17 = vshll.u32 %v1012_v4, 16  ;;  %v483_v18 = vshll.u32 %v1234_v5, 16  ;;  %v462_v22 = vrot.slane %v460_v12, 4  ;;  %v1062_v55 = vld [vmem:[%s1186_s4 + $0x10] sm:$0xf] }
  0x1f   : > { %v249_v21 = vpack.c.b16 %v247_v11, %v246_v9  ;;  %v465_v24 = vrot.slane %v463_v13, 5  ;;  %848 = vmatpush.bf16.msra.mxu0 %v1111_v6  ;;  %v476_v27 = vrot.slane %v474_v16, 4  ;;  %v471_v31 = vrot.slane %v469_v14, 5  ;;  %v1274_v59 = vld [vmem:[%s1186_s4 + $0x14] sm:$0x1] }
  0x20   : > { %988 = vmatmul.msk.bf16.vlgmr.msra.gmra.mxu2 %vm256_vm6, %v361_v15  ;;  %v479_v28 = vrot.slane %v477_v17, 5  ;;  %v980_v32 = vrot.slane %v325_v20, 9  ;;  %v348_v33 = vrot.slane %v1195_v23, 5  ;;  %v485_v36 = vrot.slane %v483_v18, 5  ;;  %v1064_v60 = vld [vmem:[%s1186_s4 + $0x18] sm:$0xf] }
  0x21   : > { %963 = vmatmul.msk.bf16.vlgmr.msra.gmra.mxu1 %vm256_vm6, %v249_v21  ;;  %v466_v30 = vor.u32 %v465_v24, %v462_v22  ;;  %v981_v37 = vrot.slane %v326_v25, 9  ;;  %v352_v38 = vrot.slane %v1198_v26, 5  ;;  %v488_v41 = vshrl.u32 %v1014_v29, 16  ;;  %v966_v61 = vld [vmem:[%s1186_s4] sm:$0xf] }
  0x22   : > { %v480_v35 = vor.u32 %v479_v28, %v476_v27  ;;  %615 = vmatpush.bf16.msra.mxu1 %v1106_v19  ;;  %v491_v45 = vshll.u32 %v1014_v29, 16  ;;  %v349_v46 = vsel %vm1213_vm5, %v980_v32, %v348_v33  ;;  %v502_v54 = vshrl.u32 %v1016_v40, 16  ;;  %v1280_v6 = vld [vmem:[%s1186_s4 + $0x1c] sm:$0x1]  ;;  %v1097_v9 = vld [vmem:[%s1186_s4 + $0x4] sm:$0xf0] }
  0x23   : > { %v467_v39 = vrot.slane %v466_v30, 4  ;;  %v353_v26 = vsel %vm1213_vm5, %v981_v37, %v352_v38  ;;  %v490_v49 = vrot.slane %v488_v41, 4  ;;  %v1003_v57 = vor.u32 %v1103_v44, %v1002_v43  ;;  %v1066_v37 = vld [vmem:[%s1186_s4 + $0x20] sm:$0xf]  ;;  %v1068_v38 = vld [vmem:[%s1186_s4 + $0x28] sm:$0xf] }
  0x24   : > { %v481_v42 = vrot.slane %v480_v35, 4  ;;  %v493_v53 = vrot.slane %v491_v45, 5  ;;  %v505_v58 = vshll.u32 %v1016_v40, 16  ;;  %v359_v62 = vunpack.c.l.b16 %v349_v46  ;;  %v1301_v44 = vld [vmem:[%s1186_s4 + $0x24] sm:$0x1] }
  0x25   : > { %v472_v23 = vsel %vm1204_vm4, %v467_v39, %v471_v31  ;;  %v360_v63 = vunpack.c.l.b16 %v353_v26  ;;  %v497_v1 = vshll.u32 %v1265_v47, 16  ;;  %v504_v2 = vrot.slane %v502_v54, 4  ;;  %v1306_v54 = vld [vmem:[%s1186_s4 + $0x2c] sm:$0x1] }
  0x26   : > { %v486_v50 = vsel %vm1204_vm4, %v481_v42, %v485_v36  ;;  %v518_v51 = vunpack.c.l.b16 %v472_v23  ;;  %v494_v3 = vor.u32 %v493_v53, %v490_v49  ;;  %v507_v4 = vrot.slane %v505_v58, 5  ;;  %v1028_v23 = vld [vmem:[%s1186_s4 + $0x18] sm:$0xe] }
  0x27   : > { %v519_v56 = vunpack.c.l.b16 %v486_v50  ;;  %v693_v7 = vshrl.u32 %v1062_v55, 16  ;;  %v696_v8 = vshll.u32 %v1062_v55, 16  ;;  %v511_v11 = vshll.u32 %v1270_v52, 16  ;;  %v1029_v50 = vld [vmem:[%s1186_s4 + $0x20] sm:$0xe] }
  0x28   : > { %v702_v12 = vshll.u32 %v1274_v59, 16  ;;  %v707_v13 = vshrl.u32 %v1064_v60, 16  ;;  %v508_v14 = vor.u32 %v507_v4, %v504_v2  ;;  %v710_v17 = vshll.u32 %v1064_v60, 16  ;;  %v1050_v4 = vld [vmem:[%s1186_s4 + $0x10] sm:$0xf] }
  0x29   : > { %v522_v10 = vpack.c.b16 %v519_v56, %v518_v51  ;;  %v695_v15 = vrot.slane %v693_v7, 4  ;;  %v698_v16 = vrot.slane %v696_v8, 5  ;;  %v362_v18 = vpack.c.b16 %v360_v63, %v359_v62  ;;  %v970_v56 = vld [vmem:[%s1186_s4 + $0x10] sm:$0xf]  ;;  %v1098_v62 = vld [vmem:[%s1186_s4 + $0x14] sm:$0xf0] }
  0x2a   : > { %v709_v19 = vrot.slane %v707_v13, 4  ;;  %v716_v20 = vshll.u32 %v1280_v6, 16  ;;  %v967_v21 = vor.u32 %v1097_v9, %v966_v61  ;;  %v704_v24 = vrot.slane %v702_v12, 5  ;;  %v1107_v7 = vld [vmem:[%s1186_s4 + $0x14] sm:$0xf0] }
  0x2b   : > { %v699_v22 = vor.u32 %v698_v16, %v695_v15  ;;  %v712_v25 = vrot.slane %v710_v17, 5  ;;  %v495_v27 = vrot.slane %v494_v3, 4  ;;  %v499_v28 = vrot.slane %v497_v1, 5  ;;  %v1078_v17 = vld [vmem:[%s1186_s4 + $0x10] sm:$0xe] }
  0x2c   : > { %1009 = vmatmul.msk.bf16.gmra.mxu3 %vm256_vm6, %v1003_v57  ;;  %v513_v29 = vrot.slane %v511_v11, 5  ;;  %v509_v30 = vrot.slane %v508_v14, 4  ;;  %v718_v33 = vrot.slane %v716_v20, 5  ;;  %v721_v45 = vshrl.u32 %v1066_v37, 16 }
  0x2d   : > { %v700_v31 = vrot.slane %v699_v22, 4  ;;  %v713_v32 = vor.u32 %v712_v25, %v709_v19  ;;  %v500_v39 = vsel %vm1204_vm4, %v495_v27, %v499_v28  ;;  %v724_v46 = vshll.u32 %v1066_v37, 16 }
  0x2e   : > { %1024 = vmatmul.msk.bf16.vlgmr.msrb.gmra.mxu0 %vm256_vm6, %v522_v10  ;;  %v514_v40 = vsel %vm1204_vm4, %v509_v30, %v513_v29  ;;  %v735_v26 = vshrl.u32 %v1068_v38, 16  ;;  %v738_v49 = vshll.u32 %v1068_v38, 16  ;;  %v520_v51 = vunpack.c.l.b16 %v500_v39  ;;  %v1027_v29 = vld [vmem:[%s1186_s4 + $0x10] sm:$0xe] }
  0x2f   : > { %v705_v35 = vsel %vm1204_vm4, %v700_v31, %v704_v24  ;;  %v714_v36 = vrot.slane %v713_v32, 4  ;;  %v521_v53 = vunpack.c.l.b16 %v514_v40  ;;  %v723_v55 = vrot.slane %v721_v45, 4  ;;  %v1026_v24 = vld [vmem:[%s1186_s4 + $0x8] sm:$0xe] }
  0x30   : > { %989 = vmatmul.msk.bf16.gmra.mxu2 %vm256_vm6, %v362_v18  ;;  %v751_v42 = vunpack.c.l.b16 %v705_v35  ;;  %v726_v57 = vrot.slane %v724_v46, 5  ;;  %v730_v58 = vshll.u32 %v1301_v44, 16  ;;  %v737_v60 = vrot.slane %v735_v26, 4  ;;  %v1079_v18 = vld [vmem:[%s1186_s4 + $0x18] sm:$0xe] }
  0x31   : > { %976 = vmatmul.msk.bf16.vlgmr.msrb.gmra.mxu1 %vm256_vm6, %v967_v21  ;;  %v719_v41 = vsel %vm1204_vm4, %v714_v36, %v718_v33  ;;  %v740_v61 = vrot.slane %v738_v49, 5  ;;  %v1032_v1 = vrot.slane %v1028_v23, 9  ;;  %v581_v2 = vrot.slane %v1265_v47, 5  ;;  %v1054_v23 = vld [vmem:[%s1186_s4 + $0x20] sm:$0xf] }
  0x32   : > { %v752_v43 = vunpack.c.l.b16 %v719_v41  ;;  %v1033_v3 = vrot.slane %v1029_v50, 9  ;;  %v727_v8 = vor.u32 %v726_v57, %v723_v55  ;;  %v744_v10 = vshll.u32 %v1306_v54, 16  ;;  %v1108_v46 = vld [vmem:[%s1186_s4 + $0x24] sm:$0xf0]  ;;  %v1080_v50 = vld [vmem:[%s1186_s4 + $0x20] sm:$0xe] }
  0x33   : > { %v741_v9 = vor.u32 %v740_v61, %v737_v60  ;;  %v585_v11 = vrot.slane %v1270_v52, 5  ;;  %v523_v12 = vpack.c.b16 %v521_v53, %v520_v51  ;;  %v582_v13 = vsel %vm1213_vm5, %v1032_v1, %v581_v2  ;;  %v1081_v51 = vld [vmem:[%s1186_s4 + $0x28] sm:$0xe] }
  0x34   : > { %v755_v63 = vpack.c.b16 %v752_v43, %v751_v42  ;;  %v592_v15 = vunpack.c.l.b16 %v582_v13  ;;  %v971_v47 = vor.u32 %v1098_v62, %v970_v56  ;;  %v1051_v16 = vor.u32 %v1107_v7, %v1050_v4 }
  0x35   : > { %v586_v14 = vsel %vm1213_vm5, %v1033_v3, %v585_v11  ;;  %v728_v20 = vrot.slane %v727_v8, 4  ;;  %v732_v21 = vrot.slane %v730_v58, 5  ;;  %v742_v52 = vrot.slane %v741_v9, 4 }
  0x36   : > { %v593_v19 = vunpack.c.l.b16 %v586_v14  ;;  %v746_v22 = vrot.slane %v744_v10, 5  ;;  %v806_v27 = vrot.slane %v1274_v59, 5  ;;  %v810_v28 = vrot.slane %v1280_v6, 5 }
  0x37   : > { %v1082_v30 = vrot.slane %v1078_v17, 9  ;;  %v1083_v31 = vrot.slane %v1079_v18, 9  ;;  %v733_v32 = vsel %vm1204_vm4, %v728_v20, %v732_v21  ;;  %v573_v35 = vrot.slane %v1226_v0, 5 }
  0x38   : > { %v595_v25 = vpack.c.b16 %v593_v19, %v592_v15  ;;  %v747_v33 = vsel %vm1204_vm4, %v742_v52, %v746_v22  ;;  %v577_v59 = vrot.slane %v1234_v5, 5  ;;  %v1030_v6 = vrot.slane %v1026_v24, 9 }
  0x39   : > { %v1031_v36 = vrot.slane %v1027_v29, 9  ;;  %v807_v37 = vsel %vm1213_vm5, %v1082_v30, %v806_v27  ;;  %v811_v38 = vsel %vm1213_vm5, %v1083_v31, %v810_v28  ;;  %v753_v39 = vunpack.c.l.b16 %v733_v32 }
  0x3a   : > { %v754_v40 = vunpack.c.l.b16 %v747_v33  ;;  %v574_v34 = vsel %vm1213_vm5, %v1030_v6, %v573_v35  ;;  %v823_v41 = vunpack.c.l.b16 %v807_v37  ;;  %v824_v5 = vunpack.c.l.b16 %v811_v38  ;;  %v1122_v6 = vld [vmem:[%s1382_s2] ss:$0 sm:$0xff] }
  0x3b   : > { %v578_v0 = vsel %vm1213_vm5, %v1031_v36, %v577_v59  ;;  %v590_v43 = vunpack.c.l.b16 %v574_v34  ;;  %v1055_v49 = vor.u32 %v1108_v46, %v1054_v23  ;;  %v1084_v55 = vrot.slane %v1080_v50, 9 }
  0x3c   : > { %1076 = vmatmul.msk.bf16.vlgmr.msrb.gmra.mxu3 %vm256_vm6, %v755_v63  ;;  %v756_v42 = vpack.c.b16 %v754_v40, %v753_v39  ;;  %v591_v45 = vunpack.c.l.b16 %v578_v0  ;;  %v827_v26 = vpack.c.b16 %v824_v5, %v823_v41  ;;  %v814_v56 = vrot.slane %v1301_v44, 5 }
  0x3d   : > { %v1085_v57 = vrot.slane %v1081_v51, 9  ;;  %v818_v58 = vrot.slane %v1306_v54, 5 }
  0x3e   : > { %1025 = vmatmul.msk.bf16.gmra.mxu0 %vm256_vm6, %v523_v12  ;;  %v594_v53 = vpack.c.b16 %v591_v45, %v590_v43  ;;  %v815_v60 = vsel %vm1213_vm5, %v1084_v55, %v814_v56 }
  0x3f   : > { %v819_v61 = vsel %vm1213_vm5, %v1085_v57, %v818_v58  ;;  %v825_v62 = vunpack.c.l.b16 %v815_v60 }
  0x40   : > { %1060 = vmatmul.msk.bf16.vlgmr.msrb.gmra.mxu2 %vm256_vm6, %v1051_v16  ;;  %v826_v63 = vunpack.c.l.b16 %v819_v61 }
  0x41   : > { %977 = vmatmul.msk.bf16.gmra.mxu1 %vm256_vm6, %v971_v47 }
  0x42   : > { %v828_v1 = vpack.c.b16 %v826_v63, %v825_v62 }
  0x4c   : > { %1077 = vmatmul.msk.bf16.gmra.mxu3 %vm256_vm6, %v756_v42 }
  0x4e   : > { %1092 = vmatmul.msk.bf16.vlgmr.msra.gmra.mxu0 %vm256_vm6, %v827_v26 }
  0x50   : > { %1061 = vmatmul.msk.bf16.gmra.mxu2 %vm256_vm6, %v1055_v49 }
  0x51   : > { %1040 = vmatmul.msk.bf16.vlgmr.msra.gmra.mxu1 %vm256_vm6, %v594_v53 }
  0x5e   : > { %1093 = vmatmul.msk.bf16.gmra.mxu0 %vm256_vm6, %v828_v1 }
  0x61   : > { %1041 = vmatmul.msk.bf16.gmra.mxu1 %vm256_vm6, %v595_v25 }
  0x9b   : > { %v272_v44 = vpop.f32.mrf.mxu0 }
  0x9e   : > { %v277_v2 = vpop.f32.mrf.mxu1 }
  0x9f   : > { %v437_v4 = vpop.f32.mrf.mxu3 }
  0xa3   : > { %v274_v54 = vpop.f32.mrf.mxu0  ;;  %v384_v3 = vpop.f32.mrf.mxu2 }
  0xa6   : > { %v279_v7 = vpop.f32.mrf.mxu1 }
  0xa7   : > { %v439_v11 = vpop.f32.mrf.mxu3 }
  0xab   : > { %v545_v8 = vpop.f32.mrf.mxu0  ;;  %v386_v9 = vpop.f32.mrf.mxu2 }
  0xae   : > { %v313_v10 = vpop.f32.mrf.mxu1 }
  0xaf   : > { %v442_v14 = vpop.f32.mrf.mxu3  ;;  %v314_v17 = vadd.f32 %v313_v10, %v272_v44 }
  0xb1   : > { %v394_v20 = vadd.f32 %v384_v3, %v314_v17 }
  0xb3   : > { %v547_v12 = vpop.f32.mrf.mxu0  ;;  %v389_v13 = vpop.f32.mrf.mxu2  ;;  %v447_v52 = vadd.f32 %v437_v4, %v394_v20 }
  0xb5   : > { %v555_v27 = vadd.f32 %v545_v8, %v447_v52 }
  0xb6   : > { %v315_v48 = vpop.f32.mrf.mxu1 }
  0xb7   : > { %v444_v18 = vpop.f32.mrf.mxu3  ;;  %v316_v22 = vadd.f32 %v315_v48, %v274_v54 }
  0xb9   : > { %v395_v28 = vadd.f32 %v386_v9, %v316_v22 }
  0xbb   : > { %v550_v15 = vpop.f32.mrf.mxu0  ;;  %v391_v16 = vpop.f32.mrf.mxu2  ;;  %v448_v33 = vadd.f32 %v439_v11, %v395_v28 }
  0xbd   : > { %v556_v38 = vadd.f32 %v547_v12, %v448_v33 }
  0xbe   : > { %v318_v47 = vpop.f32.mrf.mxu1 }
  0xbf   : > { %v778_v25 = vpop.f32.mrf.mxu3  ;;  %v319_v32 = vadd.f32 %v318_v47, %v277_v2 }
  0xc1   : > { %v396_v36 = vadd.f32 %v389_v13, %v319_v32 }
  0xc3   : > { %v552_v19 = vpop.f32.mrf.mxu0  ;;  %v670_v24 = vpop.f32.mrf.mxu2  ;;  %v449_v5 = vadd.f32 %v442_v14, %v396_v36 }
  0xc5   : > { %v557_v50 = vadd.f32 %v550_v15, %v449_v5 }
  0xc6   : > { %v320_v21 = vpop.f32.mrf.mxu1 }
  0xc7   : > { %v780_v40 = vpop.f32.mrf.mxu3  ;;  %v321_v43 = vadd.f32 %v320_v21, %v279_v7 }
  0xc9   : > { %v397_v51 = vadd.f32 %v391_v16, %v321_v43 }
  0xcb   : > { %v850_v30 = vpop.f32.mrf.mxu0  ;;  %v672_v37 = vpop.f32.mrf.mxu2  ;;  %v450_v61 = vadd.f32 %v444_v18, %v397_v51 }
  0xcd   : > { %v558_v3 = vadd.f32 %v552_v19, %v450_v61 }
  0xce   : > { %v617_v29 = vpop.f32.mrf.mxu1 }
  0xcf   : > { %v627_v31 = vadd.f32 %v617_v29, %v555_v27  ;;  %v783_v60 = vpop.f32.mrf.mxu3 }
  0xd1   : > { %v680_v35 = vadd.f32 %v670_v24, %v627_v31 }
  0xd3   : > { %v788_v59 = vadd.f32 %v778_v25, %v680_v35  ;;  %v852_v42 = vpop.f32.mrf.mxu0  ;;  %v675_v55 = vpop.f32.mrf.mxu2 }
  0xd5   : > { %v860_v39 = vadd.f32 %v850_v30, %v788_v59 }
  0xd6   : > { %v619_v34 = vpop.f32.mrf.mxu1 }
  0xd7   : > { %v868_v0 = vadd.f32 %v1122_v6, %v860_v39  ;;  %v628_v41 = vadd.f32 %v619_v34, %v556_v38  ;;  %v785_v48 = vpop.f32.mrf.mxu3 }
  0xd9   : > { %vm872_vm7 = vcmp.ge.f32.partialorder %v868_v0, 0.0  ;;  %v876_v45 = vmul.f32 0.2, %v868_v0  ;;  %v681_v23 = vadd.f32 %v672_v37, %v628_v41 }
  0xdb   : > { %v880_v46 = vsel %vm872_vm7, %v868_v0, %v876_v45  ;;  %v789_v26 = vadd.f32 %v780_v40, %v681_v23  ;;  %v855_v1 = vpop.f32.mrf.mxu0  ;;  %v677_v10 = vpop.f32.mrf.mxu2 }
  0xdc   : > { %v884_v49 = vpack.c.bf16 %v880_v46, %v880_v46 }
  0xdd   : > { %v861_v53 = vadd.f32 %v852_v42, %v789_v26 }
  0xde   : > { %889 = vst.msk [vmem:[%s1367_s16] sm:$0x3] %vm888_vm8, %v884_v49  ;;  %v622_v56 = vpop.f32.mrf.mxu1 }
  0xdf   : > { %v869_v57 = vadd.f32 %v1122_v6, %v861_v53  ;;  %v629_v58 = vadd.f32 %v622_v56, %v557_v50 }
  0xe1   : > { %vm873_vm9 = vcmp.ge.f32.partialorder %v869_v57, 0.0  ;;  %v877_v62 = vmul.f32 0.2, %v869_v57  ;;  %v682_v63 = vadd.f32 %v675_v55, %v629_v58 }
  0xe3   : > { %v881_v44 = vsel %vm873_vm9, %v869_v57, %v877_v62  ;;  %v790_v2 = vadd.f32 %v783_v60, %v682_v63  ;;  %v857_v47 = vpop.f32.mrf.mxu0 }
  0xe4   : > { %v885_v54 = vpack.c.bf16 %v881_v44, %v881_v44 }
  0xe5   : > { %v862_v4 = vadd.f32 %v855_v1, %v790_v2 }
  0xe6   : > { %890 = vst.msk [vmem:[%s1367_s16 + $0x2] sm:$0x3] %vm888_vm8, %v885_v54  ;;  %v624_v7 = vpop.f32.mrf.mxu1 }
  0xe7   : > { %v870_v8 = vadd.f32 %v1122_v6, %v862_v4  ;;  %v630_v9 = vadd.f32 %v624_v7, %v558_v3 }
  0xe9   : > { %vm874_vm10 = vcmp.ge.f32.partialorder %v870_v8, 0.0  ;;  %v878_v11 = vmul.f32 0.2, %v870_v8  ;;  %v683_v12 = vadd.f32 %v677_v10, %v630_v9 }
  0xeb   : > { %v882_v13 = vsel %vm874_vm10, %v870_v8, %v878_v11  ;;  %v791_v14 = vadd.f32 %v785_v48, %v683_v12 }
  0xec   : > { %v886_v15 = vpack.c.bf16 %v882_v13, %v882_v13 }
  0xed   : > { %v863_v16 = vadd.f32 %v857_v47, %v791_v14 }
  0xee   : > { %891 = vst.msk [vmem:[%s1367_s16 + $0x4] sm:$0x3] %vm888_vm8, %v886_v15 }
  0xef   : > { %v871_v17 = vadd.f32 %v1122_v6, %v863_v16 }
  0xf1   : > { %vm875_vm11 = vcmp.ge.f32.partialorder %v871_v17, 0.0  ;;  %v879_v18 = vmul.f32 0.2, %v871_v17 }
  0xf3   : > { %v883_v19 = vsel %vm875_vm11, %v871_v17, %v879_v18 }
  0xf4   : > { %v887_v20 = vpack.c.bf16 %v883_v19, %v883_v19 }
  0xf6   : > { %892 = vst.msk [vmem:[%s1367_s16 + $0x6] sm:$0x3] %vm888_vm8, %v887_v20 }
  0xf7 PF: > { %s13_s12 = sadd.s32 1, %s1129_s12  }
  0xf8   : > { %p10_p4 = scmp.ge.s32.totalorder %s13_s12, 4  }
  0xfa   :  { %12 = sbr.rel (!%p10_p4) target bundleno = 1 (0x1), region = 72 }

// kernel: _lambda_.9
= control target key start
LH: loop header
LB: loop body
LE: loop exit
PB: predicated region body
PF: predicated region fallthrough
CT: control target
= control target key end

     0   :  { %8 = vsyncpa [#allocation3], 0  ;;  %s196_s15 = smov [#allocation2]   ;;  %s239_s0 = inlined_call_operand.vmem [shape: bf16[2,256], index: 0, kind: input, shape index: {}]   ;;  %s240_s1 = inlined_call_operand.vmem [shape: f32[1,256], index: 1, kind: input, shape index: {}]   ;;  %s241_s2 = inlined_call_operand.vmem [shape: f32[2], index: 2, kind: input, shape index: {}]   ;;  %s242_s3 = inlined_call_operand.vmem [shape: f32[2,1], index: 3, kind: output, shape index: {}]  }
   0x1   :  { %s18_s14 = sshll.u32 %s241_s2, 4  ;;  %s19_s14 = int_to_ptr.vmem [resolvable:$true] %s18_s14 }
   0x2   :  { %21 = dma.vmem_to_smem %s19_s14, 16, %s196_s15, [#allocation3]  }
   0x3   :  { %194 = dma.done.wait [#allocation3], 16  }
   0x4   :  { %195 = vsyncadd [#allocation3], 4294967280 }
   0x5   :  { %26 = sfence }
   0x6   :  { %v27_v0 = vld [vmem:[%s239_s0] sm:$0x3]  ;;  %v197_v2 = vmov 2.0   ;;  %vm35_vm0 = vcmask 1041408   ;;  %vm112_vm6 = vcmask 1040384   ;;  %s166_s18 = sld [smem:[#allocation2 + $0x1]] }
   0x7   :  { %v28_v1 = vunpack.c.l.bf16 %v27_v0  ;;  %174 = vrcp.f32 %v197_v2  ;;  %v134_v43 = vld [vmem:[%s240_s1] sm:$0x3]  ;;  %s153_s1 = sld [smem:[#allocation2]]  ;;  %vm159_vm8 = vcmask 1024  }
   0x8   :  { %v137_v46 = vperm.slane %v134_v43, 1  ;;  %v136_v49 = vperm.slane %v134_v43, 0 }
   0x9   :  { %30 = vst [vmem:[#allocation1] ss:$4 sm:$0xff] %v28_v1 }
   0xa   :  { %v138_v50 = vrot.slane %v137_v46, 6 }
   0xc   :  { %v139_v51 = vsel %vm35_vm0, %v136_v49, %v138_v50 }
   0xd   :  { %v175_v3 = vpop.eup %174  ;;  %v141_v52 = vmul.f32 %v139_v51, %v28_v1 }
   0xe   :  { %v51_v4 = vmul.f32 2.0, %v175_v3  ;;  %vm55_vm1 = vweird.f32 %v175_v3 }
  0x10   :  { %v31_v5 = vld.sshfl [vmem:[#allocation1] sm:$0xff pattern:$0x73625140]  ;;  %v32_v6 = vld.sshfl [vmem:[#allocation1 + $0x8] sm:$0xff pattern:$0x73625140] }
  0x11   :  { %v36_v7 = vsel %vm35_vm0, %v31_v5, 0.0  ;;  %v43_v8 = vsel %vm35_vm0, %v32_v6, 0.0  ;;  %v52_v9 = vsub.f32 1.0, %v51_v4 }
  0x12   :  { %v37_v10 = vrot.slane %v36_v7, 4  ;;  %v44_v11 = vrot.slane %v43_v8, 4 }
  0x13   :  { %v53_v12 = vmul.f32 %v175_v3, %v52_v9 }
  0x14   :  { %v38_v13 = vadd.f32 %v37_v10, %v36_v7  ;;  %v45_v14 = vadd.f32 %v44_v11, %v43_v8 }
  0x15   :  { %v54_v17 = vadd.f32 %v175_v3, %v53_v12 }
  0x16   :  { %v39_v15 = vrot.slane %v38_v13, 2  ;;  %v46_v16 = vrot.slane %v45_v14, 2 }
  0x17   :  { %v56_v22 = vsel %vm55_vm1, %v175_v3, %v54_v17 }
  0x18   :  { %v40_v18 = vadd.f32 %v39_v15, %v38_v13  ;;  %v47_v19 = vadd.f32 %v46_v16, %v45_v14 }
  0x1a   :  { %v41_v20 = vrot.slane %v40_v18, 1  ;;  %v48_v21 = vrot.slane %v47_v19, 1 }
  0x1c   :  { %v42_v23 = vadd.f32 %v41_v20, %v40_v18  ;;  %v49_v24 = vadd.f32 %v48_v21, %v47_v19  ;;  %v198_v19 = vmov 256.0  }
  0x1e   :  { %v57_v25 = vmul.f32 %v56_v22, %v42_v23  ;;  %v58_v26 = vmul.f32 %v56_v22, %v49_v24 }
  0x20   :  { %v61_v27 = vrot.slane %v58_v26, 6 }
  0x22   :  { %v62_v28 = vsel %vm35_vm0, %v57_v25, %v61_v27 }
  0x23   :  { %v64_v29 = vsub.f32 %v28_v1, %v62_v28 }
  0x25   :  { %v65_v30 = vmul.f32 %v64_v29, %v64_v29 }
  0x27   :  { %67 = vst [vmem:[#allocation1] ss:$4 sm:$0xff] %v65_v30 }
  0x2e   :  { %v68_v31 = vld.sshfl [vmem:[#allocation1] sm:$0xff pattern:$0x73625140]  ;;  %v69_v32 = vld.sshfl [vmem:[#allocation1 + $0x8] sm:$0xff pattern:$0x73625140] }
  0x2f   :  { %v72_v33 = vsel %vm35_vm0, %v68_v31, 0.0  ;;  %v79_v34 = vsel %vm35_vm0, %v69_v32, 0.0  ;;  %143 = vst [vmem:[#allocation1] ss:$4 sm:$0xff] %v141_v52 }
  0x30   :  { %v73_v35 = vrot.slane %v72_v33, 4  ;;  %v80_v36 = vrot.slane %v79_v34, 4 }
  0x32   :  { %v74_v37 = vadd.f32 %v73_v35, %v72_v33  ;;  %v81_v38 = vadd.f32 %v80_v36, %v79_v34 }
  0x34   :  { %v75_v39 = vrot.slane %v74_v37, 2  ;;  %v82_v40 = vrot.slane %v81_v38, 2 }
  0x36   :  { %v76_v41 = vadd.f32 %v75_v39, %v74_v37  ;;  %v83_v42 = vadd.f32 %v82_v40, %v81_v38  ;;  %v144_v14 = vld.sshfl [vmem:[#allocation1] sm:$0xff pattern:$0x73625140]  ;;  %v145_v15 = vld.sshfl [vmem:[#allocation1 + $0x8] sm:$0xff pattern:$0x73625140] }
  0x37   :  { %v148_v16 = vsel %vm35_vm0, %v144_v14, 0.0  ;;  %v149_v17 = vsel %vm35_vm0, %v145_v15, 0.0 }
  0x38   :  { %v77_v44 = vrot.slane %v76_v41, 1  ;;  %v84_v45 = vrot.slane %v83_v42, 1  ;;  %v150_v18 = vadd.f32 %v149_v17, %v148_v16 }
  0x3a   :  { %v78_v47 = vadd.f32 %v77_v44, %v76_v41  ;;  %v85_v48 = vadd.f32 %v84_v45, %v83_v42 }
  0x3c   :  { %176 = vrsqrt.f32 %v78_v47  ;;  %vm93_vm2 = vcmp.eq.f32.partialorder %v78_v47, inf  ;;  %v96_v0 = vand.u32 2147483648, %v78_v47  ;;  %vm95_vm3 = vcmp.eq.f32.partialorder %v78_v47, 0.0 }
  0x3d   :  { %178 = vrsqrt.f32 %v85_v48  ;;  %vm105_vm4 = vcmp.eq.f32.partialorder %v85_v48, inf  ;;  %v108_v4 = vand.u32 2147483648, %v85_v48  ;;  %vm107_vm5 = vcmp.eq.f32.partialorder %v85_v48, 0.0 }
  0x3e   :  { %180 = vrcp.f32 %v198_v19 }
  0x42   :  { %v177_v53 = vpop.eup %176 }
  0x43   :  { %v179_v54 = vpop.eup %178  ;;  %v87_v55 = vmul.f32 %v177_v53, %v78_v47 }
  0x44   :  { %v99_v56 = vmul.f32 %v179_v54, %v85_v48  ;;  %v181_v20 = vpop.eup %180 }
  0x45   :  { %v88_v57 = vmul.f32 %v177_v53, %v87_v55  ;;  %v126_v21 = vmul.f32 256.0, %v181_v20  ;;  %vm130_vm7 = vweird.f32 %v181_v20 }
  0x46   :  { %v100_v58 = vmul.f32 %v179_v54, %v99_v56 }
  0x47   :  { %v89_v59 = vmul.f32 0.5, %v88_v57  ;;  %v127_v22 = vsub.f32 1.0, %v126_v21 }
  0x48   :  { %v101_v60 = vmul.f32 0.5, %v100_v58 }
  0x49   :  { %v90_v61 = vsub.f32 1.5, %v89_v59  ;;  %v128_v26 = vmul.f32 %v181_v20, %v127_v22 }
  0x4a   :  { %v102_v62 = vsub.f32 1.5, %v101_v60 }
  0x4b   :  { %v91_v63 = vmul.f32 %v177_v53, %v90_v61  ;;  %v129_v29 = vadd.f32 %v181_v20, %v128_v26 }
  0x4c   :  { %v103_v2 = vmul.f32 %v179_v54, %v102_v62 }
  0x4d   :  { %v92_v3 = vmul.f32 %v91_v63, %v78_v47  ;;  %v131_v32 = vsel %vm130_vm7, %v181_v20, %v129_v29 }
  0x4e   :  { %v104_v1 = vmul.f32 %v103_v2, %v85_v48 }
  0x4f   :  { %v94_v5 = vsel %vm93_vm2, %v78_v47, %v92_v3 }
  0x50   :  { %v97_v6 = vsel %vm95_vm3, %v96_v0, %v94_v5  ;;  %v106_v7 = vsel %vm105_vm4, %v85_v48, %v104_v1 }
  0x51   :  { %v109_v8 = vsel %vm107_vm5, %v108_v4, %v106_v7  ;;  %v110_v9 = vadd.f32 1e-08, %v97_v6 }
  0x52   :  { %v111_v10 = vadd.f32 1e-08, %v109_v8 }
  0x53   :  { %v113_v11 = vsel %vm112_vm6, %v110_v9, 0.0 }
  0x54   :  { %v114_v12 = vsel %vm112_vm6, %v111_v10, 0.0 }
  0x55   :  { %v115_v13 = vadd.f32 %v114_v12, %v113_v11 }
  0x57   :  { %116 = vadd.xlane.f32.xlu0 %v115_v13 }
  0x5f   :  { %151 = vadd.xlane.f32.xlu0 %v150_v18 }
  0xca   :  { %v117_v23 = vpop.xlane.xlu0 %116 }
  0xcb   :  { %v118_v24 = vrot.slane %v117_v23, 4 }
  0xcd   :  { %v119_v25 = vadd.f32 %v118_v24, %v117_v23 }
  0xcf   :  { %v120_v27 = vrot.slane %v119_v25, 2 }
  0xd1   :  { %v121_v28 = vadd.f32 %v120_v27, %v119_v25 }
  0xd2   :  { %v152_v33 = vpop.xlane.xlu0 %151 }
  0xd3   :  { %v122_v30 = vrot.slane %v121_v28, 1 }
  0xd5   :  { %v123_v31 = vadd.f32 %v122_v30, %v121_v28 }
  0xd7   :  { %167 = vpush %v123_v31 }
  0xd8   :  { %169 = vpush %v131_v32 }
 0x108   :  { %s168_s19 = spop %167 }
 0x109   :  { %s170_s20 = spop %169 }
 0x10a   :  { %s133_s21 = smul.f32 %s170_s20, %s168_s19 }
 0x10c   :  { %s154_s22 = smul.f32 %s153_s1, %s133_s21 }
 0x10e   :  { %s156_s23 = sadd.f32 %s166_s18, %s154_s22 }
 0x110   :  { %v157_v34 = vstv %s156_s23 }
 0x111   :  { %v158_v35 = vadd.f32 %v157_v34, %v152_v33 }
 0x113   :  { %160 = vst.msk [vmem:[%s242_s3] sm:$0x3] %vm159_vm8, %v158_v35 }
 0x114   :  { %165 = vsyncpa [#allocation3], 1 }

</bundles_post_ra>
